<compile_context>
chip_gen: v6e
topology: v6e:2x2x1
jax: 0.10.0
libtpu: 0.0.40
codegen_flags: <defaults>
</compile_context>

<pallas_src>
import functools

import numpy as np

import jax
import jax.numpy as jnp
from jax.experimental import pallas as pl
from jax.experimental.pallas import tpu as pltpu


def _interp_matrix(out_len, in_len):
    """1-D linear interpolation matrix matching PyTorch bilinear align_corners=True."""
    a = np.zeros((out_len, in_len), np.float32)
    if in_len == 1:
        a[:, 0] = 1.0
        return a
    if out_len == 1:
        a[0, 0] = 1.0
        return a
    s = np.arange(out_len, dtype=np.float64) * (in_len - 1) / (out_len - 1)
    lo = np.minimum(np.floor(s).astype(np.int64), in_len - 2)
    frac = (s - lo).astype(np.float32)
    a[np.arange(out_len), lo] = 1.0 - frac
    a[np.arange(out_len), lo + 1] = frac
    return a


def _fold_bn(gamma, beta, mean, var, eps=1e-5):
    """Fold inference-mode BatchNorm into a per-channel (scale, shift)."""
    scale = gamma.astype(jnp.float32) / jnp.sqrt(var.astype(jnp.float32) + eps)
    shift = beta.astype(jnp.float32) - mean.astype(jnp.float32) * scale
    return scale, shift


def _conv3x3_bn_relu(xpad_ref, w_ref, s_ref, b_ref, cin, cout, h, out_w, emit):
    """3x3 conv over a zero-padded (cin, h+2, wtot) VMEM tile whose lane axis
    packs NB batch "segments", fused with folded-BN affine + ReLU.

    ci-outer / co-inner ordering: each (h, wtot) row band is loaded once per
    (ci, dy); the dx=0,1,2 taps are static slices of that loaded value (an
    in-register lane shift, not a reload), and all Cout accumulators reuse the
    same tap.  Weights / BN affines are SMEM scalars -> pure VPU broadcast
    MACs (MXU would be <3% utilized at these channel counts)."""
    accs = [jnp.zeros((h, out_w), jnp.float32) for _ in range(cout)]
    for ci in range(cin):
        for dy in range(3):
            band = xpad_ref[ci, dy:dy + h, :]                 # one aligned load
            taps = [band[:, dx:dx + out_w] for dx in range(3)]
            for dx in range(3):
                tap = taps[dx]
                for co in range(cout):
                    accs[co] = accs[co] + w_ref[(co * cin + ci) * 9 + 3 * dy + dx] * tap
    for co in range(cout):
        emit(co, jnp.maximum(accs[co] * s_ref[co] + b_ref[co], 0.0))


def _up_kernel(x1_ref, x2_ref, ah_ref, awt_ref,
               w1_ref, s1_ref, b1_ref, w2_ref, s2_ref, b2_ref,
               o_ref, xpad1_ref, xpad2_ref, *,
               NB, C1, C2, Cmid, Cout, H, W, H_up, W_up, top, left):
    Cin = C1 + C2
    Wseg = W + 2                      # per-image padded segment width (lanes)
    out_w = NB * Wseg - 2             # accumulator width covering all segments

    # One-time scratch zero-init: borders and pad gaps stay zero across grid
    # steps, the data regions are fully rewritten every step.  Safe because
    # the grid axis is "arbitrary" (sequential on a single core).
    @pl.when(pl.program_id(0) == 0)
    def _():
        xpad1_ref[...] = jnp.zeros_like(xpad1_ref)
        xpad2_ref[...] = jnp.zeros_like(xpad2_ref)

    # ---- Stage 1: zero-padded concat([x2, upsample(x1)]) in VMEM,
    #               NB batch elements packed side by side on the lane axis ----
    for n in range(NB):
        col0 = n * Wseg + 1
        for c in range(C2):                       # skip connection x2
            xpad1_ref[c, 1:1 + H, col0:col0 + W] = x2_ref[n, c].astype(jnp.float32)

    ah = ah_ref[...]                              # (H_up, H1)
    awt = awt_ref[...]                            # (W1, W_up)
    for n in range(NB):
        col0 = n * Wseg + 1
        for c in range(C1):                       # bilinear 2x upsample on the MXU
            xc = x1_ref[n, c].astype(jnp.float32)                       # (H1, W1)
            t = jnp.dot(xc, awt, preferred_element_type=jnp.float32)    # width pass
            up = jnp.dot(ah, t, preferred_element_type=jnp.float32)     # height pass
            xpad1_ref[C2 + c, 1 + top:1 + top + H_up,
                      col0 + left:col0 + left + W_up] = up

    # ---- Stage 2: conv3x3 + BN + ReLU -> zero-padded mid activation (VMEM) ----
    def emit_mid(co, tile):                       # tile: (H, out_w)
        for n in range(NB):
            xpad2_ref[co, 1:1 + H, n * Wseg + 1:n * Wseg + 1 + W] = \
                tile[:, n * Wseg:n * Wseg + W]

    _conv3x3_bn_relu(xpad1_ref, w1_ref, s1_ref, b1_ref, Cin, Cmid, H, out_w, emit_mid)

    # ---- Stage 3: conv3x3 + BN + ReLU -> output ----
    def emit_out(co, tile):
        for n in range(NB):
            o_ref[n, co] = tile[:, n * Wseg:n * Wseg + W].astype(o_ref.dtype)

    _conv3x3_bn_relu(xpad2_ref, w2_ref, s2_ref, b2_ref, Cmid, Cout, H, out_w, emit_out)


@jax.jit
def up_forward(x1, x2, params):
    """Forward pass of Up(in_channels, out_channels, bilinear=True).

    x1: (N, C1, H1, W1) low-resolution map (gets 2x bilinear upsample).
    x2: (N, C2, H, W)   skip connection; output is (N, out_channels, H, W).
    """
    N, C1, H1, W1 = x1.shape
    N2, C2, H, W = x2.shape
    assert N == N2
    w1, w2 = params["w1"], params["w2"]
    Cmid, Cin = w1.shape[0], w1.shape[1]
    Cout = w2.shape[0]
    assert Cin == C1 + C2 and w2.shape[1] == Cmid

    H_up, W_up = 2 * H1, 2 * W1
    diff_y, diff_x = H - H_up, W - W_up
    assert diff_y >= 0 and diff_x >= 0
    top, left = diff_y // 2, diff_x // 2

    # Pack batch elements onto the lane axis: amortizes per-step overhead and
    # raises lane occupancy when W << 128.
    Wseg = W + 2
    nb_cap = max(1, 128 // Wseg)
    NB = 1
    for d in range(min(N, nb_cap), 0, -1):
        if N % d == 0:
            NB = d
            break

    # 1-D interpolation matrices for align_corners=True bilinear upsampling.
    ah = jnp.asarray(_interp_matrix(H_up, H1))            # (H_up, H1)
    awt = jnp.asarray(_interp_matrix(W_up, W1).T)         # (W1, W_up)

    s1, b1 = _fold_bn(*params["bn1"])
    s2, b2 = _fold_bn(*params["bn2"])
    w1f = w1.astype(jnp.float32).reshape(-1)              # SMEM scalar weights
    w2f = w2.astype(jnp.float32).reshape(-1)

    kernel = functools.partial(
        _up_kernel, NB=NB, C1=C1, C2=C2, Cmid=Cmid, Cout=Cout, H=H, W=W,
        H_up=H_up, W_up=W_up, top=top, left=left)

    flops = N * (18 * H * W * (Cin * Cmid + Cmid * Cout)
                 + 2 * C1 * (H1 * W1 * W_up + H_up * H1 * W_up))
    bytes_accessed = 4 * (x1.size + x2.size + N * Cout * H * W
                          + w1.size + w2.size + 2 * (Cmid + Cout))

    smem = pl.BlockSpec(memory_space=pltpu.MemorySpace.SMEM)
    return pl.pallas_call(
        kernel,
        out_shape=jax.ShapeDtypeStruct((N, Cout, H, W), x2.dtype),
        grid_spec=pltpu.PrefetchScalarGridSpec(
            num_scalar_prefetch=0,
            grid=(N // NB,),
            in_specs=[
                pl.BlockSpec((NB, C1, H1, W1), lambda g: (g, 0, 0, 0)),  # x1
                pl.BlockSpec((NB, C2, H, W), lambda g: (g, 0, 0, 0)),    # x2
                pl.BlockSpec((H_up, H1), lambda g: (0, 0)),              # A_h
                pl.BlockSpec((W1, W_up), lambda g: (0, 0)),              # A_w^T
                smem, smem, smem,   # conv1 weights, BN1 scale, BN1 shift
                smem, smem, smem,   # conv2 weights, BN2 scale, BN2 shift
            ],
            out_specs=pl.BlockSpec((NB, Cout, H, W), lambda g: (g, 0, 0, 0)),
            scratch_shapes=[
                pltpu.VMEM((Cin, H + 2, NB * Wseg), jnp.float32),   # padded concat
                pltpu.VMEM((Cmid, H + 2, NB * Wseg), jnp.float32),  # padded mid act
            ],
        ),
        compiler_params=pltpu.CompilerParams(
            # sequential grid: required by the one-time scratch zero-init
            dimension_semantics=("arbitrary",),
            vmem_limit_bytes=8 * 1024 * 1024,
        ),
        cost_estimate=pl.CostEstimate(flops=flops, transcendentals=0,
                                      bytes_accessed=bytes_accessed),
    )(x1, x2, ah, awt, w1f, s1, b1, w2f, s2, b2)


def init_up_params(key, in_channels, out_channels):
    """Deterministic params mimicking nn.Conv2d / BatchNorm2d (eval mode)."""
    mid = in_channels // 2
    ks = jax.random.split(key, 10)

    def conv_w(k, cout, cin):
        bound = 1.0 / np.sqrt(cin * 9)
        return jax.random.uniform(k, (cout, cin, 3, 3), jnp.float32, -bound, bound)

    def bn_params(k0, k1, k2, k3, c):
        gamma = jax.random.uniform(k0, (c,), jnp.float32, 0.5, 1.5)
        beta = 0.1 * jax.random.normal(k1, (c,), jnp.float32)
        mean = 0.1 * jax.random.normal(k2, (c,), jnp.float32)
        var = jax.random.uniform(k3, (c,), jnp.float32, 0.5, 1.5)
        return gamma, beta, mean, var

    return {
        "w1": conv_w(ks[0], mid, in_channels),
        "bn1": bn_params(ks[1], ks[2], ks[3], ks[4], mid),
        "w2": conv_w(ks[5], out_channels, mid),
        "bn2": bn_params(ks[6], ks[7], ks[8], ks[9], out_channels),
    }


def up_forward_ref(x1, x2, params):
    """Plain-JAX reference for Up.forward (bilinear=True, eval-mode BN)."""
    N, C1, H1, W1 = x1.shape
    _, C2, H, W = x2.shape
    H_up, W_up = 2 * H1, 2 * W1

    # Bilinear x2 upsample, align_corners=True (independent gather+lerp form).
    ys = jnp.arange(H_up, dtype=jnp.float32) * (H1 - 1) / (H_up - 1)
    y0 = jnp.clip(jnp.floor(ys).astype(jnp.int32), 0, H1 - 2)
    fy = ys - y0.astype(jnp.float32)
    xs = jnp.arange(W_up, dtype=jnp.float32) * (W1 - 1) / (W_up - 1)
    x0 = jnp.clip(jnp.floor(xs).astype(jnp.int32), 0, W1 - 2)
    fx = xs - x0.astype(jnp.float32)
    rows = (x1[:, :, y0, :] * (1.0 - fy)[None, None, :, None]
            + x1[:, :, y0 + 1, :] * fy[None, None, :, None])
    up = (rows[:, :, :, x0] * (1.0 - fx)[None, None, None, :]
          + rows[:, :, :, x0 + 1] * fx[None, None, None, :])

    diff_y, diff_x = H - H_up, W - W_up
    up = jnp.pad(up, ((0, 0), (0, 0),
                      (diff_y // 2, diff_y - diff_y // 2),
                      (diff_x // 2, diff_x - diff_x // 2)))
    x = jnp.concatenate([x2, up], axis=1)

    def conv_bn_relu(inp, w, bn):
        gamma, beta, mean, var = bn
        y = jax.lax.conv_general_dilated(
            inp, w, window_strides=(1, 1), padding=((1, 1), (1, 1)),
            dimension_numbers=("NCHW", "OIHW", "NCHW"),
            precision=jax.lax.Precision.HIGHEST)
        scale = gamma / jnp.sqrt(var + 1e-5)
        shift = beta - mean * scale
        return jnp.maximum(y * scale[None, :, None, None]
                           + shift[None, :, None, None], 0.0)

    y = conv_bn_relu(x, params["w1"], params["bn1"])
    return conv_bn_relu(y, params["w2"], params["bn2"])


if __name__ == "__main__":
    key = jax.random.PRNGKey(0)
    k1, k2, kp = jax.random.split(key, 3)

    N = 2
    in_channels, out_channels = 4, 4      # Up(4, 4, bilinear=True)
    C1 = in_channels // 2                 # low-res feature-map channels
    C2 = in_channels - C1                 # skip-connection channels
    H1 = W1 = 8                           # x1 spatial; x2 is 16x16

    x1 = jax.random.normal(k1, (N, C1, H1, W1), jnp.float32)
    x2 = jax.random.normal(k2, (N, C2, 2 * H1, 2 * W1), jnp.float32)
    params = init_up_params(kp, in_channels, out_channels)

    y = up_forward(x1, x2, params)
    y = jax.block_until_ready(y)

    y_ref = up_forward_ref(x1, x2, params)
    assert y.shape == (N, out_channels, 2 * H1, 2 * W1)
    max_err = float(jnp.max(jnp.abs(y - y_ref)))
    assert jnp.allclose(y, y_ref, atol=1e-3, rtol=1e-3), max_err

    print("KERNEL_OK")
</pallas_src>

<mosaic_0001>
module attributes {stable_mosaic.version = 11 : i64} {
  func.func @_up_kernel(%arg0: i32, %arg1: memref<2x2x8x8xf32, #tpu.memory_space<vmem>>, %arg2: memref<2x2x16x16xf32, #tpu.memory_space<vmem>>, %arg3: memref<16x8xf32, #tpu.memory_space<vmem>>, %arg4: memref<8x16xf32, #tpu.memory_space<vmem>>, %arg5: memref<72xf32, #tpu.memory_space<smem>>, %arg6: memref<2xf32, #tpu.memory_space<smem>>, %arg7: memref<2xf32, #tpu.memory_space<smem>>, %arg8: memref<72xf32, #tpu.memory_space<smem>>, %arg9: memref<4xf32, #tpu.memory_space<smem>>, %arg10: memref<4xf32, #tpu.memory_space<smem>>, %arg11: memref<2x4x16x16xf32, #tpu.memory_space<vmem>>, %arg12: memref<4x18x36xf32, #tpu.memory_space<vmem>>, %arg13: memref<2x18x36xf32, #tpu.memory_space<vmem>>) attributes {dimension_semantics = [#tpu.dimension_semantics<arbitrary>], iteration_bounds = array<i64: 1>, scalar_prefetch = 0 : i64, scratch_operands = 2 : i64, tpu.core_type = #tpu.core_type<tc>, window_params = [{transform_indices = @transform_0, window_bounds = array<i64: 2, 2, 8, 8>}, {transform_indices = @transform_1, window_bounds = array<i64: 2, 2, 16, 16>}, {pipeline_mode = #tpu.pipeline_mode<synchronous>, transform_indices = @transform_2, window_bounds = array<i64: 16, 8>}, {pipeline_mode = #tpu.pipeline_mode<synchronous>, transform_indices = @transform_3, window_bounds = array<i64: 8, 16>}, {transform_indices = @transform_4, window_bounds = array<i64: 72>}, {transform_indices = @transform_5, window_bounds = array<i64: 2>}, {transform_indices = @transform_6, window_bounds = array<i64: 2>}, {transform_indices = @transform_7, window_bounds = array<i64: 72>}, {transform_indices = @transform_8, window_bounds = array<i64: 4>}, {transform_indices = @transform_9, window_bounds = array<i64: 4>}, {transform_indices = @transform_10, window_bounds = array<i64: 2, 4, 16, 16>}]} {
    %c0_i32 = arith.constant 0 : i32
    %0 = arith.cmpi eq, %arg0, %c0_i32 : i32
    %1 = arith.extui %0 : i1 to i32
    %c0_i32_0 = arith.constant 0 : i32
    %2 = arith.cmpi ne, %1, %c0_i32_0 : i32
    scf.if %2 {
      %cst_262 = arith.constant 0.000000e+00 : f32
      %821 = vector.broadcast %cst_262 : f32 to vector<4x18x36xf32>
      %c0_263 = arith.constant 0 : index
      %c0_264 = arith.constant 0 : index
      %c0_265 = arith.constant 0 : index
      %822 = vector.load %arg12[%c0_263, %c0_264, %c0_265] : memref<4x18x36xf32, #tpu.memory_space<vmem>>, vector<4x18x36xf32>
      tpu.vector_store %arg12[%c0_263, %c0_264, %c0_265], %821 {strides = array<i32>} : memref<4x18x36xf32, #tpu.memory_space<vmem>>, vector<4x18x36xf32>,
      %cst_266 = arith.constant 0.000000e+00 : f32
      %823 = vector.broadcast %cst_266 : f32 to vector<2x18x36xf32>
      %c0_267 = arith.constant 0 : index
      %c0_268 = arith.constant 0 : index
      %c0_269 = arith.constant 0 : index
      %824 = vector.load %arg13[%c0_267, %c0_268, %c0_269] : memref<2x18x36xf32, #tpu.memory_space<vmem>>, vector<2x18x36xf32>
      tpu.vector_store %arg13[%c0_267, %c0_268, %c0_269], %823 {strides = array<i32>} : memref<2x18x36xf32, #tpu.memory_space<vmem>>, vector<2x18x36xf32>,
    } else {
    }
    %c0 = arith.constant 0 : index
    %c0_1 = arith.constant 0 : index
    %c0_2 = arith.constant 0 : index
    %c0_3 = arith.constant 0 : index
    %3 = vector.load %arg2[%c0, %c0_1, %c0_2, %c0_3] : memref<2x2x16x16xf32, #tpu.memory_space<vmem>>, vector<1x1x16x16xf32>
    %4 = vector.shape_cast %3 : vector<1x1x16x16xf32> to vector<16x16xf32>
    %c0_4 = arith.constant 0 : index
    %c1 = arith.constant 1 : index
    %c1_5 = arith.constant 1 : index
    %5 = vector.load %arg12[%c0_4, %c1, %c1_5] : memref<4x18x36xf32, #tpu.memory_space<vmem>>, vector<1x16x16xf32>
    %6 = vector.shape_cast %5 : vector<1x16x16xf32> to vector<16x16xf32>
    %7 = vector.shape_cast %4 : vector<16x16xf32> to vector<1x16x16xf32>
    tpu.vector_store %arg12[%c0_4, %c1, %c1_5], %7 {strides = array<i32>} : memref<4x18x36xf32, #tpu.memory_space<vmem>>, vector<1x16x16xf32>,
    %c0_6 = arith.constant 0 : index
    %c1_7 = arith.constant 1 : index
    %c0_8 = arith.constant 0 : index
    %c0_9 = arith.constant 0 : index
    %8 = vector.load %arg2[%c0_6, %c1_7, %c0_8, %c0_9] : memref<2x2x16x16xf32, #tpu.memory_space<vmem>>, vector<1x1x16x16xf32>
    %9 = vector.shape_cast %8 : vector<1x1x16x16xf32> to vector<16x16xf32>
    %c1_10 = arith.constant 1 : index
    %c1_11 = arith.constant 1 : index
    %c1_12 = arith.constant 1 : index
    %10 = vector.load %arg12[%c1_10, %c1_11, %c1_12] : memref<4x18x36xf32, #tpu.memory_space<vmem>>, vector<1x16x16xf32>
    %11 = vector.shape_cast %10 : vector<1x16x16xf32> to vector<16x16xf32>
    %12 = vector.shape_cast %9 : vector<16x16xf32> to vector<1x16x16xf32>
    tpu.vector_store %arg12[%c1_10, %c1_11, %c1_12], %12 {strides = array<i32>} : memref<4x18x36xf32, #tpu.memory_space<vmem>>, vector<1x16x16xf32>,
    %c1_13 = arith.constant 1 : index
    %c0_14 = arith.constant 0 : index
    %c0_15 = arith.constant 0 : index
    %c0_16 = arith.constant 0 : index
    %13 = vector.load %arg2[%c1_13, %c0_14, %c0_15, %c0_16] : memref<2x2x16x16xf32, #tpu.memory_space<vmem>>, vector<1x1x16x16xf32>
    %14 = vector.shape_cast %13 : vector<1x1x16x16xf32> to vector<16x16xf32>
    %c0_17 = arith.constant 0 : index
    %c1_18 = arith.constant 1 : index
    %c19 = arith.constant 19 : index
    %15 = vector.load %arg12[%c0_17, %c1_18, %c19] : memref<4x18x36xf32, #tpu.memory_space<vmem>>, vector<1x16x16xf32>
    %16 = vector.shape_cast %15 : vector<1x16x16xf32> to vector<16x16xf32>
    %17 = vector.shape_cast %14 : vector<16x16xf32> to vector<1x16x16xf32>
    tpu.vector_store %arg12[%c0_17, %c1_18, %c19], %17 {strides = array<i32>} : memref<4x18x36xf32, #tpu.memory_space<vmem>>, vector<1x16x16xf32>,
    %c1_19 = arith.constant 1 : index
    %c1_20 = arith.constant 1 : index
    %c0_21 = arith.constant 0 : index
    %c0_22 = arith.constant 0 : index
    %18 = vector.load %arg2[%c1_19, %c1_20, %c0_21, %c0_22] : memref<2x2x16x16xf32, #tpu.memory_space<vmem>>, vector<1x1x16x16xf32>
    %19 = vector.shape_cast %18 : vector<1x1x16x16xf32> to vector<16x16xf32>
    %c1_23 = arith.constant 1 : index
    %c1_24 = arith.constant 1 : index
    %c19_25 = arith.constant 19 : index
    %20 = vector.load %arg12[%c1_23, %c1_24, %c19_25] : memref<4x18x36xf32, #tpu.memory_space<vmem>>, vector<1x16x16xf32>
    %21 = vector.shape_cast %20 : vector<1x16x16xf32> to vector<16x16xf32>
    %22 = vector.shape_cast %19 : vector<16x16xf32> to vector<1x16x16xf32>
    tpu.vector_store %arg12[%c1_23, %c1_24, %c19_25], %22 {strides = array<i32>} : memref<4x18x36xf32, #tpu.memory_space<vmem>>, vector<1x16x16xf32>,
    %c0_26 = arith.constant 0 : index
    %c0_27 = arith.constant 0 : index
    %23 = vector.load %arg3[%c0_26, %c0_27] : memref<16x8xf32, #tpu.memory_space<vmem>>, vector<16x8xf32>
    %c0_28 = arith.constant 0 : index
    %c0_29 = arith.constant 0 : index
    %24 = vector.load %arg4[%c0_28, %c0_29] : memref<8x16xf32, #tpu.memory_space<vmem>>, vector<8x16xf32>
    %c0_30 = arith.constant 0 : index
    %c0_31 = arith.constant 0 : index
    %c0_32 = arith.constant 0 : index
    %c0_33 = arith.constant 0 : index
    %25 = vector.load %arg1[%c0_30, %c0_31, %c0_32, %c0_33] : memref<2x2x8x8xf32, #tpu.memory_space<vmem>>, vector<1x1x8x8xf32>
    %26 = vector.shape_cast %25 : vector<1x1x8x8xf32> to vector<8x8xf32>
    %cst = arith.constant dense<0.000000e+00> : vector<8x16xf32>
    %27 = tpu.matmul %26, %24, %cst {dimension_numbers = #tpu.dot_dimension_numbers<[1], [0], [0], [1], [0, 0, 1, 1], [], []>} : vector<8x8xf32>, vector<8x16xf32>, vector<8x16xf32> -> vector<8x16xf32>
    %cst_34 = arith.constant dense<0.000000e+00> : vector<16x16xf32>
    %28 = tpu.matmul %23, %27, %cst_34 {dimension_numbers = #tpu.dot_dimension_numbers<[1], [0], [0], [1], [0, 0, 1, 1], [], []>} : vector<16x8xf32>, vector<8x16xf32>, vector<16x16xf32> -> vector<16x16xf32>
    %c2 = arith.constant 2 : index
    %c1_35 = arith.constant 1 : index
    %c1_36 = arith.constant 1 : index
    %29 = vector.load %arg12[%c2, %c1_35, %c1_36] : memref<4x18x36xf32, #tpu.memory_space<vmem>>, vector<1x16x16xf32>
    %30 = vector.shape_cast %29 : vector<1x16x16xf32> to vector<16x16xf32>
    %31 = vector.shape_cast %28 : vector<16x16xf32> to vector<1x16x16xf32>
    tpu.vector_store %arg12[%c2, %c1_35, %c1_36], %31 {strides = array<i32>} : memref<4x18x36xf32, #tpu.memory_space<vmem>>, vector<1x16x16xf32>,
    %c0_37 = arith.constant 0 : index
    %c1_38 = arith.constant 1 : index
    %c0_39 = arith.constant 0 : index
    %c0_40 = arith.constant 0 : index
    %32 = vector.load %arg1[%c0_37, %c1_38, %c0_39, %c0_40] : memref<2x2x8x8xf32, #tpu.memory_space<vmem>>, vector<1x1x8x8xf32>
    %33 = vector.shape_cast %32 : vector<1x1x8x8xf32> to vector<8x8xf32>
    %cst_41 = arith.constant dense<0.000000e+00> : vector<8x16xf32>
    %34 = tpu.matmul %33, %24, %cst_41 {dimension_numbers = #tpu.dot_dimension_numbers<[1], [0], [0], [1], [0, 0, 1, 1], [], []>} : vector<8x8xf32>, vector<8x16xf32>, vector<8x16xf32> -> vector<8x16xf32>
    %cst_42 = arith.constant dense<0.000000e+00> : vector<16x16xf32>
    %35 = tpu.matmul %23, %34, %cst_42 {dimension_numbers = #tpu.dot_dimension_numbers<[1], [0], [0], [1], [0, 0, 1, 1], [], []>} : vector<16x8xf32>, vector<8x16xf32>, vector<16x16xf32> -> vector<16x16xf32>
    %c3 = arith.constant 3 : index
    %c1_43 = arith.constant 1 : index
    %c1_44 = arith.constant 1 : index
    %36 = vector.load %arg12[%c3, %c1_43, %c1_44] : memref<4x18x36xf32, #tpu.memory_space<vmem>>, vector<1x16x16xf32>
    %37 = vector.shape_cast %36 : vector<1x16x16xf32> to vector<16x16xf32>
    %38 = vector.shape_cast %35 : vector<16x16xf32> to vector<1x16x16xf32>
    tpu.vector_store %arg12[%c3, %c1_43, %c1_44], %38 {strides = array<i32>} : memref<4x18x36xf32, #tpu.memory_space<vmem>>, vector<1x16x16xf32>,
    %c1_45 = arith.constant 1 : index
    %c0_46 = arith.constant 0 : index
    %c0_47 = arith.constant 0 : index
    %c0_48 = arith.constant 0 : index
    %39 = vector.load %arg1[%c1_45, %c0_46, %c0_47, %c0_48] : memref<2x2x8x8xf32, #tpu.memory_space<vmem>>, vector<1x1x8x8xf32>
    %40 = vector.shape_cast %39 : vector<1x1x8x8xf32> to vector<8x8xf32>
    %cst_49 = arith.constant dense<0.000000e+00> : vector<8x16xf32>
    %41 = tpu.matmul %40, %24, %cst_49 {dimension_numbers = #tpu.dot_dimension_numbers<[1], [0], [0], [1], [0, 0, 1, 1], [], []>} : vector<8x8xf32>, vector<8x16xf32>, vector<8x16xf32> -> vector<8x16xf32>
    %cst_50 = arith.constant dense<0.000000e+00> : vector<16x16xf32>
    %42 = tpu.matmul %23, %41, %cst_50 {dimension_numbers = #tpu.dot_dimension_numbers<[1], [0], [0], [1], [0, 0, 1, 1], [], []>} : vector<16x8xf32>, vector<8x16xf32>, vector<16x16xf32> -> vector<16x16xf32>
    %c2_51 = arith.constant 2 : index
    %c1_52 = arith.constant 1 : index
    %c19_53 = arith.constant 19 : index
    %43 = vector.load %arg12[%c2_51, %c1_52, %c19_53] : memref<4x18x36xf32, #tpu.memory_space<vmem>>, vector<1x16x16xf32>
    %44 = vector.shape_cast %43 : vector<1x16x16xf32> to vector<16x16xf32>
    %45 = vector.shape_cast %42 : vector<16x16xf32> to vector<1x16x16xf32>
    tpu.vector_store %arg12[%c2_51, %c1_52, %c19_53], %45 {strides = array<i32>} : memref<4x18x36xf32, #tpu.memory_space<vmem>>, vector<1x16x16xf32>,
    %c1_54 = arith.constant 1 : index
    %c1_55 = arith.constant 1 : index
    %c0_56 = arith.constant 0 : index
    %c0_57 = arith.constant 0 : index
    %46 = vector.load %arg1[%c1_54, %c1_55, %c0_56, %c0_57] : memref<2x2x8x8xf32, #tpu.memory_space<vmem>>, vector<1x1x8x8xf32>
    %47 = vector.shape_cast %46 : vector<1x1x8x8xf32> to vector<8x8xf32>
    %cst_58 = arith.constant dense<0.000000e+00> : vector<8x16xf32>
    %48 = tpu.matmul %47, %24, %cst_58 {dimension_numbers = #tpu.dot_dimension_numbers<[1], [0], [0], [1], [0, 0, 1, 1], [], []>} : vector<8x8xf32>, vector<8x16xf32>, vector<8x16xf32> -> vector<8x16xf32>
    %cst_59 = arith.constant dense<0.000000e+00> : vector<16x16xf32>
    %49 = tpu.matmul %23, %48, %cst_59 {dimension_numbers = #tpu.dot_dimension_numbers<[1], [0], [0], [1], [0, 0, 1, 1], [], []>} : vector<16x8xf32>, vector<8x16xf32>, vector<16x16xf32> -> vector<16x16xf32>
    %c3_60 = arith.constant 3 : index
    %c1_61 = arith.constant 1 : index
    %c19_62 = arith.constant 19 : index
    %50 = vector.load %arg12[%c3_60, %c1_61, %c19_62] : memref<4x18x36xf32, #tpu.memory_space<vmem>>, vector<1x16x16xf32>
    %51 = vector.shape_cast %50 : vector<1x16x16xf32> to vector<16x16xf32>
    %52 = vector.shape_cast %49 : vector<16x16xf32> to vector<1x16x16xf32>
    tpu.vector_store %arg12[%c3_60, %c1_61, %c19_62], %52 {strides = array<i32>} : memref<4x18x36xf32, #tpu.memory_space<vmem>>, vector<1x16x16xf32>,
    %cst_63 = arith.constant 0.000000e+00 : f32
    %53 = vector.broadcast %cst_63 : f32 to vector<16x34xf32>
    %cst_64 = arith.constant 0.000000e+00 : f32
    %54 = vector.broadcast %cst_64 : f32 to vector<16x34xf32>
    %c0_65 = arith.constant 0 : index
    %c0_66 = arith.constant 0 : index
    %c0_67 = arith.constant 0 : index
    %55 = vector.load %arg12[%c0_65, %c0_66, %c0_67] : memref<4x18x36xf32, #tpu.memory_space<vmem>>, vector<1x16x36xf32>
    %56 = vector.shape_cast %55 : vector<1x16x36xf32> to vector<16x36xf32>
    %57 = vector.extract_strided_slice %56 {offsets = [0, 0], sizes = [16, 34], strides = [1, 1]} : vector<16x36xf32> to vector<16x34xf32>
    %58 = vector.extract_strided_slice %56 {offsets = [0, 1], sizes = [16, 34], strides = [1, 1]} : vector<16x36xf32> to vector<16x34xf32>
    %59 = vector.extract_strided_slice %56 {offsets = [0, 2], sizes = [16, 34], strides = [1, 1]} : vector<16x36xf32> to vector<16x34xf32>
    %c0_68 = arith.constant 0 : index
    %60 = memref.load %arg5[%c0_68] : memref<72xf32, #tpu.memory_space<smem>>
    %61 = vector.broadcast %60 : f32 to vector<16x34xf32>
    %62 = arith.mulf %61, %57 : vector<16x34xf32>
    %63 = arith.addf %53, %62 : vector<16x34xf32>
    %c36 = arith.constant 36 : index
    %64 = memref.load %arg5[%c36] : memref<72xf32, #tpu.memory_space<smem>>
    %65 = vector.broadcast %64 : f32 to vector<16x34xf32>
    %66 = arith.mulf %65, %57 : vector<16x34xf32>
    %67 = arith.addf %54, %66 : vector<16x34xf32>
    %c1_69 = arith.constant 1 : index
    %68 = memref.load %arg5[%c1_69] : memref<72xf32, #tpu.memory_space<smem>>
    %69 = vector.broadcast %68 : f32 to vector<16x34xf32>
    %70 = arith.mulf %69, %58 : vector<16x34xf32>
    %71 = arith.addf %63, %70 : vector<16x34xf32>
    %c37 = arith.constant 37 : index
    %72 = memref.load %arg5[%c37] : memref<72xf32, #tpu.memory_space<smem>>
    %73 = vector.broadcast %72 : f32 to vector<16x34xf32>
    %74 = arith.mulf %73, %58 : vector<16x34xf32>
    %75 = arith.addf %67, %74 : vector<16x34xf32>
    %c2_70 = arith.constant 2 : index
    %76 = memref.load %arg5[%c2_70] : memref<72xf32, #tpu.memory_space<smem>>
    %77 = vector.broadcast %76 : f32 to vector<16x34xf32>
    %78 = arith.mulf %77, %59 : vector<16x34xf32>
    %79 = arith.addf %71, %78 : vector<16x34xf32>
    %c38 = arith.constant 38 : index
    %80 = memref.load %arg5[%c38] : memref<72xf32, #tpu.memory_space<smem>>
    %81 = vector.broadcast %80 : f32 to vector<16x34xf32>
    %82 = arith.mulf %81, %59 : vector<16x34xf32>
    %83 = arith.addf %75, %82 : vector<16x34xf32>
    %c0_71 = arith.constant 0 : index
    %c1_72 = arith.constant 1 : index
    %c0_73 = arith.constant 0 : index
    %84 = vector.load %arg12[%c0_71, %c1_72, %c0_73] : memref<4x18x36xf32, #tpu.memory_space<vmem>>, vector<1x16x36xf32>
    %85 = vector.shape_cast %84 : vector<1x16x36xf32> to vector<16x36xf32>
    %86 = vector.extract_strided_slice %85 {offsets = [0, 0], sizes = [16, 34], strides = [1, 1]} : vector<16x36xf32> to vector<16x34xf32>
    %87 = vector.extract_strided_slice %85 {offsets = [0, 1], sizes = [16, 34], strides = [1, 1]} : vector<16x36xf32> to vector<16x34xf32>
    %88 = vector.extract_strided_slice %85 {offsets = [0, 2], sizes = [16, 34], strides = [1, 1]} : vector<16x36xf32> to vector<16x34xf32>
    %c3_74 = arith.constant 3 : index
    %89 = memref.load %arg5[%c3_74] : memref<72xf32, #tpu.memory_space<smem>>
    %90 = vector.broadcast %89 : f32 to vector<16x34xf32>
    %91 = arith.mulf %90, %86 : vector<16x34xf32>
    %92 = arith.addf %79, %91 : vector<16x34xf32>
    %c39 = arith.constant 39 : index
    %93 = memref.load %arg5[%c39] : memref<72xf32, #tpu.memory_space<smem>>
    %94 = vector.broadcast %93 : f32 to vector<16x34xf32>
    %95 = arith.mulf %94, %86 : vector<16x34xf32>
    %96 = arith.addf %83, %95 : vector<16x34xf32>
    %c4 = arith.constant 4 : index
    %97 = memref.load %arg5[%c4] : memref<72xf32, #tpu.memory_space<smem>>
    %98 = vector.broadcast %97 : f32 to vector<16x34xf32>
    %99 = arith.mulf %98, %87 : vector<16x34xf32>
    %100 = arith.addf %92, %99 : vector<16x34xf32>
    %c40 = arith.constant 40 : index
    %101 = memref.load %arg5[%c40] : memref<72xf32, #tpu.memory_space<smem>>
    %102 = vector.broadcast %101 : f32 to vector<16x34xf32>
    %103 = arith.mulf %102, %87 : vector<16x34xf32>
    %104 = arith.addf %96, %103 : vector<16x34xf32>
    %c5 = arith.constant 5 : index
    %105 = memref.load %arg5[%c5] : memref<72xf32, #tpu.memory_space<smem>>
    %106 = vector.broadcast %105 : f32 to vector<16x34xf32>
    %107 = arith.mulf %106, %88 : vector<16x34xf32>
    %108 = arith.addf %100, %107 : vector<16x34xf32>
    %c41 = arith.constant 41 : index
    %109 = memref.load %arg5[%c41] : memref<72xf32, #tpu.memory_space<smem>>
    %110 = vector.broadcast %109 : f32 to vector<16x34xf32>
    %111 = arith.mulf %110, %88 : vector<16x34xf32>
    %112 = arith.addf %104, %111 : vector<16x34xf32>
    %c0_75 = arith.constant 0 : index
    %c2_76 = arith.constant 2 : index
    %c0_77 = arith.constant 0 : index
    %113 = vector.load %arg12[%c0_75, %c2_76, %c0_77] : memref<4x18x36xf32, #tpu.memory_space<vmem>>, vector<1x16x36xf32>
    %114 = vector.shape_cast %113 : vector<1x16x36xf32> to vector<16x36xf32>
    %115 = vector.extract_strided_slice %114 {offsets = [0, 0], sizes = [16, 34], strides = [1, 1]} : vector<16x36xf32> to vector<16x34xf32>
    %116 = vector.extract_strided_slice %114 {offsets = [0, 1], sizes = [16, 34], strides = [1, 1]} : vector<16x36xf32> to vector<16x34xf32>
    %117 = vector.extract_strided_slice %114 {offsets = [0, 2], sizes = [16, 34], strides = [1, 1]} : vector<16x36xf32> to vector<16x34xf32>
    %c6 = arith.constant 6 : index
    %118 = memref.load %arg5[%c6] : memref<72xf32, #tpu.memory_space<smem>>
    %119 = vector.broadcast %118 : f32 to vector<16x34xf32>
    %120 = arith.mulf %119, %115 : vector<16x34xf32>
    %121 = arith.addf %108, %120 : vector<16x34xf32>
    %c42 = arith.constant 42 : index
    %122 = memref.load %arg5[%c42] : memref<72xf32, #tpu.memory_space<smem>>
    %123 = vector.broadcast %122 : f32 to vector<16x34xf32>
    %124 = arith.mulf %123, %115 : vector<16x34xf32>
    %125 = arith.addf %112, %124 : vector<16x34xf32>
    %c7 = arith.constant 7 : index
    %126 = memref.load %arg5[%c7] : memref<72xf32, #tpu.memory_space<smem>>
    %127 = vector.broadcast %126 : f32 to vector<16x34xf32>
    %128 = arith.mulf %127, %116 : vector<16x34xf32>
    %129 = arith.addf %121, %128 : vector<16x34xf32>
    %c43 = arith.constant 43 : index
    %130 = memref.load %arg5[%c43] : memref<72xf32, #tpu.memory_space<smem>>
    %131 = vector.broadcast %130 : f32 to vector<16x34xf32>
    %132 = arith.mulf %131, %116 : vector<16x34xf32>
    %133 = arith.addf %125, %132 : vector<16x34xf32>
    %c8 = arith.constant 8 : index
    %134 = memref.load %arg5[%c8] : memref<72xf32, #tpu.memory_space<smem>>
    %135 = vector.broadcast %134 : f32 to vector<16x34xf32>
    %136 = arith.mulf %135, %117 : vector<16x34xf32>
    %137 = arith.addf %129, %136 : vector<16x34xf32>
    %c44 = arith.constant 44 : index
    %138 = memref.load %arg5[%c44] : memref<72xf32, #tpu.memory_space<smem>>
    %139 = vector.broadcast %138 : f32 to vector<16x34xf32>
    %140 = arith.mulf %139, %117 : vector<16x34xf32>
    %141 = arith.addf %133, %140 : vector<16x34xf32>
    %c1_78 = arith.constant 1 : index
    %c0_79 = arith.constant 0 : index
    %c0_80 = arith.constant 0 : index
    %142 = vector.load %arg12[%c1_78, %c0_79, %c0_80] : memref<4x18x36xf32, #tpu.memory_space<vmem>>, vector<1x16x36xf32>
    %143 = vector.shape_cast %142 : vector<1x16x36xf32> to vector<16x36xf32>
    %144 = vector.extract_strided_slice %143 {offsets = [0, 0], sizes = [16, 34], strides = [1, 1]} : vector<16x36xf32> to vector<16x34xf32>
    %145 = vector.extract_strided_slice %143 {offsets = [0, 1], sizes = [16, 34], strides = [1, 1]} : vector<16x36xf32> to vector<16x34xf32>
    %146 = vector.extract_strided_slice %143 {offsets = [0, 2], sizes = [16, 34], strides = [1, 1]} : vector<16x36xf32> to vector<16x34xf32>
    %c9 = arith.constant 9 : index
    %147 = memref.load %arg5[%c9] : memref<72xf32, #tpu.memory_space<smem>>
    %148 = vector.broadcast %147 : f32 to vector<16x34xf32>
    %149 = arith.mulf %148, %144 : vector<16x34xf32>
    %150 = arith.addf %137, %149 : vector<16x34xf32>
    %c45 = arith.constant 45 : index
    %151 = memref.load %arg5[%c45] : memref<72xf32, #tpu.memory_space<smem>>
    %152 = vector.broadcast %151 : f32 to vector<16x34xf32>
    %153 = arith.mulf %152, %144 : vector<16x34xf32>
    %154 = arith.addf %141, %153 : vector<16x34xf32>
    %c10 = arith.constant 10 : index
    %155 = memref.load %arg5[%c10] : memref<72xf32, #tpu.memory_space<smem>>
    %156 = vector.broadcast %155 : f32 to vector<16x34xf32>
    %157 = arith.mulf %156, %145 : vector<16x34xf32>
    %158 = arith.addf %150, %157 : vector<16x34xf32>
    %c46 = arith.constant 46 : index
    %159 = memref.load %arg5[%c46] : memref<72xf32, #tpu.memory_space<smem>>
    %160 = vector.broadcast %159 : f32 to vector<16x34xf32>
    %161 = arith.mulf %160, %145 : vector<16x34xf32>
    %162 = arith.addf %154, %161 : vector<16x34xf32>
    %c11 = arith.constant 11 : index
    %163 = memref.load %arg5[%c11] : memref<72xf32, #tpu.memory_space<smem>>
    %164 = vector.broadcast %163 : f32 to vector<16x34xf32>
    %165 = arith.mulf %164, %146 : vector<16x34xf32>
    %166 = arith.addf %158, %165 : vector<16x34xf32>
    %c47 = arith.constant 47 : index
    %167 = memref.load %arg5[%c47] : memref<72xf32, #tpu.memory_space<smem>>
    %168 = vector.broadcast %167 : f32 to vector<16x34xf32>
    %169 = arith.mulf %168, %146 : vector<16x34xf32>
    %170 = arith.addf %162, %169 : vector<16x34xf32>
    %c1_81 = arith.constant 1 : index
    %c1_82 = arith.constant 1 : index
    %c0_83 = arith.constant 0 : index
    %171 = vector.load %arg12[%c1_81, %c1_82, %c0_83] : memref<4x18x36xf32, #tpu.memory_space<vmem>>, vector<1x16x36xf32>
    %172 = vector.shape_cast %171 : vector<1x16x36xf32> to vector<16x36xf32>
    %173 = vector.extract_strided_slice %172 {offsets = [0, 0], sizes = [16, 34], strides = [1, 1]} : vector<16x36xf32> to vector<16x34xf32>
    %174 = vector.extract_strided_slice %172 {offsets = [0, 1], sizes = [16, 34], strides = [1, 1]} : vector<16x36xf32> to vector<16x34xf32>
    %175 = vector.extract_strided_slice %172 {offsets = [0, 2], sizes = [16, 34], strides = [1, 1]} : vector<16x36xf32> to vector<16x34xf32>
    %c12 = arith.constant 12 : index
    %176 = memref.load %arg5[%c12] : memref<72xf32, #tpu.memory_space<smem>>
    %177 = vector.broadcast %176 : f32 to vector<16x34xf32>
    %178 = arith.mulf %177, %173 : vector<16x34xf32>
    %179 = arith.addf %166, %178 : vector<16x34xf32>
    %c48 = arith.constant 48 : index
    %180 = memref.load %arg5[%c48] : memref<72xf32, #tpu.memory_space<smem>>
    %181 = vector.broadcast %180 : f32 to vector<16x34xf32>
    %182 = arith.mulf %181, %173 : vector<16x34xf32>
    %183 = arith.addf %170, %182 : vector<16x34xf32>
    %c13 = arith.constant 13 : index
    %184 = memref.load %arg5[%c13] : memref<72xf32, #tpu.memory_space<smem>>
    %185 = vector.broadcast %184 : f32 to vector<16x34xf32>
    %186 = arith.mulf %185, %174 : vector<16x34xf32>
    %187 = arith.addf %179, %186 : vector<16x34xf32>
    %c49 = arith.constant 49 : index
    %188 = memref.load %arg5[%c49] : memref<72xf32, #tpu.memory_space<smem>>
    %189 = vector.broadcast %188 : f32 to vector<16x34xf32>
    %190 = arith.mulf %189, %174 : vector<16x34xf32>
    %191 = arith.addf %183, %190 : vector<16x34xf32>
    %c14 = arith.constant 14 : index
    %192 = memref.load %arg5[%c14] : memref<72xf32, #tpu.memory_space<smem>>
    %193 = vector.broadcast %192 : f32 to vector<16x34xf32>
    %194 = arith.mulf %193, %175 : vector<16x34xf32>
    %195 = arith.addf %187, %194 : vector<16x34xf32>
    %c50 = arith.constant 50 : index
    %196 = memref.load %arg5[%c50] : memref<72xf32, #tpu.memory_space<smem>>
    %197 = vector.broadcast %196 : f32 to vector<16x34xf32>
    %198 = arith.mulf %197, %175 : vector<16x34xf32>
    %199 = arith.addf %191, %198 : vector<16x34xf32>
    %c1_84 = arith.constant 1 : index
    %c2_85 = arith.constant 2 : index
    %c0_86 = arith.constant 0 : index
    %200 = vector.load %arg12[%c1_84, %c2_85, %c0_86] : memref<4x18x36xf32, #tpu.memory_space<vmem>>, vector<1x16x36xf32>
    %201 = vector.shape_cast %200 : vector<1x16x36xf32> to vector<16x36xf32>
    %202 = vector.extract_strided_slice %201 {offsets = [0, 0], sizes = [16, 34], strides = [1, 1]} : vector<16x36xf32> to vector<16x34xf32>
    %203 = vector.extract_strided_slice %201 {offsets = [0, 1], sizes = [16, 34], strides = [1, 1]} : vector<16x36xf32> to vector<16x34xf32>
    %204 = vector.extract_strided_slice %201 {offsets = [0, 2], sizes = [16, 34], strides = [1, 1]} : vector<16x36xf32> to vector<16x34xf32>
    %c15 = arith.constant 15 : index
    %205 = memref.load %arg5[%c15] : memref<72xf32, #tpu.memory_space<smem>>
    %206 = vector.broadcast %205 : f32 to vector<16x34xf32>
    %207 = arith.mulf %206, %202 : vector<16x34xf32>
    %208 = arith.addf %195, %207 : vector<16x34xf32>
    %c51 = arith.constant 51 : index
    %209 = memref.load %arg5[%c51] : memref<72xf32, #tpu.memory_space<smem>>
    %210 = vector.broadcast %209 : f32 to vector<16x34xf32>
    %211 = arith.mulf %210, %202 : vector<16x34xf32>
    %212 = arith.addf %199, %211 : vector<16x34xf32>
    %c16 = arith.constant 16 : index
    %213 = memref.load %arg5[%c16] : memref<72xf32, #tpu.memory_space<smem>>
    %214 = vector.broadcast %213 : f32 to vector<16x34xf32>
    %215 = arith.mulf %214, %203 : vector<16x34xf32>
    %216 = arith.addf %208, %215 : vector<16x34xf32>
    %c52 = arith.constant 52 : index
    %217 = memref.load %arg5[%c52] : memref<72xf32, #tpu.memory_space<smem>>
    %218 = vector.broadcast %217 : f32 to vector<16x34xf32>
    %219 = arith.mulf %218, %203 : vector<16x34xf32>
    %220 = arith.addf %212, %219 : vector<16x34xf32>
    %c17 = arith.constant 17 : index
    %221 = memref.load %arg5[%c17] : memref<72xf32, #tpu.memory_space<smem>>
    %222 = vector.broadcast %221 : f32 to vector<16x34xf32>
    %223 = arith.mulf %222, %204 : vector<16x34xf32>
    %224 = arith.addf %216, %223 : vector<16x34xf32>
    %c53 = arith.constant 53 : index
    %225 = memref.load %arg5[%c53] : memref<72xf32, #tpu.memory_space<smem>>
    %226 = vector.broadcast %225 : f32 to vector<16x34xf32>
    %227 = arith.mulf %226, %204 : vector<16x34xf32>
    %228 = arith.addf %220, %227 : vector<16x34xf32>
    %c2_87 = arith.constant 2 : index
    %c0_88 = arith.constant 0 : index
    %c0_89 = arith.constant 0 : index
    %229 = vector.load %arg12[%c2_87, %c0_88, %c0_89] : memref<4x18x36xf32, #tpu.memory_space<vmem>>, vector<1x16x36xf32>
    %230 = vector.shape_cast %229 : vector<1x16x36xf32> to vector<16x36xf32>
    %231 = vector.extract_strided_slice %230 {offsets = [0, 0], sizes = [16, 34], strides = [1, 1]} : vector<16x36xf32> to vector<16x34xf32>
    %232 = vector.extract_strided_slice %230 {offsets = [0, 1], sizes = [16, 34], strides = [1, 1]} : vector<16x36xf32> to vector<16x34xf32>
    %233 = vector.extract_strided_slice %230 {offsets = [0, 2], sizes = [16, 34], strides = [1, 1]} : vector<16x36xf32> to vector<16x34xf32>
    %c18 = arith.constant 18 : index
    %234 = memref.load %arg5[%c18] : memref<72xf32, #tpu.memory_space<smem>>
    %235 = vector.broadcast %234 : f32 to vector<16x34xf32>
    %236 = arith.mulf %235, %231 : vector<16x34xf32>
    %237 = arith.addf %224, %236 : vector<16x34xf32>
    %c54 = arith.constant 54 : index
    %238 = memref.load %arg5[%c54] : memref<72xf32, #tpu.memory_space<smem>>
    %239 = vector.broadcast %238 : f32 to vector<16x34xf32>
    %240 = arith.mulf %239, %231 : vector<16x34xf32>
    %241 = arith.addf %228, %240 : vector<16x34xf32>
    %c19_90 = arith.constant 19 : index
    %242 = memref.load %arg5[%c19_90] : memref<72xf32, #tpu.memory_space<smem>>
    %243 = vector.broadcast %242 : f32 to vector<16x34xf32>
    %244 = arith.mulf %243, %232 : vector<16x34xf32>
    %245 = arith.addf %237, %244 : vector<16x34xf32>
    %c55 = arith.constant 55 : index
    %246 = memref.load %arg5[%c55] : memref<72xf32, #tpu.memory_space<smem>>
    %247 = vector.broadcast %246 : f32 to vector<16x34xf32>
    %248 = arith.mulf %247, %232 : vector<16x34xf32>
    %249 = arith.addf %241, %248 : vector<16x34xf32>
    %c20 = arith.constant 20 : index
    %250 = memref.load %arg5[%c20] : memref<72xf32, #tpu.memory_space<smem>>
    %251 = vector.broadcast %250 : f32 to vector<16x34xf32>
    %252 = arith.mulf %251, %233 : vector<16x34xf32>
    %253 = arith.addf %245, %252 : vector<16x34xf32>
    %c56 = arith.constant 56 : index
    %254 = memref.load %arg5[%c56] : memref<72xf32, #tpu.memory_space<smem>>
    %255 = vector.broadcast %254 : f32 to vector<16x34xf32>
    %256 = arith.mulf %255, %233 : vector<16x34xf32>
    %257 = arith.addf %249, %256 : vector<16x34xf32>
    %c2_91 = arith.constant 2 : index
    %c1_92 = arith.constant 1 : index
    %c0_93 = arith.constant 0 : index
    %258 = vector.load %arg12[%c2_91, %c1_92, %c0_93] : memref<4x18x36xf32, #tpu.memory_space<vmem>>, vector<1x16x36xf32>
    %259 = vector.shape_cast %258 : vector<1x16x36xf32> to vector<16x36xf32>
    %260 = vector.extract_strided_slice %259 {offsets = [0, 0], sizes = [16, 34], strides = [1, 1]} : vector<16x36xf32> to vector<16x34xf32>
    %261 = vector.extract_strided_slice %259 {offsets = [0, 1], sizes = [16, 34], strides = [1, 1]} : vector<16x36xf32> to vector<16x34xf32>
    %262 = vector.extract_strided_slice %259 {offsets = [0, 2], sizes = [16, 34], strides = [1, 1]} : vector<16x36xf32> to vector<16x34xf32>
    %c21 = arith.constant 21 : index
    %263 = memref.load %arg5[%c21] : memref<72xf32, #tpu.memory_space<smem>>
    %264 = vector.broadcast %263 : f32 to vector<16x34xf32>
    %265 = arith.mulf %264, %260 : vector<16x34xf32>
    %266 = arith.addf %253, %265 : vector<16x34xf32>
    %c57 = arith.constant 57 : index
    %267 = memref.load %arg5[%c57] : memref<72xf32, #tpu.memory_space<smem>>
    %268 = vector.broadcast %267 : f32 to vector<16x34xf32>
    %269 = arith.mulf %268, %260 : vector<16x34xf32>
    %270 = arith.addf %257, %269 : vector<16x34xf32>
    %c22 = arith.constant 22 : index
    %271 = memref.load %arg5[%c22] : memref<72xf32, #tpu.memory_space<smem>>
    %272 = vector.broadcast %271 : f32 to vector<16x34xf32>
    %273 = arith.mulf %272, %261 : vector<16x34xf32>
    %274 = arith.addf %266, %273 : vector<16x34xf32>
    %c58 = arith.constant 58 : index
    %275 = memref.load %arg5[%c58] : memref<72xf32, #tpu.memory_space<smem>>
    %276 = vector.broadcast %275 : f32 to vector<16x34xf32>
    %277 = arith.mulf %276, %261 : vector<16x34xf32>
    %278 = arith.addf %270, %277 : vector<16x34xf32>
    %c23 = arith.constant 23 : index
    %279 = memref.load %arg5[%c23] : memref<72xf32, #tpu.memory_space<smem>>
    %280 = vector.broadcast %279 : f32 to vector<16x34xf32>
    %281 = arith.mulf %280, %262 : vector<16x34xf32>
    %282 = arith.addf %274, %281 : vector<16x34xf32>
    %c59 = arith.constant 59 : index
    %283 = memref.load %arg5[%c59] : memref<72xf32, #tpu.memory_space<smem>>
    %284 = vector.broadcast %283 : f32 to vector<16x34xf32>
    %285 = arith.mulf %284, %262 : vector<16x34xf32>
    %286 = arith.addf %278, %285 : vector<16x34xf32>
    %c2_94 = arith.constant 2 : index
    %c2_95 = arith.constant 2 : index
    %c0_96 = arith.constant 0 : index
    %287 = vector.load %arg12[%c2_94, %c2_95, %c0_96] : memref<4x18x36xf32, #tpu.memory_space<vmem>>, vector<1x16x36xf32>
    %288 = vector.shape_cast %287 : vector<1x16x36xf32> to vector<16x36xf32>
    %289 = vector.extract_strided_slice %288 {offsets = [0, 0], sizes = [16, 34], strides = [1, 1]} : vector<16x36xf32> to vector<16x34xf32>
    %290 = vector.extract_strided_slice %288 {offsets = [0, 1], sizes = [16, 34], strides = [1, 1]} : vector<16x36xf32> to vector<16x34xf32>
    %291 = vector.extract_strided_slice %288 {offsets = [0, 2], sizes = [16, 34], strides = [1, 1]} : vector<16x36xf32> to vector<16x34xf32>
    %c24 = arith.constant 24 : index
    %292 = memref.load %arg5[%c24] : memref<72xf32, #tpu.memory_space<smem>>
    %293 = vector.broadcast %292 : f32 to vector<16x34xf32>
    %294 = arith.mulf %293, %289 : vector<16x34xf32>
    %295 = arith.addf %282, %294 : vector<16x34xf32>
    %c60 = arith.constant 60 : index
    %296 = memref.load %arg5[%c60] : memref<72xf32, #tpu.memory_space<smem>>
    %297 = vector.broadcast %296 : f32 to vector<16x34xf32>
    %298 = arith.mulf %297, %289 : vector<16x34xf32>
    %299 = arith.addf %286, %298 : vector<16x34xf32>
    %c25 = arith.constant 25 : index
    %300 = memref.load %arg5[%c25] : memref<72xf32, #tpu.memory_space<smem>>
    %301 = vector.broadcast %300 : f32 to vector<16x34xf32>
    %302 = arith.mulf %301, %290 : vector<16x34xf32>
    %303 = arith.addf %295, %302 : vector<16x34xf32>
    %c61 = arith.constant 61 : index
    %304 = memref.load %arg5[%c61] : memref<72xf32, #tpu.memory_space<smem>>
    %305 = vector.broadcast %304 : f32 to vector<16x34xf32>
    %306 = arith.mulf %305, %290 : vector<16x34xf32>
    %307 = arith.addf %299, %306 : vector<16x34xf32>
    %c26 = arith.constant 26 : index
    %308 = memref.load %arg5[%c26] : memref<72xf32, #tpu.memory_space<smem>>
    %309 = vector.broadcast %308 : f32 to vector<16x34xf32>
    %310 = arith.mulf %309, %291 : vector<16x34xf32>
    %311 = arith.addf %303, %310 : vector<16x34xf32>
    %c62 = arith.constant 62 : index
    %312 = memref.load %arg5[%c62] : memref<72xf32, #tpu.memory_space<smem>>
    %313 = vector.broadcast %312 : f32 to vector<16x34xf32>
    %314 = arith.mulf %313, %291 : vector<16x34xf32>
    %315 = arith.addf %307, %314 : vector<16x34xf32>
    %c3_97 = arith.constant 3 : index
    %c0_98 = arith.constant 0 : index
    %c0_99 = arith.constant 0 : index
    %316 = vector.load %arg12[%c3_97, %c0_98, %c0_99] : memref<4x18x36xf32, #tpu.memory_space<vmem>>, vector<1x16x36xf32>
    %317 = vector.shape_cast %316 : vector<1x16x36xf32> to vector<16x36xf32>
    %318 = vector.extract_strided_slice %317 {offsets = [0, 0], sizes = [16, 34], strides = [1, 1]} : vector<16x36xf32> to vector<16x34xf32>
    %319 = vector.extract_strided_slice %317 {offsets = [0, 1], sizes = [16, 34], strides = [1, 1]} : vector<16x36xf32> to vector<16x34xf32>
    %320 = vector.extract_strided_slice %317 {offsets = [0, 2], sizes = [16, 34], strides = [1, 1]} : vector<16x36xf32> to vector<16x34xf32>
    %c27 = arith.constant 27 : index
    %321 = memref.load %arg5[%c27] : memref<72xf32, #tpu.memory_space<smem>>
    %322 = vector.broadcast %321 : f32 to vector<16x34xf32>
    %323 = arith.mulf %322, %318 : vector<16x34xf32>
    %324 = arith.addf %311, %323 : vector<16x34xf32>
    %c63 = arith.constant 63 : index
    %325 = memref.load %arg5[%c63] : memref<72xf32, #tpu.memory_space<smem>>
    %326 = vector.broadcast %325 : f32 to vector<16x34xf32>
    %327 = arith.mulf %326, %318 : vector<16x34xf32>
    %328 = arith.addf %315, %327 : vector<16x34xf32>
    %c28 = arith.constant 28 : index
    %329 = memref.load %arg5[%c28] : memref<72xf32, #tpu.memory_space<smem>>
    %330 = vector.broadcast %329 : f32 to vector<16x34xf32>
    %331 = arith.mulf %330, %319 : vector<16x34xf32>
    %332 = arith.addf %324, %331 : vector<16x34xf32>
    %c64 = arith.constant 64 : index
    %333 = memref.load %arg5[%c64] : memref<72xf32, #tpu.memory_space<smem>>
    %334 = vector.broadcast %333 : f32 to vector<16x34xf32>
    %335 = arith.mulf %334, %319 : vector<16x34xf32>
    %336 = arith.addf %328, %335 : vector<16x34xf32>
    %c29 = arith.constant 29 : index
    %337 = memref.load %arg5[%c29] : memref<72xf32, #tpu.memory_space<smem>>
    %338 = vector.broadcast %337 : f32 to vector<16x34xf32>
    %339 = arith.mulf %338, %320 : vector<16x34xf32>
    %340 = arith.addf %332, %339 : vector<16x34xf32>
    %c65 = arith.constant 65 : index
    %341 = memref.load %arg5[%c65] : memref<72xf32, #tpu.memory_space<smem>>
    %342 = vector.broadcast %341 : f32 to vector<16x34xf32>
    %343 = arith.mulf %342, %320 : vector<16x34xf32>
    %344 = arith.addf %336, %343 : vector<16x34xf32>
    %c3_100 = arith.constant 3 : index
    %c1_101 = arith.constant 1 : index
    %c0_102 = arith.constant 0 : index
    %345 = vector.load %arg12[%c3_100, %c1_101, %c0_102] : memref<4x18x36xf32, #tpu.memory_space<vmem>>, vector<1x16x36xf32>
    %346 = vector.shape_cast %345 : vector<1x16x36xf32> to vector<16x36xf32>
    %347 = vector.extract_strided_slice %346 {offsets = [0, 0], sizes = [16, 34], strides = [1, 1]} : vector<16x36xf32> to vector<16x34xf32>
    %348 = vector.extract_strided_slice %346 {offsets = [0, 1], sizes = [16, 34], strides = [1, 1]} : vector<16x36xf32> to vector<16x34xf32>
    %349 = vector.extract_strided_slice %346 {offsets = [0, 2], sizes = [16, 34], strides = [1, 1]} : vector<16x36xf32> to vector<16x34xf32>
    %c30 = arith.constant 30 : index
    %350 = memref.load %arg5[%c30] : memref<72xf32, #tpu.memory_space<smem>>
    %351 = vector.broadcast %350 : f32 to vector<16x34xf32>
    %352 = arith.mulf %351, %347 : vector<16x34xf32>
    %353 = arith.addf %340, %352 : vector<16x34xf32>
    %c66 = arith.constant 66 : index
    %354 = memref.load %arg5[%c66] : memref<72xf32, #tpu.memory_space<smem>>
    %355 = vector.broadcast %354 : f32 to vector<16x34xf32>
    %356 = arith.mulf %355, %347 : vector<16x34xf32>
    %357 = arith.addf %344, %356 : vector<16x34xf32>
    %c31 = arith.constant 31 : index
    %358 = memref.load %arg5[%c31] : memref<72xf32, #tpu.memory_space<smem>>
    %359 = vector.broadcast %358 : f32 to vector<16x34xf32>
    %360 = arith.mulf %359, %348 : vector<16x34xf32>
    %361 = arith.addf %353, %360 : vector<16x34xf32>
    %c67 = arith.constant 67 : index
    %362 = memref.load %arg5[%c67] : memref<72xf32, #tpu.memory_space<smem>>
    %363 = vector.broadcast %362 : f32 to vector<16x34xf32>
    %364 = arith.mulf %363, %348 : vector<16x34xf32>
    %365 = arith.addf %357, %364 : vector<16x34xf32>
    %c32 = arith.constant 32 : index
    %366 = memref.load %arg5[%c32] : memref<72xf32, #tpu.memory_space<smem>>
    %367 = vector.broadcast %366 : f32 to vector<16x34xf32>
    %368 = arith.mulf %367, %349 : vector<16x34xf32>
    %369 = arith.addf %361, %368 : vector<16x34xf32>
    %c68 = arith.constant 68 : index
    %370 = memref.load %arg5[%c68] : memref<72xf32, #tpu.memory_space<smem>>
    %371 = vector.broadcast %370 : f32 to vector<16x34xf32>
    %372 = arith.mulf %371, %349 : vector<16x34xf32>
    %373 = arith.addf %365, %372 : vector<16x34xf32>
    %c3_103 = arith.constant 3 : index
    %c2_104 = arith.constant 2 : index
    %c0_105 = arith.constant 0 : index
    %374 = vector.load %arg12[%c3_103, %c2_104, %c0_105] : memref<4x18x36xf32, #tpu.memory_space<vmem>>, vector<1x16x36xf32>
    %375 = vector.shape_cast %374 : vector<1x16x36xf32> to vector<16x36xf32>
    %376 = vector.extract_strided_slice %375 {offsets = [0, 0], sizes = [16, 34], strides = [1, 1]} : vector<16x36xf32> to vector<16x34xf32>
    %377 = vector.extract_strided_slice %375 {offsets = [0, 1], sizes = [16, 34], strides = [1, 1]} : vector<16x36xf32> to vector<16x34xf32>
    %378 = vector.extract_strided_slice %375 {offsets = [0, 2], sizes = [16, 34], strides = [1, 1]} : vector<16x36xf32> to vector<16x34xf32>
    %c33 = arith.constant 33 : index
    %379 = memref.load %arg5[%c33] : memref<72xf32, #tpu.memory_space<smem>>
    %380 = vector.broadcast %379 : f32 to vector<16x34xf32>
    %381 = arith.mulf %380, %376 : vector<16x34xf32>
    %382 = arith.addf %369, %381 : vector<16x34xf32>
    %c69 = arith.constant 69 : index
    %383 = memref.load %arg5[%c69] : memref<72xf32, #tpu.memory_space<smem>>
    %384 = vector.broadcast %383 : f32 to vector<16x34xf32>
    %385 = arith.mulf %384, %376 : vector<16x34xf32>
    %386 = arith.addf %373, %385 : vector<16x34xf32>
    %c34 = arith.constant 34 : index
    %387 = memref.load %arg5[%c34] : memref<72xf32, #tpu.memory_space<smem>>
    %388 = vector.broadcast %387 : f32 to vector<16x34xf32>
    %389 = arith.mulf %388, %377 : vector<16x34xf32>
    %390 = arith.addf %382, %389 : vector<16x34xf32>
    %c70 = arith.constant 70 : index
    %391 = memref.load %arg5[%c70] : memref<72xf32, #tpu.memory_space<smem>>
    %392 = vector.broadcast %391 : f32 to vector<16x34xf32>
    %393 = arith.mulf %392, %377 : vector<16x34xf32>
    %394 = arith.addf %386, %393 : vector<16x34xf32>
    %c35 = arith.constant 35 : index
    %395 = memref.load %arg5[%c35] : memref<72xf32, #tpu.memory_space<smem>>
    %396 = vector.broadcast %395 : f32 to vector<16x34xf32>
    %397 = arith.mulf %396, %378 : vector<16x34xf32>
    %398 = arith.addf %390, %397 : vector<16x34xf32>
    %c71 = arith.constant 71 : index
    %399 = memref.load %arg5[%c71] : memref<72xf32, #tpu.memory_space<smem>>
    %400 = vector.broadcast %399 : f32 to vector<16x34xf32>
    %401 = arith.mulf %400, %378 : vector<16x34xf32>
    %402 = arith.addf %394, %401 : vector<16x34xf32>
    %c0_106 = arith.constant 0 : index
    %403 = memref.load %arg6[%c0_106] : memref<2xf32, #tpu.memory_space<smem>>
    %404 = vector.broadcast %403 : f32 to vector<16x34xf32>
    %405 = arith.mulf %398, %404 : vector<16x34xf32>
    %c0_107 = arith.constant 0 : index
    %406 = memref.load %arg7[%c0_107] : memref<2xf32, #tpu.memory_space<smem>>
    %407 = vector.broadcast %406 : f32 to vector<16x34xf32>
    %408 = arith.addf %405, %407 : vector<16x34xf32>
    %cst_108 = arith.constant 0.000000e+00 : f32
    %409 = vector.broadcast %cst_108 : f32 to vector<16x34xf32>
    %410 = arith.maximumf %408, %409 : vector<16x34xf32>
    %411 = vector.extract_strided_slice %410 {offsets = [0, 0], sizes = [16, 16], strides = [1, 1]} : vector<16x34xf32> to vector<16x16xf32>
    %c0_109 = arith.constant 0 : index
    %c1_110 = arith.constant 1 : index
    %c1_111 = arith.constant 1 : index
    %412 = vector.load %arg13[%c0_109, %c1_110, %c1_111] : memref<2x18x36xf32, #tpu.memory_space<vmem>>, vector<1x16x16xf32>
    %413 = vector.shape_cast %412 : vector<1x16x16xf32> to vector<16x16xf32>
    %414 = vector.shape_cast %411 : vector<16x16xf32> to vector<1x16x16xf32>
    tpu.vector_store %arg13[%c0_109, %c1_110, %c1_111], %414 {strides = array<i32>} : memref<2x18x36xf32, #tpu.memory_space<vmem>>, vector<1x16x16xf32>,
    %415 = vector.extract_strided_slice %410 {offsets = [0, 18], sizes = [16, 16], strides = [1, 1]} : vector<16x34xf32> to vector<16x16xf32>
    %c0_112 = arith.constant 0 : index
    %c1_113 = arith.constant 1 : index
    %c19_114 = arith.constant 19 : index
    %416 = vector.load %arg13[%c0_112, %c1_113, %c19_114] : memref<2x18x36xf32, #tpu.memory_space<vmem>>, vector<1x16x16xf32>
    %417 = vector.shape_cast %416 : vector<1x16x16xf32> to vector<16x16xf32>
    %418 = vector.shape_cast %415 : vector<16x16xf32> to vector<1x16x16xf32>
    tpu.vector_store %arg13[%c0_112, %c1_113, %c19_114], %418 {strides = array<i32>} : memref<2x18x36xf32, #tpu.memory_space<vmem>>, vector<1x16x16xf32>,
    %c1_115 = arith.constant 1 : index
    %419 = memref.load %arg6[%c1_115] : memref<2xf32, #tpu.memory_space<smem>>
    %420 = vector.broadcast %419 : f32 to vector<16x34xf32>
    %421 = arith.mulf %402, %420 : vector<16x34xf32>
    %c1_116 = arith.constant 1 : index
    %422 = memref.load %arg7[%c1_116] : memref<2xf32, #tpu.memory_space<smem>>
    %423 = vector.broadcast %422 : f32 to vector<16x34xf32>
    %424 = arith.addf %421, %423 : vector<16x34xf32>
    %cst_117 = arith.constant 0.000000e+00 : f32
    %425 = vector.broadcast %cst_117 : f32 to vector<16x34xf32>
    %426 = arith.maximumf %424, %425 : vector<16x34xf32>
    %427 = vector.extract_strided_slice %426 {offsets = [0, 0], sizes = [16, 16], strides = [1, 1]} : vector<16x34xf32> to vector<16x16xf32>
    %c1_118 = arith.constant 1 : index
    %c1_119 = arith.constant 1 : index
    %c1_120 = arith.constant 1 : index
    %428 = vector.load %arg13[%c1_118, %c1_119, %c1_120] : memref<2x18x36xf32, #tpu.memory_space<vmem>>, vector<1x16x16xf32>
    %429 = vector.shape_cast %428 : vector<1x16x16xf32> to vector<16x16xf32>
    %430 = vector.shape_cast %427 : vector<16x16xf32> to vector<1x16x16xf32>
    tpu.vector_store %arg13[%c1_118, %c1_119, %c1_120], %430 {strides = array<i32>} : memref<2x18x36xf32, #tpu.memory_space<vmem>>, vector<1x16x16xf32>,
    %431 = vector.extract_strided_slice %426 {offsets = [0, 18], sizes = [16, 16], strides = [1, 1]} : vector<16x34xf32> to vector<16x16xf32>
    %c1_121 = arith.constant 1 : index
    %c1_122 = arith.constant 1 : index
    %c19_123 = arith.constant 19 : index
    %432 = vector.load %arg13[%c1_121, %c1_122, %c19_123] : memref<2x18x36xf32, #tpu.memory_space<vmem>>, vector<1x16x16xf32>
    %433 = vector.shape_cast %432 : vector<1x16x16xf32> to vector<16x16xf32>
    %434 = vector.shape_cast %431 : vector<16x16xf32> to vector<1x16x16xf32>
    tpu.vector_store %arg13[%c1_121, %c1_122, %c19_123], %434 {strides = array<i32>} : memref<2x18x36xf32, #tpu.memory_space<vmem>>, vector<1x16x16xf32>,
    %cst_124 = arith.constant 0.000000e+00 : f32
    %435 = vector.broadcast %cst_124 : f32 to vector<16x34xf32>
    %cst_125 = arith.constant 0.000000e+00 : f32
    %436 = vector.broadcast %cst_125 : f32 to vector<16x34xf32>
    %cst_126 = arith.constant 0.000000e+00 : f32
    %437 = vector.broadcast %cst_126 : f32 to vector<16x34xf32>
    %cst_127 = arith.constant 0.000000e+00 : f32
    %438 = vector.broadcast %cst_127 : f32 to vector<16x34xf32>
    %c0_128 = arith.constant 0 : index
    %c0_129 = arith.constant 0 : index
    %c0_130 = arith.constant 0 : index
    %439 = vector.load %arg13[%c0_128, %c0_129, %c0_130] : memref<2x18x36xf32, #tpu.memory_space<vmem>>, vector<1x16x36xf32>
    %440 = vector.shape_cast %439 : vector<1x16x36xf32> to vector<16x36xf32>
    %441 = vector.extract_strided_slice %440 {offsets = [0, 0], sizes = [16, 34], strides = [1, 1]} : vector<16x36xf32> to vector<16x34xf32>
    %442 = vector.extract_strided_slice %440 {offsets = [0, 1], sizes = [16, 34], strides = [1, 1]} : vector<16x36xf32> to vector<16x34xf32>
    %443 = vector.extract_strided_slice %440 {offsets = [0, 2], sizes = [16, 34], strides = [1, 1]} : vector<16x36xf32> to vector<16x34xf32>
    %c0_131 = arith.constant 0 : index
    %444 = memref.load %arg8[%c0_131] : memref<72xf32, #tpu.memory_space<smem>>
    %445 = vector.broadcast %444 : f32 to vector<16x34xf32>
    %446 = arith.mulf %445, %441 : vector<16x34xf32>
    %447 = arith.addf %435, %446 : vector<16x34xf32>
    %c18_132 = arith.constant 18 : index
    %448 = memref.load %arg8[%c18_132] : memref<72xf32, #tpu.memory_space<smem>>
    %449 = vector.broadcast %448 : f32 to vector<16x34xf32>
    %450 = arith.mulf %449, %441 : vector<16x34xf32>
    %451 = arith.addf %436, %450 : vector<16x34xf32>
    %c36_133 = arith.constant 36 : index
    %452 = memref.load %arg8[%c36_133] : memref<72xf32, #tpu.memory_space<smem>>
    %453 = vector.broadcast %452 : f32 to vector<16x34xf32>
    %454 = arith.mulf %453, %441 : vector<16x34xf32>
    %455 = arith.addf %437, %454 : vector<16x34xf32>
    %c54_134 = arith.constant 54 : index
    %456 = memref.load %arg8[%c54_134] : memref<72xf32, #tpu.memory_space<smem>>
    %457 = vector.broadcast %456 : f32 to vector<16x34xf32>
    %458 = arith.mulf %457, %441 : vector<16x34xf32>
    %459 = arith.addf %438, %458 : vector<16x34xf32>
    %c1_135 = arith.constant 1 : index
    %460 = memref.load %arg8[%c1_135] : memref<72xf32, #tpu.memory_space<smem>>
    %461 = vector.broadcast %460 : f32 to vector<16x34xf32>
    %462 = arith.mulf %461, %442 : vector<16x34xf32>
    %463 = arith.addf %447, %462 : vector<16x34xf32>
    %c19_136 = arith.constant 19 : index
    %464 = memref.load %arg8[%c19_136] : memref<72xf32, #tpu.memory_space<smem>>
    %465 = vector.broadcast %464 : f32 to vector<16x34xf32>
    %466 = arith.mulf %465, %442 : vector<16x34xf32>
    %467 = arith.addf %451, %466 : vector<16x34xf32>
    %c37_137 = arith.constant 37 : index
    %468 = memref.load %arg8[%c37_137] : memref<72xf32, #tpu.memory_space<smem>>
    %469 = vector.broadcast %468 : f32 to vector<16x34xf32>
    %470 = arith.mulf %469, %442 : vector<16x34xf32>
    %471 = arith.addf %455, %470 : vector<16x34xf32>
    %c55_138 = arith.constant 55 : index
    %472 = memref.load %arg8[%c55_138] : memref<72xf32, #tpu.memory_space<smem>>
    %473 = vector.broadcast %472 : f32 to vector<16x34xf32>
    %474 = arith.mulf %473, %442 : vector<16x34xf32>
    %475 = arith.addf %459, %474 : vector<16x34xf32>
    %c2_139 = arith.constant 2 : index
    %476 = memref.load %arg8[%c2_139] : memref<72xf32, #tpu.memory_space<smem>>
    %477 = vector.broadcast %476 : f32 to vector<16x34xf32>
    %478 = arith.mulf %477, %443 : vector<16x34xf32>
    %479 = arith.addf %463, %478 : vector<16x34xf32>
    %c20_140 = arith.constant 20 : index
    %480 = memref.load %arg8[%c20_140] : memref<72xf32, #tpu.memory_space<smem>>
    %481 = vector.broadcast %480 : f32 to vector<16x34xf32>
    %482 = arith.mulf %481, %443 : vector<16x34xf32>
    %483 = arith.addf %467, %482 : vector<16x34xf32>
    %c38_141 = arith.constant 38 : index
    %484 = memref.load %arg8[%c38_141] : memref<72xf32, #tpu.memory_space<smem>>
    %485 = vector.broadcast %484 : f32 to vector<16x34xf32>
    %486 = arith.mulf %485, %443 : vector<16x34xf32>
    %487 = arith.addf %471, %486 : vector<16x34xf32>
    %c56_142 = arith.constant 56 : index
    %488 = memref.load %arg8[%c56_142] : memref<72xf32, #tpu.memory_space<smem>>
    %489 = vector.broadcast %488 : f32 to vector<16x34xf32>
    %490 = arith.mulf %489, %443 : vector<16x34xf32>
    %491 = arith.addf %475, %490 : vector<16x34xf32>
    %c0_143 = arith.constant 0 : index
    %c1_144 = arith.constant 1 : index
    %c0_145 = arith.constant 0 : index
    %492 = vector.load %arg13[%c0_143, %c1_144, %c0_145] : memref<2x18x36xf32, #tpu.memory_space<vmem>>, vector<1x16x36xf32>
    %493 = vector.shape_cast %492 : vector<1x16x36xf32> to vector<16x36xf32>
    %494 = vector.extract_strided_slice %493 {offsets = [0, 0], sizes = [16, 34], strides = [1, 1]} : vector<16x36xf32> to vector<16x34xf32>
    %495 = vector.extract_strided_slice %493 {offsets = [0, 1], sizes = [16, 34], strides = [1, 1]} : vector<16x36xf32> to vector<16x34xf32>
    %496 = vector.extract_strided_slice %493 {offsets = [0, 2], sizes = [16, 34], strides = [1, 1]} : vector<16x36xf32> to vector<16x34xf32>
    %c3_146 = arith.constant 3 : index
    %497 = memref.load %arg8[%c3_146] : memref<72xf32, #tpu.memory_space<smem>>
    %498 = vector.broadcast %497 : f32 to vector<16x34xf32>
    %499 = arith.mulf %498, %494 : vector<16x34xf32>
    %500 = arith.addf %479, %499 : vector<16x34xf32>
    %c21_147 = arith.constant 21 : index
    %501 = memref.load %arg8[%c21_147] : memref<72xf32, #tpu.memory_space<smem>>
    %502 = vector.broadcast %501 : f32 to vector<16x34xf32>
    %503 = arith.mulf %502, %494 : vector<16x34xf32>
    %504 = arith.addf %483, %503 : vector<16x34xf32>
    %c39_148 = arith.constant 39 : index
    %505 = memref.load %arg8[%c39_148] : memref<72xf32, #tpu.memory_space<smem>>
    %506 = vector.broadcast %505 : f32 to vector<16x34xf32>
    %507 = arith.mulf %506, %494 : vector<16x34xf32>
    %508 = arith.addf %487, %507 : vector<16x34xf32>
    %c57_149 = arith.constant 57 : index
    %509 = memref.load %arg8[%c57_149] : memref<72xf32, #tpu.memory_space<smem>>
    %510 = vector.broadcast %509 : f32 to vector<16x34xf32>
    %511 = arith.mulf %510, %494 : vector<16x34xf32>
    %512 = arith.addf %491, %511 : vector<16x34xf32>
    %c4_150 = arith.constant 4 : index
    %513 = memref.load %arg8[%c4_150] : memref<72xf32, #tpu.memory_space<smem>>
    %514 = vector.broadcast %513 : f32 to vector<16x34xf32>
    %515 = arith.mulf %514, %495 : vector<16x34xf32>
    %516 = arith.addf %500, %515 : vector<16x34xf32>
    %c22_151 = arith.constant 22 : index
    %517 = memref.load %arg8[%c22_151] : memref<72xf32, #tpu.memory_space<smem>>
    %518 = vector.broadcast %517 : f32 to vector<16x34xf32>
    %519 = arith.mulf %518, %495 : vector<16x34xf32>
    %520 = arith.addf %504, %519 : vector<16x34xf32>
    %c40_152 = arith.constant 40 : index
    %521 = memref.load %arg8[%c40_152] : memref<72xf32, #tpu.memory_space<smem>>
    %522 = vector.broadcast %521 : f32 to vector<16x34xf32>
    %523 = arith.mulf %522, %495 : vector<16x34xf32>
    %524 = arith.addf %508, %523 : vector<16x34xf32>
    %c58_153 = arith.constant 58 : index
    %525 = memref.load %arg8[%c58_153] : memref<72xf32, #tpu.memory_space<smem>>
    %526 = vector.broadcast %525 : f32 to vector<16x34xf32>
    %527 = arith.mulf %526, %495 : vector<16x34xf32>
    %528 = arith.addf %512, %527 : vector<16x34xf32>
    %c5_154 = arith.constant 5 : index
    %529 = memref.load %arg8[%c5_154] : memref<72xf32, #tpu.memory_space<smem>>
    %530 = vector.broadcast %529 : f32 to vector<16x34xf32>
    %531 = arith.mulf %530, %496 : vector<16x34xf32>
    %532 = arith.addf %516, %531 : vector<16x34xf32>
    %c23_155 = arith.constant 23 : index
    %533 = memref.load %arg8[%c23_155] : memref<72xf32, #tpu.memory_space<smem>>
    %534 = vector.broadcast %533 : f32 to vector<16x34xf32>
    %535 = arith.mulf %534, %496 : vector<16x34xf32>
    %536 = arith.addf %520, %535 : vector<16x34xf32>
    %c41_156 = arith.constant 41 : index
    %537 = memref.load %arg8[%c41_156] : memref<72xf32, #tpu.memory_space<smem>>
    %538 = vector.broadcast %537 : f32 to vector<16x34xf32>
    %539 = arith.mulf %538, %496 : vector<16x34xf32>
    %540 = arith.addf %524, %539 : vector<16x34xf32>
    %c59_157 = arith.constant 59 : index
    %541 = memref.load %arg8[%c59_157] : memref<72xf32, #tpu.memory_space<smem>>
    %542 = vector.broadcast %541 : f32 to vector<16x34xf32>
    %543 = arith.mulf %542, %496 : vector<16x34xf32>
    %544 = arith.addf %528, %543 : vector<16x34xf32>
    %c0_158 = arith.constant 0 : index
    %c2_159 = arith.constant 2 : index
    %c0_160 = arith.constant 0 : index
    %545 = vector.load %arg13[%c0_158, %c2_159, %c0_160] : memref<2x18x36xf32, #tpu.memory_space<vmem>>, vector<1x16x36xf32>
    %546 = vector.shape_cast %545 : vector<1x16x36xf32> to vector<16x36xf32>
    %547 = vector.extract_strided_slice %546 {offsets = [0, 0], sizes = [16, 34], strides = [1, 1]} : vector<16x36xf32> to vector<16x34xf32>
    %548 = vector.extract_strided_slice %546 {offsets = [0, 1], sizes = [16, 34], strides = [1, 1]} : vector<16x36xf32> to vector<16x34xf32>
    %549 = vector.extract_strided_slice %546 {offsets = [0, 2], sizes = [16, 34], strides = [1, 1]} : vector<16x36xf32> to vector<16x34xf32>
    %c6_161 = arith.constant 6 : index
    %550 = memref.load %arg8[%c6_161] : memref<72xf32, #tpu.memory_space<smem>>
    %551 = vector.broadcast %550 : f32 to vector<16x34xf32>
    %552 = arith.mulf %551, %547 : vector<16x34xf32>
    %553 = arith.addf %532, %552 : vector<16x34xf32>
    %c24_162 = arith.constant 24 : index
    %554 = memref.load %arg8[%c24_162] : memref<72xf32, #tpu.memory_space<smem>>
    %555 = vector.broadcast %554 : f32 to vector<16x34xf32>
    %556 = arith.mulf %555, %547 : vector<16x34xf32>
    %557 = arith.addf %536, %556 : vector<16x34xf32>
    %c42_163 = arith.constant 42 : index
    %558 = memref.load %arg8[%c42_163] : memref<72xf32, #tpu.memory_space<smem>>
    %559 = vector.broadcast %558 : f32 to vector<16x34xf32>
    %560 = arith.mulf %559, %547 : vector<16x34xf32>
    %561 = arith.addf %540, %560 : vector<16x34xf32>
    %c60_164 = arith.constant 60 : index
    %562 = memref.load %arg8[%c60_164] : memref<72xf32, #tpu.memory_space<smem>>
    %563 = vector.broadcast %562 : f32 to vector<16x34xf32>
    %564 = arith.mulf %563, %547 : vector<16x34xf32>
    %565 = arith.addf %544, %564 : vector<16x34xf32>
    %c7_165 = arith.constant 7 : index
    %566 = memref.load %arg8[%c7_165] : memref<72xf32, #tpu.memory_space<smem>>
    %567 = vector.broadcast %566 : f32 to vector<16x34xf32>
    %568 = arith.mulf %567, %548 : vector<16x34xf32>
    %569 = arith.addf %553, %568 : vector<16x34xf32>
    %c25_166 = arith.constant 25 : index
    %570 = memref.load %arg8[%c25_166] : memref<72xf32, #tpu.memory_space<smem>>
    %571 = vector.broadcast %570 : f32 to vector<16x34xf32>
    %572 = arith.mulf %571, %548 : vector<16x34xf32>
    %573 = arith.addf %557, %572 : vector<16x34xf32>
    %c43_167 = arith.constant 43 : index
    %574 = memref.load %arg8[%c43_167] : memref<72xf32, #tpu.memory_space<smem>>
    %575 = vector.broadcast %574 : f32 to vector<16x34xf32>
    %576 = arith.mulf %575, %548 : vector<16x34xf32>
    %577 = arith.addf %561, %576 : vector<16x34xf32>
    %c61_168 = arith.constant 61 : index
    %578 = memref.load %arg8[%c61_168] : memref<72xf32, #tpu.memory_space<smem>>
    %579 = vector.broadcast %578 : f32 to vector<16x34xf32>
    %580 = arith.mulf %579, %548 : vector<16x34xf32>
    %581 = arith.addf %565, %580 : vector<16x34xf32>
    %c8_169 = arith.constant 8 : index
    %582 = memref.load %arg8[%c8_169] : memref<72xf32, #tpu.memory_space<smem>>
    %583 = vector.broadcast %582 : f32 to vector<16x34xf32>
    %584 = arith.mulf %583, %549 : vector<16x34xf32>
    %585 = arith.addf %569, %584 : vector<16x34xf32>
    %c26_170 = arith.constant 26 : index
    %586 = memref.load %arg8[%c26_170] : memref<72xf32, #tpu.memory_space<smem>>
    %587 = vector.broadcast %586 : f32 to vector<16x34xf32>
    %588 = arith.mulf %587, %549 : vector<16x34xf32>
    %589 = arith.addf %573, %588 : vector<16x34xf32>
    %c44_171 = arith.constant 44 : index
    %590 = memref.load %arg8[%c44_171] : memref<72xf32, #tpu.memory_space<smem>>
    %591 = vector.broadcast %590 : f32 to vector<16x34xf32>
    %592 = arith.mulf %591, %549 : vector<16x34xf32>
    %593 = arith.addf %577, %592 : vector<16x34xf32>
    %c62_172 = arith.constant 62 : index
    %594 = memref.load %arg8[%c62_172] : memref<72xf32, #tpu.memory_space<smem>>
    %595 = vector.broadcast %594 : f32 to vector<16x34xf32>
    %596 = arith.mulf %595, %549 : vector<16x34xf32>
    %597 = arith.addf %581, %596 : vector<16x34xf32>
    %c1_173 = arith.constant 1 : index
    %c0_174 = arith.constant 0 : index
    %c0_175 = arith.constant 0 : index
    %598 = vector.load %arg13[%c1_173, %c0_174, %c0_175] : memref<2x18x36xf32, #tpu.memory_space<vmem>>, vector<1x16x36xf32>
    %599 = vector.shape_cast %598 : vector<1x16x36xf32> to vector<16x36xf32>
    %600 = vector.extract_strided_slice %599 {offsets = [0, 0], sizes = [16, 34], strides = [1, 1]} : vector<16x36xf32> to vector<16x34xf32>
    %601 = vector.extract_strided_slice %599 {offsets = [0, 1], sizes = [16, 34], strides = [1, 1]} : vector<16x36xf32> to vector<16x34xf32>
    %602 = vector.extract_strided_slice %599 {offsets = [0, 2], sizes = [16, 34], strides = [1, 1]} : vector<16x36xf32> to vector<16x34xf32>
    %c9_176 = arith.constant 9 : index
    %603 = memref.load %arg8[%c9_176] : memref<72xf32, #tpu.memory_space<smem>>
    %604 = vector.broadcast %603 : f32 to vector<16x34xf32>
    %605 = arith.mulf %604, %600 : vector<16x34xf32>
    %606 = arith.addf %585, %605 : vector<16x34xf32>
    %c27_177 = arith.constant 27 : index
    %607 = memref.load %arg8[%c27_177] : memref<72xf32, #tpu.memory_space<smem>>
    %608 = vector.broadcast %607 : f32 to vector<16x34xf32>
    %609 = arith.mulf %608, %600 : vector<16x34xf32>
    %610 = arith.addf %589, %609 : vector<16x34xf32>
    %c45_178 = arith.constant 45 : index
    %611 = memref.load %arg8[%c45_178] : memref<72xf32, #tpu.memory_space<smem>>
    %612 = vector.broadcast %611 : f32 to vector<16x34xf32>
    %613 = arith.mulf %612, %600 : vector<16x34xf32>
    %614 = arith.addf %593, %613 : vector<16x34xf32>
    %c63_179 = arith.constant 63 : index
    %615 = memref.load %arg8[%c63_179] : memref<72xf32, #tpu.memory_space<smem>>
    %616 = vector.broadcast %615 : f32 to vector<16x34xf32>
    %617 = arith.mulf %616, %600 : vector<16x34xf32>
    %618 = arith.addf %597, %617 : vector<16x34xf32>
    %c10_180 = arith.constant 10 : index
    %619 = memref.load %arg8[%c10_180] : memref<72xf32, #tpu.memory_space<smem>>
    %620 = vector.broadcast %619 : f32 to vector<16x34xf32>
    %621 = arith.mulf %620, %601 : vector<16x34xf32>
    %622 = arith.addf %606, %621 : vector<16x34xf32>
    %c28_181 = arith.constant 28 : index
    %623 = memref.load %arg8[%c28_181] : memref<72xf32, #tpu.memory_space<smem>>
    %624 = vector.broadcast %623 : f32 to vector<16x34xf32>
    %625 = arith.mulf %624, %601 : vector<16x34xf32>
    %626 = arith.addf %610, %625 : vector<16x34xf32>
    %c46_182 = arith.constant 46 : index
    %627 = memref.load %arg8[%c46_182] : memref<72xf32, #tpu.memory_space<smem>>
    %628 = vector.broadcast %627 : f32 to vector<16x34xf32>
    %629 = arith.mulf %628, %601 : vector<16x34xf32>
    %630 = arith.addf %614, %629 : vector<16x34xf32>
    %c64_183 = arith.constant 64 : index
    %631 = memref.load %arg8[%c64_183] : memref<72xf32, #tpu.memory_space<smem>>
    %632 = vector.broadcast %631 : f32 to vector<16x34xf32>
    %633 = arith.mulf %632, %601 : vector<16x34xf32>
    %634 = arith.addf %618, %633 : vector<16x34xf32>
    %c11_184 = arith.constant 11 : index
    %635 = memref.load %arg8[%c11_184] : memref<72xf32, #tpu.memory_space<smem>>
    %636 = vector.broadcast %635 : f32 to vector<16x34xf32>
    %637 = arith.mulf %636, %602 : vector<16x34xf32>
    %638 = arith.addf %622, %637 : vector<16x34xf32>
    %c29_185 = arith.constant 29 : index
    %639 = memref.load %arg8[%c29_185] : memref<72xf32, #tpu.memory_space<smem>>
    %640 = vector.broadcast %639 : f32 to vector<16x34xf32>
    %641 = arith.mulf %640, %602 : vector<16x34xf32>
    %642 = arith.addf %626, %641 : vector<16x34xf32>
    %c47_186 = arith.constant 47 : index
    %643 = memref.load %arg8[%c47_186] : memref<72xf32, #tpu.memory_space<smem>>
    %644 = vector.broadcast %643 : f32 to vector<16x34xf32>
    %645 = arith.mulf %644, %602 : vector<16x34xf32>
    %646 = arith.addf %630, %645 : vector<16x34xf32>
    %c65_187 = arith.constant 65 : index
    %647 = memref.load %arg8[%c65_187] : memref<72xf32, #tpu.memory_space<smem>>
    %648 = vector.broadcast %647 : f32 to vector<16x34xf32>
    %649 = arith.mulf %648, %602 : vector<16x34xf32>
    %650 = arith.addf %634, %649 : vector<16x34xf32>
    %c1_188 = arith.constant 1 : index
    %c1_189 = arith.constant 1 : index
    %c0_190 = arith.constant 0 : index
    %651 = vector.load %arg13[%c1_188, %c1_189, %c0_190] : memref<2x18x36xf32, #tpu.memory_space<vmem>>, vector<1x16x36xf32>
    %652 = vector.shape_cast %651 : vector<1x16x36xf32> to vector<16x36xf32>
    %653 = vector.extract_strided_slice %652 {offsets = [0, 0], sizes = [16, 34], strides = [1, 1]} : vector<16x36xf32> to vector<16x34xf32>
    %654 = vector.extract_strided_slice %652 {offsets = [0, 1], sizes = [16, 34], strides = [1, 1]} : vector<16x36xf32> to vector<16x34xf32>
    %655 = vector.extract_strided_slice %652 {offsets = [0, 2], sizes = [16, 34], strides = [1, 1]} : vector<16x36xf32> to vector<16x34xf32>
    %c12_191 = arith.constant 12 : index
    %656 = memref.load %arg8[%c12_191] : memref<72xf32, #tpu.memory_space<smem>>
    %657 = vector.broadcast %656 : f32 to vector<16x34xf32>
    %658 = arith.mulf %657, %653 : vector<16x34xf32>
    %659 = arith.addf %638, %658 : vector<16x34xf32>
    %c30_192 = arith.constant 30 : index
    %660 = memref.load %arg8[%c30_192] : memref<72xf32, #tpu.memory_space<smem>>
    %661 = vector.broadcast %660 : f32 to vector<16x34xf32>
    %662 = arith.mulf %661, %653 : vector<16x34xf32>
    %663 = arith.addf %642, %662 : vector<16x34xf32>
    %c48_193 = arith.constant 48 : index
    %664 = memref.load %arg8[%c48_193] : memref<72xf32, #tpu.memory_space<smem>>
    %665 = vector.broadcast %664 : f32 to vector<16x34xf32>
    %666 = arith.mulf %665, %653 : vector<16x34xf32>
    %667 = arith.addf %646, %666 : vector<16x34xf32>
    %c66_194 = arith.constant 66 : index
    %668 = memref.load %arg8[%c66_194] : memref<72xf32, #tpu.memory_space<smem>>
    %669 = vector.broadcast %668 : f32 to vector<16x34xf32>
    %670 = arith.mulf %669, %653 : vector<16x34xf32>
    %671 = arith.addf %650, %670 : vector<16x34xf32>
    %c13_195 = arith.constant 13 : index
    %672 = memref.load %arg8[%c13_195] : memref<72xf32, #tpu.memory_space<smem>>
    %673 = vector.broadcast %672 : f32 to vector<16x34xf32>
    %674 = arith.mulf %673, %654 : vector<16x34xf32>
    %675 = arith.addf %659, %674 : vector<16x34xf32>
    %c31_196 = arith.constant 31 : index
    %676 = memref.load %arg8[%c31_196] : memref<72xf32, #tpu.memory_space<smem>>
    %677 = vector.broadcast %676 : f32 to vector<16x34xf32>
    %678 = arith.mulf %677, %654 : vector<16x34xf32>
    %679 = arith.addf %663, %678 : vector<16x34xf32>
    %c49_197 = arith.constant 49 : index
    %680 = memref.load %arg8[%c49_197] : memref<72xf32, #tpu.memory_space<smem>>
    %681 = vector.broadcast %680 : f32 to vector<16x34xf32>
    %682 = arith.mulf %681, %654 : vector<16x34xf32>
    %683 = arith.addf %667, %682 : vector<16x34xf32>
    %c67_198 = arith.constant 67 : index
    %684 = memref.load %arg8[%c67_198] : memref<72xf32, #tpu.memory_space<smem>>
    %685 = vector.broadcast %684 : f32 to vector<16x34xf32>
    %686 = arith.mulf %685, %654 : vector<16x34xf32>
    %687 = arith.addf %671, %686 : vector<16x34xf32>
    %c14_199 = arith.constant 14 : index
    %688 = memref.load %arg8[%c14_199] : memref<72xf32, #tpu.memory_space<smem>>
    %689 = vector.broadcast %688 : f32 to vector<16x34xf32>
    %690 = arith.mulf %689, %655 : vector<16x34xf32>
    %691 = arith.addf %675, %690 : vector<16x34xf32>
    %c32_200 = arith.constant 32 : index
    %692 = memref.load %arg8[%c32_200] : memref<72xf32, #tpu.memory_space<smem>>
    %693 = vector.broadcast %692 : f32 to vector<16x34xf32>
    %694 = arith.mulf %693, %655 : vector<16x34xf32>
    %695 = arith.addf %679, %694 : vector<16x34xf32>
    %c50_201 = arith.constant 50 : index
    %696 = memref.load %arg8[%c50_201] : memref<72xf32, #tpu.memory_space<smem>>
    %697 = vector.broadcast %696 : f32 to vector<16x34xf32>
    %698 = arith.mulf %697, %655 : vector<16x34xf32>
    %699 = arith.addf %683, %698 : vector<16x34xf32>
    %c68_202 = arith.constant 68 : index
    %700 = memref.load %arg8[%c68_202] : memref<72xf32, #tpu.memory_space<smem>>
    %701 = vector.broadcast %700 : f32 to vector<16x34xf32>
    %702 = arith.mulf %701, %655 : vector<16x34xf32>
    %703 = arith.addf %687, %702 : vector<16x34xf32>
    %c1_203 = arith.constant 1 : index
    %c2_204 = arith.constant 2 : index
    %c0_205 = arith.constant 0 : index
    %704 = vector.load %arg13[%c1_203, %c2_204, %c0_205] : memref<2x18x36xf32, #tpu.memory_space<vmem>>, vector<1x16x36xf32>
    %705 = vector.shape_cast %704 : vector<1x16x36xf32> to vector<16x36xf32>
    %706 = vector.extract_strided_slice %705 {offsets = [0, 0], sizes = [16, 34], strides = [1, 1]} : vector<16x36xf32> to vector<16x34xf32>
    %707 = vector.extract_strided_slice %705 {offsets = [0, 1], sizes = [16, 34], strides = [1, 1]} : vector<16x36xf32> to vector<16x34xf32>
    %708 = vector.extract_strided_slice %705 {offsets = [0, 2], sizes = [16, 34], strides = [1, 1]} : vector<16x36xf32> to vector<16x34xf32>
    %c15_206 = arith.constant 15 : index
    %709 = memref.load %arg8[%c15_206] : memref<72xf32, #tpu.memory_space<smem>>
    %710 = vector.broadcast %709 : f32 to vector<16x34xf32>
    %711 = arith.mulf %710, %706 : vector<16x34xf32>
    %712 = arith.addf %691, %711 : vector<16x34xf32>
    %c33_207 = arith.constant 33 : index
    %713 = memref.load %arg8[%c33_207] : memref<72xf32, #tpu.memory_space<smem>>
    %714 = vector.broadcast %713 : f32 to vector<16x34xf32>
    %715 = arith.mulf %714, %706 : vector<16x34xf32>
    %716 = arith.addf %695, %715 : vector<16x34xf32>
    %c51_208 = arith.constant 51 : index
    %717 = memref.load %arg8[%c51_208] : memref<72xf32, #tpu.memory_space<smem>>
    %718 = vector.broadcast %717 : f32 to vector<16x34xf32>
    %719 = arith.mulf %718, %706 : vector<16x34xf32>
    %720 = arith.addf %699, %719 : vector<16x34xf32>
    %c69_209 = arith.constant 69 : index
    %721 = memref.load %arg8[%c69_209] : memref<72xf32, #tpu.memory_space<smem>>
    %722 = vector.broadcast %721 : f32 to vector<16x34xf32>
    %723 = arith.mulf %722, %706 : vector<16x34xf32>
    %724 = arith.addf %703, %723 : vector<16x34xf32>
    %c16_210 = arith.constant 16 : index
    %725 = memref.load %arg8[%c16_210] : memref<72xf32, #tpu.memory_space<smem>>
    %726 = vector.broadcast %725 : f32 to vector<16x34xf32>
    %727 = arith.mulf %726, %707 : vector<16x34xf32>
    %728 = arith.addf %712, %727 : vector<16x34xf32>
    %c34_211 = arith.constant 34 : index
    %729 = memref.load %arg8[%c34_211] : memref<72xf32, #tpu.memory_space<smem>>
    %730 = vector.broadcast %729 : f32 to vector<16x34xf32>
    %731 = arith.mulf %730, %707 : vector<16x34xf32>
    %732 = arith.addf %716, %731 : vector<16x34xf32>
    %c52_212 = arith.constant 52 : index
    %733 = memref.load %arg8[%c52_212] : memref<72xf32, #tpu.memory_space<smem>>
    %734 = vector.broadcast %733 : f32 to vector<16x34xf32>
    %735 = arith.mulf %734, %707 : vector<16x34xf32>
    %736 = arith.addf %720, %735 : vector<16x34xf32>
    %c70_213 = arith.constant 70 : index
    %737 = memref.load %arg8[%c70_213] : memref<72xf32, #tpu.memory_space<smem>>
    %738 = vector.broadcast %737 : f32 to vector<16x34xf32>
    %739 = arith.mulf %738, %707 : vector<16x34xf32>
    %740 = arith.addf %724, %739 : vector<16x34xf32>
    %c17_214 = arith.constant 17 : index
    %741 = memref.load %arg8[%c17_214] : memref<72xf32, #tpu.memory_space<smem>>
    %742 = vector.broadcast %741 : f32 to vector<16x34xf32>
    %743 = arith.mulf %742, %708 : vector<16x34xf32>
    %744 = arith.addf %728, %743 : vector<16x34xf32>
    %c35_215 = arith.constant 35 : index
    %745 = memref.load %arg8[%c35_215] : memref<72xf32, #tpu.memory_space<smem>>
    %746 = vector.broadcast %745 : f32 to vector<16x34xf32>
    %747 = arith.mulf %746, %708 : vector<16x34xf32>
    %748 = arith.addf %732, %747 : vector<16x34xf32>
    %c53_216 = arith.constant 53 : index
    %749 = memref.load %arg8[%c53_216] : memref<72xf32, #tpu.memory_space<smem>>
    %750 = vector.broadcast %749 : f32 to vector<16x34xf32>
    %751 = arith.mulf %750, %708 : vector<16x34xf32>
    %752 = arith.addf %736, %751 : vector<16x34xf32>
    %c71_217 = arith.constant 71 : index
    %753 = memref.load %arg8[%c71_217] : memref<72xf32, #tpu.memory_space<smem>>
    %754 = vector.broadcast %753 : f32 to vector<16x34xf32>
    %755 = arith.mulf %754, %708 : vector<16x34xf32>
    %756 = arith.addf %740, %755 : vector<16x34xf32>
    %c0_218 = arith.constant 0 : index
    %757 = memref.load %arg9[%c0_218] : memref<4xf32, #tpu.memory_space<smem>>
    %758 = vector.broadcast %757 : f32 to vector<16x34xf32>
    %759 = arith.mulf %744, %758 : vector<16x34xf32>
    %c0_219 = arith.constant 0 : index
    %760 = memref.load %arg10[%c0_219] : memref<4xf32, #tpu.memory_space<smem>>
    %761 = vector.broadcast %760 : f32 to vector<16x34xf32>
    %762 = arith.addf %759, %761 : vector<16x34xf32>
    %cst_220 = arith.constant 0.000000e+00 : f32
    %763 = vector.broadcast %cst_220 : f32 to vector<16x34xf32>
    %764 = arith.maximumf %762, %763 : vector<16x34xf32>
    %765 = vector.extract_strided_slice %764 {offsets = [0, 0], sizes = [16, 16], strides = [1, 1]} : vector<16x34xf32> to vector<16x16xf32>
    %c0_221 = arith.constant 0 : index
    %c0_222 = arith.constant 0 : index
    %c0_223 = arith.constant 0 : index
    %c0_224 = arith.constant 0 : index
    %766 = vector.load %arg11[%c0_221, %c0_222, %c0_223, %c0_224] : memref<2x4x16x16xf32, #tpu.memory_space<vmem>>, vector<1x1x16x16xf32>
    %767 = vector.shape_cast %766 : vector<1x1x16x16xf32> to vector<16x16xf32>
    %768 = vector.shape_cast %765 : vector<16x16xf32> to vector<1x1x16x16xf32>
    tpu.vector_store %arg11[%c0_221, %c0_222, %c0_223, %c0_224], %768 {strides = array<i32>} : memref<2x4x16x16xf32, #tpu.memory_space<vmem>>, vector<1x1x16x16xf32>,
    %769 = vector.extract_strided_slice %764 {offsets = [0, 18], sizes = [16, 16], strides = [1, 1]} : vector<16x34xf32> to vector<16x16xf32>
    %c1_225 = arith.constant 1 : index
    %c0_226 = arith.constant 0 : index
    %c0_227 = arith.constant 0 : index
    %c0_228 = arith.constant 0 : index
    %770 = vector.load %arg11[%c1_225, %c0_226, %c0_227, %c0_228] : memref<2x4x16x16xf32, #tpu.memory_space<vmem>>, vector<1x1x16x16xf32>
    %771 = vector.shape_cast %770 : vector<1x1x16x16xf32> to vector<16x16xf32>
    %772 = vector.shape_cast %769 : vector<16x16xf32> to vector<1x1x16x16xf32>
    tpu.vector_store %arg11[%c1_225, %c0_226, %c0_227, %c0_228], %772 {strides = array<i32>} : memref<2x4x16x16xf32, #tpu.memory_space<vmem>>, vector<1x1x16x16xf32>,
    %c1_229 = arith.constant 1 : index
    %773 = memref.load %arg9[%c1_229] : memref<4xf32, #tpu.memory_space<smem>>
    %774 = vector.broadcast %773 : f32 to vector<16x34xf32>
    %775 = arith.mulf %748, %774 : vector<16x34xf32>
    %c1_230 = arith.constant 1 : index
    %776 = memref.load %arg10[%c1_230] : memref<4xf32, #tpu.memory_space<smem>>
    %777 = vector.broadcast %776 : f32 to vector<16x34xf32>
    %778 = arith.addf %775, %777 : vector<16x34xf32>
    %cst_231 = arith.constant 0.000000e+00 : f32
    %779 = vector.broadcast %cst_231 : f32 to vector<16x34xf32>
    %780 = arith.maximumf %778, %779 : vector<16x34xf32>
    %781 = vector.extract_strided_slice %780 {offsets = [0, 0], sizes = [16, 16], strides = [1, 1]} : vector<16x34xf32> to vector<16x16xf32>
    %c0_232 = arith.constant 0 : index
    %c1_233 = arith.constant 1 : index
    %c0_234 = arith.constant 0 : index
    %c0_235 = arith.constant 0 : index
    %782 = vector.load %arg11[%c0_232, %c1_233, %c0_234, %c0_235] : memref<2x4x16x16xf32, #tpu.memory_space<vmem>>, vector<1x1x16x16xf32>
    %783 = vector.shape_cast %782 : vector<1x1x16x16xf32> to vector<16x16xf32>
    %784 = vector.shape_cast %781 : vector<16x16xf32> to vector<1x1x16x16xf32>
    tpu.vector_store %arg11[%c0_232, %c1_233, %c0_234, %c0_235], %784 {strides = array<i32>} : memref<2x4x16x16xf32, #tpu.memory_space<vmem>>, vector<1x1x16x16xf32>,
    %785 = vector.extract_strided_slice %780 {offsets = [0, 18], sizes = [16, 16], strides = [1, 1]} : vector<16x34xf32> to vector<16x16xf32>
    %c1_236 = arith.constant 1 : index
    %c1_237 = arith.constant 1 : index
    %c0_238 = arith.constant 0 : index
    %c0_239 = arith.constant 0 : index
    %786 = vector.load %arg11[%c1_236, %c1_237, %c0_238, %c0_239] : memref<2x4x16x16xf32, #tpu.memory_space<vmem>>, vector<1x1x16x16xf32>
    %787 = vector.shape_cast %786 : vector<1x1x16x16xf32> to vector<16x16xf32>
    %788 = vector.shape_cast %785 : vector<16x16xf32> to vector<1x1x16x16xf32>
    tpu.vector_store %arg11[%c1_236, %c1_237, %c0_238, %c0_239], %788 {strides = array<i32>} : memref<2x4x16x16xf32, #tpu.memory_space<vmem>>, vector<1x1x16x16xf32>,
    %c2_240 = arith.constant 2 : index
    %789 = memref.load %arg9[%c2_240] : memref<4xf32, #tpu.memory_space<smem>>
    %790 = vector.broadcast %789 : f32 to vector<16x34xf32>
    %791 = arith.mulf %752, %790 : vector<16x34xf32>
    %c2_241 = arith.constant 2 : index
    %792 = memref.load %arg10[%c2_241] : memref<4xf32, #tpu.memory_space<smem>>
    %793 = vector.broadcast %792 : f32 to vector<16x34xf32>
    %794 = arith.addf %791, %793 : vector<16x34xf32>
    %cst_242 = arith.constant 0.000000e+00 : f32
    %795 = vector.broadcast %cst_242 : f32 to vector<16x34xf32>
    %796 = arith.maximumf %794, %795 : vector<16x34xf32>
    %797 = vector.extract_strided_slice %796 {offsets = [0, 0], sizes = [16, 16], strides = [1, 1]} : vector<16x34xf32> to vector<16x16xf32>
    %c0_243 = arith.constant 0 : index
    %c2_244 = arith.constant 2 : index
    %c0_245 = arith.constant 0 : index
    %c0_246 = arith.constant 0 : index
    %798 = vector.load %arg11[%c0_243, %c2_244, %c0_245, %c0_246] : memref<2x4x16x16xf32, #tpu.memory_space<vmem>>, vector<1x1x16x16xf32>
    %799 = vector.shape_cast %798 : vector<1x1x16x16xf32> to vector<16x16xf32>
    %800 = vector.shape_cast %797 : vector<16x16xf32> to vector<1x1x16x16xf32>
    tpu.vector_store %arg11[%c0_243, %c2_244, %c0_245, %c0_246], %800 {strides = array<i32>} : memref<2x4x16x16xf32, #tpu.memory_space<vmem>>, vector<1x1x16x16xf32>,
    %801 = vector.extract_strided_slice %796 {offsets = [0, 18], sizes = [16, 16], strides = [1, 1]} : vector<16x34xf32> to vector<16x16xf32>
    %c1_247 = arith.constant 1 : index
    %c2_248 = arith.constant 2 : index
    %c0_249 = arith.constant 0 : index
    %c0_250 = arith.constant 0 : index
    %802 = vector.load %arg11[%c1_247, %c2_248, %c0_249, %c0_250] : memref<2x4x16x16xf32, #tpu.memory_space<vmem>>, vector<1x1x16x16xf32>
    %803 = vector.shape_cast %802 : vector<1x1x16x16xf32> to vector<16x16xf32>
    %804 = vector.shape_cast %801 : vector<16x16xf32> to vector<1x1x16x16xf32>
    tpu.vector_store %arg11[%c1_247, %c2_248, %c0_249, %c0_250], %804 {strides = array<i32>} : memref<2x4x16x16xf32, #tpu.memory_space<vmem>>, vector<1x1x16x16xf32>,
    %c3_251 = arith.constant 3 : index
    %805 = memref.load %arg9[%c3_251] : memref<4xf32, #tpu.memory_space<smem>>
    %806 = vector.broadcast %805 : f32 to vector<16x34xf32>
    %807 = arith.mulf %756, %806 : vector<16x34xf32>
    %c3_252 = arith.constant 3 : index
    %808 = memref.load %arg10[%c3_252] : memref<4xf32, #tpu.memory_space<smem>>
    %809 = vector.broadcast %808 : f32 to vector<16x34xf32>
    %810 = arith.addf %807, %809 : vector<16x34xf32>
    %cst_253 = arith.constant 0.000000e+00 : f32
    %811 = vector.broadcast %cst_253 : f32 to vector<16x34xf32>
    %812 = arith.maximumf %810, %811 : vector<16x34xf32>
    %813 = vector.extract_strided_slice %812 {offsets = [0, 0], sizes = [16, 16], strides = [1, 1]} : vector<16x34xf32> to vector<16x16xf32>
    %c0_254 = arith.constant 0 : index
    %c3_255 = arith.constant 3 : index
    %c0_256 = arith.constant 0 : index
    %c0_257 = arith.constant 0 : index
    %814 = vector.load %arg11[%c0_254, %c3_255, %c0_256, %c0_257] : memref<2x4x16x16xf32, #tpu.memory_space<vmem>>, vector<1x1x16x16xf32>
    %815 = vector.shape_cast %814 : vector<1x1x16x16xf32> to vector<16x16xf32>
    %816 = vector.shape_cast %813 : vector<16x16xf32> to vector<1x1x16x16xf32>
    tpu.vector_store %arg11[%c0_254, %c3_255, %c0_256, %c0_257], %816 {strides = array<i32>} : memref<2x4x16x16xf32, #tpu.memory_space<vmem>>, vector<1x1x16x16xf32>,
    %817 = vector.extract_strided_slice %812 {offsets = [0, 18], sizes = [16, 16], strides = [1, 1]} : vector<16x34xf32> to vector<16x16xf32>
    %c1_258 = arith.constant 1 : index
    %c3_259 = arith.constant 3 : index
    %c0_260 = arith.constant 0 : index
    %c0_261 = arith.constant 0 : index
    %818 = vector.load %arg11[%c1_258, %c3_259, %c0_260, %c0_261] : memref<2x4x16x16xf32, #tpu.memory_space<vmem>>, vector<1x1x16x16xf32>
    %819 = vector.shape_cast %818 : vector<1x1x16x16xf32> to vector<16x16xf32>
    %820 = vector.shape_cast %817 : vector<16x16xf32> to vector<1x1x16x16xf32>
    tpu.vector_store %arg11[%c1_258, %c3_259, %c0_260, %c0_261], %820 {strides = array<i32>} : memref<2x4x16x16xf32, #tpu.memory_space<vmem>>, vector<1x1x16x16xf32>,
    return
  }
  func.func @transform_0(%arg0: i32) -> (i32, i32, i32, i32) {
    %c0_i32 = arith.constant 0 : i32
    %c0_i32_0 = arith.constant 0 : i32
    %c0_i32_1 = arith.constant 0 : i32
    %c0_i32_2 = arith.constant 0 : i32
    return %arg0, %c0_i32, %c0_i32_0, %c0_i32_1 : i32, i32, i32, i32
  }
  func.func @transform_1(%arg0: i32) -> (i32, i32, i32, i32) {
    %c0_i32 = arith.constant 0 : i32
    %c0_i32_0 = arith.constant 0 : i32
    %c0_i32_1 = arith.constant 0 : i32
    %c0_i32_2 = arith.constant 0 : i32
    return %arg0, %c0_i32, %c0_i32_0, %c0_i32_1 : i32, i32, i32, i32
  }
  func.func @transform_2(%arg0: i32) -> (i32, i32) {
    %c0_i32 = arith.constant 0 : i32
    %c0_i32_0 = arith.constant 0 : i32
    %c0_i32_1 = arith.constant 0 : i32
    return %c0_i32, %c0_i32_0 : i32, i32
  }
  func.func @transform_3(%arg0: i32) -> (i32, i32) {
    %c0_i32 = arith.constant 0 : i32
    %c0_i32_0 = arith.constant 0 : i32
    %c0_i32_1 = arith.constant 0 : i32
    return %c0_i32, %c0_i32_0 : i32, i32
  }
  func.func @transform_4(%arg0: i32) -> i32 {
    %c0_i32 = arith.constant 0 : i32
    %c0_i32_0 = arith.constant 0 : i32
    return %c0_i32 : i32
  }
  func.func @transform_5(%arg0: i32) -> i32 {
    %c0_i32 = arith.constant 0 : i32
    %c0_i32_0 = arith.constant 0 : i32
    return %c0_i32 : i32
  }
  func.func @transform_6(%arg0: i32) -> i32 {
    %c0_i32 = arith.constant 0 : i32
    %c0_i32_0 = arith.constant 0 : i32
    return %c0_i32 : i32
  }
  func.func @transform_7(%arg0: i32) -> i32 {
    %c0_i32 = arith.constant 0 : i32
    %c0_i32_0 = arith.constant 0 : i32
    return %c0_i32 : i32
  }
  func.func @transform_8(%arg0: i32) -> i32 {
    %c0_i32 = arith.constant 0 : i32
    %c0_i32_0 = arith.constant 0 : i32
    return %c0_i32 : i32
  }
  func.func @transform_9(%arg0: i32) -> i32 {
    %c0_i32 = arith.constant 0 : i32
    %c0_i32_0 = arith.constant 0 : i32
    return %c0_i32 : i32
  }
  func.func @transform_10(%arg0: i32) -> (i32, i32, i32, i32) {
    %c0_i32 = arith.constant 0 : i32
    %c0_i32_0 = arith.constant 0 : i32
    %c0_i32_1 = arith.constant 0 : i32
    %c0_i32_2 = arith.constant 0 : i32
    return %arg0, %c0_i32, %c0_i32_0, %c0_i32_1 : i32, i32, i32, i32
  }
}

</mosaic_0001>

<bundles_post_ra>
// kernel: up_forward.1
= control target key start
LH: loop header
LB: loop body
LE: loop exit
PB: predicated region body
PF: predicated region fallthrough
CT: control target
= control target key end

     0   :  { %15 = vsyncpa [#allocation6], 0  ;;  %s4395_s0 = inlined_call_operand.vmem [shape: f32[2,2,8,8], index: 0, kind: input, shape index: {}]   ;;  %s4396_s1 = inlined_call_operand.vmem [shape: f32[2,2,16,16], index: 1, kind: input, shape index: {}]   ;;  %s4397_s2 = inlined_call_operand.vmem [shape: f32[16,8], index: 2, kind: input, shape index: {}]   ;;  %s4398_s3 = inlined_call_operand.vmem [shape: f32[8,16], index: 3, kind: input, shape index: {}]   ;;  %s4399_s4 = inlined_call_operand.vmem [shape: f32[72], index: 4, kind: input, shape index: {}]   ;;  %s4400_s5 = inlined_call_operand.vmem [shape: f32[2], index: 5, kind: input, shape index: {}]   ;;  %s4401_s6 = inlined_call_operand.vmem [shape: f32[2], index: 6, kind: input, shape index: {}]   ;;  %s4402_s7 = inlined_call_operand.vmem [shape: f32[72], index: 7, kind: input, shape index: {}]   ;;  %s4403_s8 = inlined_call_operand.vmem [shape: f32[4], index: 8, kind: input, shape index: {}]   ;;  %s4404_s9 = inlined_call_operand.vmem [shape: f32[4], index: 9, kind: input, shape index: {}]   ;;  %s4405_s10 = inlined_call_operand.hbm [shape: f32[2,4,16,16], index: 10, kind: output, shape index: {}]  }
   0x1   :  { %16 = vsyncpa [#allocation8], 0 }
   0x2   :  { %17 = vsyncpa [#allocation11], 0 }
   0x3   :  { %18 = vsyncpa [#allocation14], 0  ;;  %s44_s15 = sshll.u32 %s4400_s5, 4  ;;  %s45_s15 = int_to_ptr.vmem [resolvable:$true] %s44_s15 }
   0x4   :  { %19 = vsyncpa [#allocation5], 0  ;;  %s64_s18 = sshll.u32 %s4402_s7, 4  ;;  %s2912_s19 = scalar_lea.vmem %s45_s15, 16  ;;  %s65_s18 = int_to_ptr.vmem [resolvable:$true] %s64_s18 }
   0x5   :  { %p2913_p0 = scmp.ne.s32.totalorder %s45_s15, %s2912_s19  ;;  %p2917_p1 = scmp.lt.s32.totalorder %s45_s15, %s45_s15 }
   0x6   :  { %p2918_p2 = scmp.lt.s32.totalorder %s2912_s19, %s2912_s19 }
   0x8   :  { %p2919_p3 = por %p2918_p2, %p2917_p1 }
   0xa   :  { %p2920_p4 = pnand %p2919_p3, %p2913_p0 }
   0xc   :  { %2923 = shalt.err (!%p2920_p4)
}
   0xd   :  { %s3014_s20 = smov [#allocation7]   ;;  %s2924_s21 = scalar_lea.vmem %s65_s18, 16 }
   0xe   :  { %47 = dma.vmem_to_smem %s45_s15, 16, %s3014_s20, [#allocation8]  }
   0xf   :  { %p2925_p5 = scmp.ne.s32.totalorder %s65_s18, %s2924_s21  ;;  %p2929_p6 = scmp.lt.s32.totalorder %s65_s18, %s65_s18 }
  0x10   :  { %p2930_p7 = scmp.lt.s32.totalorder %s2924_s21, %s2924_s21 }
  0x12   :  { %p2931_p8 = por %p2930_p7, %p2929_p6 }
  0x14   :  { %p2932_p9 = pnand %p2931_p8, %p2925_p5 }
  0x16   :  { %2935 = shalt.err (!%p2932_p9)
}
  0x17   :  { %s3015_s5 = smov [#allocation10]   ;;  %s34_s23 = sshll.u32 %s4399_s4, 4  ;;  %s35_s23 = int_to_ptr.vmem [resolvable:$true] %s34_s23 }
  0x18   :  { %67 = dma.vmem_to_smem %s65_s18, 16, %s3015_s5, [#allocation11]  }
  0x19   :  { %s54_s26 = sshll.u32 %s4401_s6, 4  ;;  %s2936_s27 = scalar_lea.vmem %s35_s23, 16  ;;  %s55_s26 = int_to_ptr.vmem [resolvable:$true] %s54_s26 }
  0x1a   :  { %p2937_p10 = scmp.ne.s32.totalorder %s35_s23, %s2936_s27  ;;  %p2941_p11 = scmp.lt.s32.totalorder %s35_s23, %s35_s23 }
  0x1b   :  { %p2942_p12 = scmp.lt.s32.totalorder %s2936_s27, %s2936_s27 }
  0x1d   :  { %p2943_p13 = por %p2942_p12, %p2941_p11 }
  0x1f   :  { %p2944_p0 = pnand %p2943_p13, %p2937_p10 }
  0x21   :  { %2947 = shalt.err (!%p2944_p0)
}
  0x22   :  { %s3016_s28 = smov [#allocation4]   ;;  %s2948_s29 = scalar_lea.vmem %s55_s26, 16 }
  0x23   :  { %37 = dma.vmem_to_smem %s35_s23, 16, %s3016_s28, [#allocation6]  }
  0x24   :  { %p2949_p1 = scmp.ne.s32.totalorder %s55_s26, %s2948_s29  ;;  %p2953_p2 = scmp.lt.s32.totalorder %s55_s26, %s55_s26 }
  0x25   :  { %p2954_p3 = scmp.lt.s32.totalorder %s2948_s29, %s2948_s29 }
  0x27   :  { %p2955_p4 = por %p2954_p3, %p2953_p2 }
  0x29   :  { %p2956_p5 = pnand %p2955_p4, %p2949_p1 }
  0x2b   :  { %2959 = shalt.err (!%p2956_p5)
}
  0x2c   :  { %s3017_s4 = smov [#allocation9]   ;;  %s74_s11 = sshll.u32 %s4403_s8, 4  ;;  %s75_s11 = int_to_ptr.vmem [resolvable:$true] %s74_s11 }
  0x2d   :  { %57 = dma.vmem_to_smem %s55_s26, 16, %s3017_s4, [#allocation8]  }
  0x2e   :  { %s84_s14 = sshll.u32 %s4404_s9, 4  ;;  %s2960_s15 = scalar_lea.vmem %s75_s11, 16  ;;  %s85_s14 = int_to_ptr.vmem [resolvable:$true] %s84_s14 }
  0x2f   :  { %p2961_p6 = scmp.ne.s32.totalorder %s75_s11, %s2960_s15  ;;  %p2965_p7 = scmp.lt.s32.totalorder %s75_s11, %s75_s11 }
  0x30   :  { %p2966_p8 = scmp.lt.s32.totalorder %s2960_s15, %s2960_s15 }
  0x32   :  { %p2967_p9 = por %p2966_p8, %p2965_p7 }
  0x34   :  { %p2968_p10 = pnand %p2967_p9, %p2961_p6 }
  0x36   :  { %2971 = shalt.err (!%p2968_p10)
}
  0x37   :  { %s3018_s16 = smov [#allocation12]   ;;  %s2972_s17 = scalar_lea.vmem %s85_s14, 16 }
  0x38   :  { %77 = dma.vmem_to_smem %s75_s11, 16, %s3018_s16, [#allocation11]  }
  0x39   :  { %p2973_p11 = scmp.ne.s32.totalorder %s85_s14, %s2972_s17  ;;  %p2977_p12 = scmp.lt.s32.totalorder %s85_s14, %s85_s14 }
  0x3a   :  { %p2978_p13 = scmp.lt.s32.totalorder %s2972_s17, %s2972_s17 }
  0x3c   :  { %p2979_p0 = por %p2978_p13, %p2977_p12 }
  0x3e   :  { %p2980_p1 = pnand %p2979_p0, %p2973_p11 }
  0x40   :  { %2983 = shalt.err (!%p2980_p1)
}
  0x41   :  { %s3019_s8 = smov [#allocation13]  }
  0x42   :  { %87 = dma.vmem_to_smem %s85_s14, 16, %s3019_s8, [#allocation14]  }
  0x43   :  { %3004 = dma.done.wait [#allocation6], 16  }
  0x44   :  { %3005 = vsyncadd [#allocation6], 4294967280 }
  0x45   :  { %3006 = dma.done.wait [#allocation8], 32  }
  0x46   :  { %3007 = vsyncadd [#allocation8], 4294967264 }
  0x47   :  { %3008 = dma.done.wait [#allocation11], 32  }
  0x48   :  { %3009 = vsyncadd [#allocation11], 4294967264 }
  0x49   :  { %3010 = dma.done.wait [#allocation14], 16  }
  0x4a   :  { %3011 = vsyncadd [#allocation14], 4294967280 }
  0x4b   :  { %106 = sfence }
  0x4c   :  { %v2665_v0 = vld [vmem:[%s4396_s1 + $0x10] sm:$0xff]  ;;  %v131_v1 = vld [vmem:[%s4396_s1] sm:$0xff]  ;;  %s3020_s7 = smov 1   ;;  %vm189_vm0 = vcmask 64512   ;;  %vm111_vm1 = vcmask 293888   ;;  %v3021_v4 = vmov 0.0  }
  0x4d   :  { %v187_v2 = vld [vmem:[%s4398_s3] sm:$0xff]  ;;  %149 = vrot.lane.b32.xlu1 %v2665_v0, %s3020_s7  ;;  %135 = vrot.lane.b32.xlu0 %v131_v1, %s3020_s7  ;;  %vm3022_vm2 = vmmov 0   ;;  %v2666_v5 = vld [vmem:[%s4396_s1 + $0x18] sm:$0xff]  ;;  %116 = vst.msk [vmem:[#allocation2 + $0x18] sm:$0xff] %vm111_vm1, %v3021_v4  ;;  %117 = vst.msk [vmem:[#allocation2 + $0x20] sm:$0xff] %vm111_vm1, %v3021_v4  ;;  %vm114_vm3 = vcmask 287744  }
  0x4e   :  { %v188_v3 = vld [vmem:[%s4395_s0] sm:$0xff]  ;;  %2856 = vmatprep.subr.mxu0 %v3021_v4  ;;  %2858 = vmatprep.mubr.msk.f32.mxu0 %vm3022_vm2, %v3021_v4  ;;  %v132_v6 = vld [vmem:[%s4396_s1 + $0x8] sm:$0xff]  ;;  %112 = vst.msk [vmem:[#allocation2] sm:$0xff] %vm111_vm1, %v3021_v4  ;;  %113 = vst.msk [vmem:[#allocation2 + $0x8] sm:$0xff] %vm111_vm1, %v3021_v4  ;;  %s3023_s11 = smov 19   ;;  %vm141_vm4 = vcmask 138248  }
  0x4f   :  { %119 = vst.msk [vmem:[#allocation2 + $0x30] sm:$0xff] %vm111_vm1, %v3021_v4  ;;  %120 = vst.msk [vmem:[#allocation2 + $0x38] sm:$0xff] %vm111_vm1, %v3021_v4  ;;  %2857 = vmatpush3.msra.mxu0 %v187_v2  ;;  %v2674_v7 = vld [vmem:[%s4395_s0 + $0x8] sm:$0xff]  ;;  %v2667_v9 = vld [vmem:[%s4396_s1 + $0x20] sm:$0xff]  ;;  %vm169_vm5 = vcmask 285848   ;;  %s2689_s20 = sld [smem:[#allocation4 + $0x2]] }
  0x50   :  { %122 = vst.msk [vmem:[#allocation2 + $0x48] sm:$0xff] %vm111_vm1, %v3021_v4  ;;  %123 = vst.msk [vmem:[#allocation2 + $0x50] sm:$0xff] %vm111_vm1, %v3021_v4  ;;  %2859 = vmatmul.mubr.msk.f32.vlgmr.msra.gmra.mxu0 %vm189_vm0, %v188_v3  ;;  %2866 = vmatprep.subr.mxu0 %v3021_v4  ;;  %v2668_v8 = vld [vmem:[%s4396_s1 + $0x28] sm:$0xff]  ;;  %v2678_v10 = vld [vmem:[%s4395_s0 + $0x10] sm:$0xff]  ;;  %s2690_s21 = sld [smem:[#allocation4 + $0x26]]  ;;  %s3024_s5 = smov 127  }
  0x51   :  { %125 = vst.msk [vmem:[#allocation3] sm:$0xff] %vm111_vm1, %v3021_v4  ;;  %126 = vst.msk [vmem:[#allocation3 + $0x8] sm:$0xff] %vm111_vm1, %v3021_v4  ;;  %151 = vrot.lane.b32.xlu1 %v2666_v5, %s3020_s7  ;;  %137 = vrot.lane.b32.xlu0 %v132_v6, %s3020_s7  ;;  %v2670_v11 = vld [vmem:[%s4396_s1 + $0x38] sm:$0xff]  ;;  %v2669_v12 = vld [vmem:[%s4396_s1 + $0x30] sm:$0xff]  ;;  %s2688_s1 = sld [smem:[#allocation4 + $0x25]]  ;;  %s3025_s24 = smov 126  }
  0x52   :  { %128 = vst.msk [vmem:[#allocation3 + $0x18] sm:$0xff] %vm111_vm1, %v3021_v4  ;;  %129 = vst.msk [vmem:[#allocation3 + $0x20] sm:$0xff] %vm111_vm1, %v3021_v4  ;;  %2867 = vmatpush3.msra.mxu0 %v187_v2  ;;  %2868 = vmatprep.mubr.msk.f32.mxu0 %vm3022_vm2, %v3021_v4  ;;  %v2682_v13 = vld [vmem:[%s4395_s0 + $0x18] sm:$0xff]  ;;  %v3173_v14 = vld [vmem:[%s4397_s2] sm:$0xff]  ;;  %s2687_s0 = sld [smem:[#allocation4 + $0x1]]  ;;  %vm2559_vm6 = vcmask 130048  }
  0x53   :  { %118 = vst.msk [vmem:[#allocation2 + $0x28] sm:$0x3] %vm114_vm3, %v3021_v4  ;;  %115 = vst.msk [vmem:[#allocation2 + $0x10] sm:$0x3] %vm114_vm3, %v3021_v4  ;;  %2876 = vmatprep.subr.mxu0 %v3021_v4  ;;  %2863 = vmatprep.mubr.msk.f32.mxu1 %vm189_vm0, %v3173_v14  ;;  %s2693_s22 = sld [smem:[#allocation4 + $0x4]] }
  0x54   :  { %121 = vst.msk [vmem:[#allocation2 + $0x40] sm:$0x3] %vm114_vm3, %v3021_v4  ;;  %124 = vst.msk [vmem:[#allocation2 + $0x58] sm:$0x3] %vm114_vm3, %v3021_v4  ;;  %2869 = vmatmul.mubr.msk.f32.vlgmr.msra.gmra.mxu0 %vm189_vm0, %v2674_v7  ;;  %s2694_s23 = sld [smem:[#allocation4 + $0x28]] }
  0x55   :  { %127 = vst.msk [vmem:[#allocation3 + $0x10] sm:$0x3] %vm114_vm3, %v3021_v4  ;;  %130 = vst.msk [vmem:[#allocation3 + $0x28] sm:$0x3] %vm114_vm3, %v3021_v4  ;;  %165 = vrot.lane.b32.xlu1 %v2668_v8, %s3023_s11  ;;  %163 = vrot.lane.b32.xlu0 %v2667_v9, %s3023_s11  ;;  %v879_v31 = vstv %s2689_s20  ;;  %s2695_s25 = sld [smem:[#allocation4 + $0x5]] }
  0x56   :  { %2877 = vmatpush3.msra.mxu0 %v187_v2  ;;  %2878 = vmatprep.mubr.msk.f32.mxu0 %vm3022_vm2, %v3021_v4  ;;  %v893_v34 = vstv %s2690_s21  ;;  %s2696_s3 = sld [smem:[#allocation4 + $0x29]] }
  0x57   :  { %2886 = vmatprep.subr.mxu0 %v3021_v4  ;;  %v865_v26 = vstv %s2688_s1  ;;  %s2699_s26 = sld [smem:[#allocation4 + $0x7]] }
  0x58   :  { %2879 = vmatmul.mubr.msk.f32.vlgmr.msra.gmra.mxu0 %vm189_vm0, %v2678_v10  ;;  %v851_v23 = vstv %s2687_s0  ;;  %s2700_s27 = sld [smem:[#allocation4 + $0x2b]] }
  0x59   :  { %2887 = vmatpush3.msra.mxu0 %v187_v2  ;;  %2888 = vmatprep.mubr.msk.f32.mxu0 %vm3022_vm2, %v3021_v4  ;;  %v921_v38 = vstv %s2693_s22  ;;  %s2701_s28 = sld [smem:[#allocation4 + $0x8]] }
  0x5a   :  { %179 = vrot.lane.b32.xlu1 %v2670_v11, %s3023_s11  ;;  %177 = vrot.lane.b32.xlu0 %v2669_v12, %s3023_s11  ;;  %v935_v42 = vstv %s2694_s23  ;;  %s2702_s29 = sld [smem:[#allocation4 + $0x2c]] }
  0x5b   :  { %v949_v45 = vstv %s2695_s25  ;;  %s2705_s4 = sld [smem:[#allocation4 + $0xa]] }
  0x5c   :  { %2889 = vmatmul.mubr.msk.f32.vlgmr.msra.gmra.mxu0 %vm189_vm0, %v2682_v13  ;;  %v963_v48 = vstv %s2696_s3  ;;  %s2706_s6 = sld [smem:[#allocation4 + $0x2e]] }
  0x5d   :  { %v991_v52 = vstv %s2699_s26  ;;  %s2707_s30 = sld [smem:[#allocation4 + $0xb]] }
  0x5e   :  { %v1005_v56 = vstv %s2700_s27  ;;  %s2708_s12 = sld [smem:[#allocation4 + $0x2f]] }
  0x5f   :  { %v1019_v59 = vstv %s2701_s28  ;;  %s2711_s13 = sld [smem:[#allocation4 + $0xd]] }
  0x60   :  { %v1033_v62 = vstv %s2702_s29  ;;  %s2712_s14 = sld [smem:[#allocation4 + $0x31]] }
  0x61   :  { %v1061_v2 = vstv %s2705_s4  ;;  %s3265_s15 = sld [smem:[#allocation4 + $0xe]] }
  0x62   :  { %v1075_v6 = vstv %s2706_s6  ;;  %s3273_s16 = sld [smem:[#allocation4 + $0x10]] }
  0x63   :  { %v1089_v9 = vstv %s2707_s30  ;;  %s3278_s9 = sld [smem:[#allocation4 + $0x32]] }
  0x64   :  { %v1103_v12 = vstv %s2708_s12  ;;  %s3286_s18 = sld [smem:[#allocation4 + $0x11]] }
  0x65   :  { %s2720_s19 = sld [smem:[#allocation4 + $0x35]] }
  0x66   :  { %s838_s0 = sld [smem:[#allocation4]] }
  0x67   :  { %s2686_s1 = sld [smem:[#allocation4 + $0x24]] }
  0x68   :  { %s2691_s20 = sld [smem:[#allocation4 + $0x3]] }
  0x69   :  { %s2692_s21 = sld [smem:[#allocation4 + $0x27]] }
  0x6a   :  { %s2697_s22 = sld [smem:[#allocation4 + $0x6]] }
  0x6b   :  { %s2698_s23 = sld [smem:[#allocation4 + $0x2a]] }
  0x6c   :  { %s2703_s25 = sld [smem:[#allocation4 + $0x9]] }
  0x6d   :  { %s2704_s3 = sld [smem:[#allocation4 + $0x2d]] }
  0x6e   :  { %s2709_s26 = sld [smem:[#allocation4 + $0xc]] }
  0x6f   :  { %s2710_s27 = sld [smem:[#allocation4 + $0x30]] }
  0x70   :  { %s2715_s28 = sld [smem:[#allocation4 + $0xf]] }
  0x71   :  { %s2716_s29 = sld [smem:[#allocation4 + $0x33]] }
  0x72   :  { %s3381_s4 = sld [smem:[#allocation4 + $0x17]] }
  0x73   :  { %s3387_s6 = sld [smem:[#allocation4 + $0x19]] }
  0x74   :  { %s3389_s30 = sld [smem:[#allocation4 + $0x13]] }
  0x75   :  { %s3392_s12 = sld [smem:[#allocation4 + $0x1a]] }
  0x76   :  { %s3426_s17 = sld [smem:[#allocation4 + $0x3b]] }
  0x77   :  { %s3438_s8 = sld [smem:[#allocation4 + $0x3d]] }
  0xbf   :  { %v150_v15 = vpop.permute.xlu1 %149  ;;  %v136_v16 = vpop.permute.xlu0 %135 }
  0xc0   :  { %156 = vst.msk [vmem:[#allocation2 + $0x19] sm:$0xff] %vm141_vm4, %v150_v15  ;;  %142 = vst.msk [vmem:[#allocation2 + $0x1] sm:$0xff] %vm141_vm4, %v136_v16 }
  0xc3   :  { %v152_v17 = vpop.permute.xlu1 %151  ;;  %v138_v18 = vpop.permute.xlu0 %137 }
  0xc4   :  { %157 = vst.msk [vmem:[#allocation2 + $0x21] sm:$0xff] %vm141_vm4, %v152_v17  ;;  %143 = vst.msk [vmem:[#allocation2 + $0x9] sm:$0xff] %vm141_vm4, %v138_v18  ;;  %v1131_v17 = vstv %s2711_s13  ;;  %s3397_s13 = sld [smem:[#allocation4 + $0x14]] }
  0xc7   :  { %v166_v19 = vpop.permute.xlu1 %165  ;;  %v164_v20 = vpop.permute.xlu0 %163 }
  0xc8   :  { %171 = vst.msk [vmem:[#allocation2 + $0x9] sm:$0xff] %vm169_vm5, %v166_v19  ;;  %170 = vst.msk [vmem:[#allocation2 + $0x1] sm:$0xff] %vm169_vm5, %v164_v20 }
  0xcc   :  { %v180_v21 = vpop.permute.xlu1 %179  ;;  %v178_v22 = vpop.permute.xlu0 %177 }
  0xcd   :  { %184 = vst.msk [vmem:[#allocation2 + $0x21] sm:$0xff] %vm169_vm5, %v180_v21  ;;  %183 = vst.msk [vmem:[#allocation2 + $0x19] sm:$0xff] %vm169_vm5, %v178_v22  ;;  %v1145_v21 = vstv %s2712_s14  ;;  %s3406_s14 = sld [smem:[#allocation4 + $0x3a]] }
  0xcf   :  { %v3185_v24 = vld [vmem:[#allocation2 + $0x8] sm:$0xff]  ;;  %v3187_v25 = vld [vmem:[#allocation2] sm:$0xff] }
  0xd0   :  { %v853_v27 = vmul.f32 %v851_v23, %v3185_v24  ;;  %v852_v28 = vmul.f32 %v851_v23, %v3187_v25  ;;  %v867_v29 = vmul.f32 %v865_v26, %v3185_v24  ;;  %v866_v30 = vmul.f32 %v865_v26, %v3187_v25  ;;  %v3203_v37 = vld [vmem:[#allocation2 + $0x9] sm:$0xff]  ;;  %v3205_v39 = vld [vmem:[#allocation2 + $0x1] sm:$0xff] }
  0xd1   :  { %v881_v32 = vmul.f32 %v879_v31, %v3185_v24  ;;  %v880_v33 = vmul.f32 %v879_v31, %v3187_v25  ;;  %v895_v35 = vmul.f32 %v893_v34, %v3185_v24  ;;  %v894_v36 = vmul.f32 %v893_v34, %v3187_v25  ;;  %v3223_v51 = vld [vmem:[#allocation2 + $0xa] sm:$0xff]  ;;  %v3225_v53 = vld [vmem:[#allocation2 + $0x2] sm:$0xff] }
  0xd2   :  { %858 = vrot.lane.b32.xlu1 %v853_v27, %s3024_s5  ;;  %856 = vrot.lane.b32.xlu0 %v852_v28, %s3024_s5  ;;  %v923_v40 = vmul.f32 %v921_v38, %v3203_v37  ;;  %v922_v41 = vmul.f32 %v921_v38, %v3205_v39  ;;  %v937_v43 = vmul.f32 %v935_v42, %v3203_v37  ;;  %v186_v23 = vld [vmem:[%s4397_s2 + $0x8] sm:$0xff]  ;;  %v1173_v38 = vstv %s3278_s9  ;;  %s2718_s2 = sld [smem:[#allocation4 + $0x34]] }
  0xd3   :  { %v936_v44 = vmul.f32 %v935_v42, %v3205_v39  ;;  %v951_v46 = vmul.f32 %v949_v45, %v3203_v37  ;;  %v950_v47 = vmul.f32 %v949_v45, %v3205_v39  ;;  %v965_v49 = vmul.f32 %v963_v48, %v3203_v37  ;;  %s3449_s9 = sld [smem:[#allocation4 + $0x3e]] }
  0xd4   :  { %v964_v50 = vmul.f32 %v963_v48, %v3205_v39  ;;  %v993_v54 = vmul.f32 %v991_v52, %v3223_v51  ;;  %v992_v55 = vmul.f32 %v991_v52, %v3225_v53  ;;  %v1007_v57 = vmul.f32 %v1005_v56, %v3223_v51  ;;  %v3243_v1 = vld [vmem:[#allocation2 + $0x20] sm:$0xff]  ;;  %v3245_v3 = vld [vmem:[#allocation2 + $0x18] sm:$0xff] }
  0xd5   :  { %v1006_v58 = vmul.f32 %v1005_v56, %v3225_v53  ;;  %v1021_v60 = vmul.f32 %v1019_v59, %v3223_v51  ;;  %v1020_v61 = vmul.f32 %v1019_v59, %v3225_v53  ;;  %v1035_v63 = vmul.f32 %v1033_v62, %v3223_v51  ;;  %v3263_v16 = vld [vmem:[#allocation2 + $0x21] sm:$0xff]  ;;  %v3267_v18 = vld [vmem:[#allocation2 + $0x19] sm:$0xff] }
  0xd6   :  { %872 = vrot.lane.b32.xlu1 %v867_v29, %s3024_s5  ;;  %870 = vrot.lane.b32.xlu0 %v866_v30, %s3024_s5  ;;  %v1034_v0 = vmul.f32 %v1033_v62, %v3225_v53  ;;  %v1063_v4 = vmul.f32 %v1061_v2, %v3243_v1  ;;  %v1062_v5 = vmul.f32 %v1061_v2, %v3245_v3  ;;  %v1159_v29 = vstv %s3265_s15  ;;  %v3295_v34 = vld [vmem:[#allocation2 + $0x1a] sm:$0xff]  ;;  %s3414_s15 = sld [smem:[#allocation4 + $0x12]] }
  0xd7   :  { %v1077_v7 = vmul.f32 %v1075_v6, %v3243_v1  ;;  %v1076_v8 = vmul.f32 %v1075_v6, %v3245_v3  ;;  %v1091_v10 = vmul.f32 %v1089_v9, %v3243_v1  ;;  %v1090_v11 = vmul.f32 %v1089_v9, %v3245_v3 }
  0xd8   :  { %v1105_v13 = vmul.f32 %v1103_v12, %v3243_v1  ;;  %v1104_v15 = vmul.f32 %v1103_v12, %v3245_v3  ;;  %v1133_v19 = vmul.f32 %v1131_v17, %v3263_v16  ;;  %v1132_v20 = vmul.f32 %v1131_v17, %v3267_v18 }
  0xd9   :  { %v1147_v27 = vmul.f32 %v1145_v21, %v3263_v16  ;;  %v1146_v28 = vmul.f32 %v1145_v21, %v3267_v18  ;;  %v1174_v42 = vmul.f32 %v1173_v38, %v3267_v18 }
  0xda   :  { %886 = vrot.lane.b32.xlu1 %v881_v32, %s3025_s24  ;;  %884 = vrot.lane.b32.xlu0 %v880_v33, %s3025_s24  ;;  %v1161_v32 = vmul.f32 %v1159_v29, %v3263_v16  ;;  %v1160_v33 = vmul.f32 %v1159_v29, %v3267_v18 }
  0xde   :  { %900 = vrot.lane.b32.xlu1 %v895_v35, %s3025_s24  ;;  %898 = vrot.lane.b32.xlu0 %v894_v36, %s3025_s24  ;;  %v1201_v35 = vstv %s3273_s16  ;;  %s3418_s16 = sld [smem:[#allocation4 + $0x36]] }
  0xe2   :  { %928 = vrot.lane.b32.xlu1 %v923_v40, %s3024_s5  ;;  %926 = vrot.lane.b32.xlu0 %v922_v41, %s3024_s5  ;;  %v1202_v41 = vmul.f32 %v1201_v35, %v3295_v34 }
  0xe6   :  { %942 = vrot.lane.b32.xlu1 %v937_v43, %s3024_s5  ;;  %940 = vrot.lane.b32.xlu0 %v936_v44, %s3024_s5  ;;  %v1229_v43 = vstv %s3286_s18  ;;  %v3307_v44 = vld [vmem:[#allocation2 + $0x22] sm:$0xff]  ;;  %s3456_s18 = sld [smem:[#allocation4 + $0x37]] }
  0xe7   :  { %v1203_v48 = vmul.f32 %v1201_v35, %v3307_v44 }
  0xea   :  { %956 = vrot.lane.b32.xlu1 %v951_v46, %s3025_s24  ;;  %954 = vrot.lane.b32.xlu0 %v950_v47, %s3025_s24  ;;  %v1230_v46 = vmul.f32 %v1229_v43, %v3295_v34 }
  0xee   :  { %970 = vrot.lane.b32.xlu1 %v965_v49, %s3025_s24  ;;  %968 = vrot.lane.b32.xlu0 %v964_v50, %s3025_s24  ;;  %v1175_v49 = vmul.f32 %v1173_v38, %v3263_v16  ;;  %v1215_v50 = vstv %s2718_s2  ;;  %s3471_s2 = sld [smem:[#allocation4 + $0x38]] }
  0xef   :  { %v1217_v52 = vmul.f32 %v1215_v50, %v3307_v44 }
  0xf2   :  { %998 = vrot.lane.b32.xlu1 %v993_v54, %s3024_s5  ;;  %996 = vrot.lane.b32.xlu0 %v992_v55, %s3024_s5  ;;  %v1216_v54 = vmul.f32 %v1215_v50, %v3295_v34  ;;  %v1243_v55 = vstv %s2720_s19  ;;  %s3494_s19 = sld [smem:[#allocation4 + $0x1f]] }
  0xf3   :  { %v1245_v56 = vmul.f32 %v1243_v55, %v3307_v44 }
  0xf6   :  { %1012 = vrot.lane.b32.xlu1 %v1007_v57, %s3024_s5  ;;  %1010 = vrot.lane.b32.xlu0 %v1006_v58, %s3024_s5  ;;  %v1244_v57 = vmul.f32 %v1243_v55, %v3295_v34  ;;  %v839_v58 = vstv %s838_s0  ;;  %s3496_s0 = sld [smem:[#allocation4 + $0x1c]] }
  0xf7   :  { %v840_v62 = vmul.f32 %v839_v58, %v3187_v25 }
  0xfa   :  { %1026 = vrot.lane.b32.xlu1 %v1021_v60, %s3025_s24  ;;  %1024 = vrot.lane.b32.xlu0 %v1020_v61, %s3025_s24  ;;  %v841_v61 = vmul.f32 %v839_v58, %v3185_v24 }
  0xfe   :  { %1040 = vrot.lane.b32.xlu1 %v1035_v63, %s3025_s24  ;;  %1038 = vrot.lane.b32.xlu0 %v1034_v0, %s3025_s24  ;;  %v845_v63 = vstv %s2686_s1  ;;  %s3506_s1 = sld [smem:[#allocation4 + $0x20]] }
 0x102   :  { %1068 = vrot.lane.b32.xlu1 %v1063_v4, %s3024_s5  ;;  %1066 = vrot.lane.b32.xlu0 %v1062_v5, %s3024_s5  ;;  %v909_v4 = vstv %s2691_s20  ;;  %s3508_s20 = sld [smem:[#allocation4 + $0x1d]] }
 0x103   :  { %v911_v9 = vmul.f32 %v909_v4, %v3203_v37 }
 0x106   :  { %1082 = vrot.lane.b32.xlu1 %v1077_v7, %s3024_s5  ;;  %1080 = vrot.lane.b32.xlu0 %v1076_v8, %s3024_s5  ;;  %v847_v7 = vmul.f32 %v845_v63, %v3185_v24  ;;  %v846_v8 = vmul.f32 %v845_v63, %v3187_v25 }
 0x10a   :  { %1096 = vrot.lane.b32.xlu1 %v1091_v10, %s3025_s24  ;;  %1094 = vrot.lane.b32.xlu0 %v1090_v11, %s3025_s24  ;;  %v910_v10 = vmul.f32 %v909_v4, %v3205_v39 }
 0x10e   :  { %1110 = vrot.lane.b32.xlu1 %v1105_v13, %s3025_s24  ;;  %1108 = vrot.lane.b32.xlu0 %v1104_v15, %s3025_s24  ;;  %v915_v13 = vstv %s2692_s21  ;;  %s3520_s21 = sld [smem:[#allocation4 + $0x22]] }
 0x110   :  { %v259_v22 = vpop.f32.mrf.mxu0 }
 0x111   :  { %2861 = vmatprep.subr.mxu1 %v259_v22 }
 0x112   :  { %v2860_v26 = vpop.f32.mrf.mxu0  ;;  %2862 = vmatpush3.msra.mxu1 %v259_v22  ;;  %1138 = vrot.lane.b32.xlu1 %v1133_v19, %s3024_s5 }
 0x113   :  { %2864 = vmatmul.mubr.msk.f32.vlgmr.msra.gmra.mxu1 %vm189_vm0, %v186_v23  ;;  %1136 = vrot.lane.b32.xlu0 %v1132_v20, %s3024_s5  ;;  %v916_v26 = vmul.f32 %v915_v13, %v3205_v39 }
 0x114   :  { %v426_v30 = vpop.f32.mrf.mxu0  ;;  %2873 = vmatprep.mubr.msk.f32.mxu1 %vm189_vm0, %v3173_v14 }
 0x115   :  { %2871 = vmatprep.subr.mxu1 %v426_v30 }
 0x116   :  { %v2870_v31 = vpop.f32.mrf.mxu0  ;;  %2872 = vmatpush3.msra.mxu1 %v426_v30  ;;  %1152 = vrot.lane.b32.xlu1 %v1147_v27, %s3024_s5 }
 0x117   :  { %2874 = vmatmul.mubr.msk.f32.vlgmr.msra.gmra.mxu1 %vm189_vm0, %v186_v23  ;;  %1150 = vrot.lane.b32.xlu0 %v1146_v28, %s3024_s5 }
 0x118   :  { %v587_v36 = vpop.f32.mrf.mxu0  ;;  %2883 = vmatprep.mubr.msk.f32.mxu1 %vm189_vm0, %v3173_v14 }
 0x119   :  { %2881 = vmatprep.subr.mxu1 %v587_v36 }
 0x11a   :  { %v2880_v40 = vpop.f32.mrf.mxu0  ;;  %2882 = vmatpush3.msra.mxu1 %v587_v36  ;;  %1166 = vrot.lane.b32.xlu1 %v1161_v32, %s3025_s24  ;;  %v979_v36 = vstv %s2697_s22  ;;  %s3528_s22 = sld [smem:[#allocation4 + $0x23]] }
 0x11b   :  { %2884 = vmatmul.mubr.msk.f32.vlgmr.msra.gmra.mxu1 %vm189_vm0, %v186_v23  ;;  %1164 = vrot.lane.b32.xlu0 %v1160_v33, %s3025_s24 }
 0x11c   :  { %v747_v45 = vpop.f32.mrf.mxu0  ;;  %2893 = vmatprep.mubr.msk.f32.mxu1 %vm189_vm0, %v3173_v14  ;;  %v1231_v14 = vmul.f32 %v1229_v43, %v3307_v44  ;;  %v985_v43 = vstv %s2698_s23  ;;  %s3539_s23 = sld [smem:[#allocation4 + $0x43]] }
 0x11d   :  { %2891 = vmatprep.subr.mxu1 %v747_v45  ;;  %v987_v50 = vmul.f32 %v985_v43, %v3223_v51 }
 0x11e   :  { %1206 = vrot.lane.b32.xlu1 %v1202_v41, %s3024_s5  ;;  %v2890_v47 = vpop.f32.mrf.mxu0  ;;  %2892 = vmatpush3.msra.mxu1 %v747_v45  ;;  %v981_v41 = vmul.f32 %v979_v36, %v3223_v51 }
 0x11f   :  { %1178 = vrot.lane.b32.xlu0 %v1174_v42, %s3025_s24  ;;  %2894 = vmatmul.mubr.msk.f32.vlgmr.msra.gmra.mxu1 %vm189_vm0, %v186_v23  ;;  %v917_v23 = vmul.f32 %v915_v13, %v3203_v37  ;;  %v980_v37 = vmul.f32 %v979_v36, %v3225_v53 }
 0x122   :  { %1234 = vrot.lane.b32.xlu1 %v1230_v46, %s3025_s24 }
 0x123   :  { %1208 = vrot.lane.b32.xlu0 %v1203_v48, %s3024_s5 }
 0x126   :  { %1180 = vrot.lane.b32.xlu1 %v1175_v49, %s3025_s24 }
 0x127   :  { %1236 = vrot.lane.b32.xlu0 %v1231_v14, %s3025_s24 }
 0x12a   :  { %1222 = vrot.lane.b32.xlu1 %v1217_v52, %s3024_s5  ;;  %v986_v52 = vmul.f32 %v985_v43, %v3225_v53 }
 0x12b   :  { %1220 = vrot.lane.b32.xlu0 %v1216_v54, %s3024_s5 }
 0x12e   :  { %1250 = vrot.lane.b32.xlu1 %v1245_v56, %s3025_s24 }
 0x12f   :  { %1248 = vrot.lane.b32.xlu0 %v1244_v57, %s3025_s24 }
 0x144   :  { %v859_v59 = vpop.permute.xlu1 %858  ;;  %v857_v60 = vpop.permute.xlu0 %856 }
 0x145   :  { %v863_v5 = vadd.f32 %v859_v59, %v841_v61  ;;  %v862_v6 = vadd.f32 %v857_v60, %v840_v62 }
 0x148   :  { %v873_v0 = vpop.permute.xlu1 %872  ;;  %v871_v2 = vpop.permute.xlu0 %870 }
 0x149   :  { %v877_v15 = vadd.f32 %v873_v0, %v847_v7  ;;  %v876_v17 = vadd.f32 %v871_v2, %v846_v8  ;;  %v1049_v0 = vstv %s2703_s25  ;;  %v1055_v7 = vstv %s2704_s3  ;;  %s3546_s25 = sld [smem:[#allocation4 + $0x44]] }
 0x14a   :  { %v1050_v51 = vmul.f32 %v1049_v0, %v3245_v3  ;;  %s3552_s3 = sld [smem:[#allocation4 + $0x46]] }
 0x14c   :  { %v887_v11 = vpop.permute.xlu1 %886  ;;  %v885_v12 = vpop.permute.xlu0 %884 }
 0x14d   :  { %v891_v19 = vadd.f32 %v887_v11, %v863_v5  ;;  %v890_v20 = vadd.f32 %v885_v12, %v862_v6  ;;  %v1051_v5 = vmul.f32 %v1049_v0, %v3243_v1 }
 0x14f   :  { %v913_v21 = vadd.f32 %v911_v9, %v891_v19  ;;  %v912_v22 = vadd.f32 %v910_v10, %v890_v20 }
 0x150   :  { %v901_v24 = vpop.permute.xlu1 %900  ;;  %v899_v27 = vpop.permute.xlu0 %898 }
 0x151   :  { %v905_v25 = vadd.f32 %v901_v24, %v877_v15  ;;  %v904_v28 = vadd.f32 %v899_v27, %v876_v17  ;;  %v1057_v15 = vmul.f32 %v1055_v7, %v3243_v1  ;;  %v1056_v17 = vmul.f32 %v1055_v7, %v3245_v3 }
 0x152   :  { %v1125_v3 = vstv %s2710_s27  ;;  %s3563_s27 = sld [smem:[#allocation4 + $0x47]] }
 0x153   :  { %v919_v29 = vadd.f32 %v917_v23, %v905_v25  ;;  %v918_v30 = vadd.f32 %v916_v26, %v904_v28 }
 0x154   :  { %v929_v31 = vpop.permute.xlu1 %928  ;;  %v927_v32 = vpop.permute.xlu0 %926 }
 0x155   :  { %v933_v38 = vadd.f32 %v929_v31, %v913_v21  ;;  %v932_v40 = vadd.f32 %v927_v32, %v912_v22 }
 0x158   :  { %v943_v33 = vpop.permute.xlu1 %942  ;;  %v941_v35 = vpop.permute.xlu0 %940 }
 0x159   :  { %v947_v45 = vadd.f32 %v943_v33, %v919_v29  ;;  %v946_v46 = vadd.f32 %v941_v35, %v918_v30  ;;  %v1119_v29 = vstv %s2709_s26  ;;  %s3557_s26 = sld [smem:[#allocation4 + $0x40]] }
 0x15a   :  { %v1121_v32 = vmul.f32 %v1119_v29, %v3263_v16  ;;  %v1120_v1 = vmul.f32 %v1119_v29, %v3267_v18 }
 0x15c   :  { %v957_v39 = vpop.permute.xlu1 %956  ;;  %v955_v42 = vpop.permute.xlu0 %954 }
 0x15d   :  { %v961_v47 = vadd.f32 %v957_v39, %v933_v38  ;;  %v960_v48 = vadd.f32 %v955_v42, %v932_v40  ;;  %v1127_v40 = vmul.f32 %v1125_v3, %v3263_v16 }
 0x15f   :  { %v983_v49 = vadd.f32 %v981_v41, %v961_v47  ;;  %v982_v14 = vadd.f32 %v980_v37, %v960_v48  ;;  %v1126_v41 = vmul.f32 %v1125_v3, %v3267_v18 }
 0x160   :  { %v971_v54 = vpop.permute.xlu1 %970  ;;  %v969_v55 = vpop.permute.xlu0 %968 }
 0x161   :  { %v975_v56 = vadd.f32 %v971_v54, %v947_v45  ;;  %v974_v57 = vadd.f32 %v969_v55, %v946_v46  ;;  %v1189_v55 = vstv %s2715_s28  ;;  %s3566_s28 = sld [smem:[#allocation4 + $0x41]] }
 0x162   :  { %v1191_v18 = vmul.f32 %v1189_v55, %v3307_v44 }
 0x163   :  { %v989_v58 = vadd.f32 %v987_v50, %v975_v56  ;;  %v988_v59 = vadd.f32 %v986_v52, %v974_v57 }
 0x164   :  { %v999_v60 = vpop.permute.xlu1 %998  ;;  %v997_v61 = vpop.permute.xlu0 %996 }
 0x165   :  { %v1003_v2 = vadd.f32 %v999_v60, %v983_v49  ;;  %v1002_v4 = vadd.f32 %v997_v61, %v982_v14 }
 0x168   :  { %v1013_v62 = vpop.permute.xlu1 %1012  ;;  %v1011_v63 = vpop.permute.xlu0 %1010 }
 0x169   :  { %v1017_v8 = vadd.f32 %v1013_v62, %v989_v58  ;;  %v1016_v9 = vadd.f32 %v1011_v63, %v988_v59  ;;  %v1190_v59 = vmul.f32 %v1189_v55, %v3295_v34  ;;  %v1195_v62 = vstv %s2716_s29  ;;  %s3604_s29 = sld [smem:[#allocation4 + $0x15]] }
 0x16a   :  { %v1355_v55 = vstv %s3406_s14  ;;  %s3652_s14 = sld [smem:[#allocation4 + $0x21]] }
 0x16c   :  { %v1027_v53 = vpop.permute.xlu1 %1026  ;;  %v1025_v6 = vpop.permute.xlu0 %1024 }
 0x16d   :  { %v1031_v10 = vadd.f32 %v1027_v53, %v1003_v2  ;;  %v1030_v11 = vadd.f32 %v1025_v6, %v1002_v4 }
 0x16f   :  { %v1053_v12 = vadd.f32 %v1051_v5, %v1031_v10  ;;  %v1052_v13 = vadd.f32 %v1050_v51, %v1030_v11  ;;  %v1196_v51 = vmul.f32 %v1195_v62, %v3295_v34  ;;  %v1197_v10 = vmul.f32 %v1195_v62, %v3307_v44 }
 0x170   :  { %v1041_v19 = vpop.permute.xlu1 %1040  ;;  %v1039_v20 = vpop.permute.xlu0 %1038 }
 0x171   :  { %v1045_v21 = vadd.f32 %v1041_v19, %v1017_v8  ;;  %v1044_v22 = vadd.f32 %v1039_v20, %v1016_v9 }
 0x173   :  { %v1059_v23 = vadd.f32 %v1057_v15, %v1045_v21  ;;  %v1058_v26 = vadd.f32 %v1056_v17, %v1044_v22 }
 0x174   :  { %v1069_v24 = vpop.permute.xlu1 %1068  ;;  %v1067_v27 = vpop.permute.xlu0 %1066 }
 0x175   :  { %v1073_v30 = vadd.f32 %v1069_v24, %v1053_v12  ;;  %v1072_v31 = vadd.f32 %v1067_v27, %v1052_v13 }
 0x178   :  { %v1083_v25 = vpop.permute.xlu1 %1082  ;;  %v1081_v28 = vpop.permute.xlu0 %1080 }
 0x179   :  { %v1087_v37 = vadd.f32 %v1083_v25, %v1059_v23  ;;  %v1086_v39 = vadd.f32 %v1081_v28, %v1058_v26 }
 0x17c   :  { %v1097_v33 = vpop.permute.xlu1 %1096  ;;  %v1095_v35 = vpop.permute.xlu0 %1094 }
 0x17d   :  { %v1101_v36 = vadd.f32 %v1097_v33, %v1073_v30  ;;  %v1100_v38 = vadd.f32 %v1095_v35, %v1072_v31  ;;  %v1369_v35 = vstv %s3381_s4  ;;  %s3606_s4 = sld [smem:[#allocation4 + $0x18]] }
 0x17f   :  { %v1123_v42 = vadd.f32 %v1121_v32, %v1101_v36  ;;  %v1122_v43 = vadd.f32 %v1120_v1, %v1100_v38 }
 0x180   :  { %v1111_v45 = vpop.permute.xlu1 %1110  ;;  %v1109_v46 = vpop.permute.xlu0 %1108 }
 0x181   :  { %v1115_v47 = vadd.f32 %v1111_v45, %v1087_v37  ;;  %v1114_v48 = vadd.f32 %v1109_v46, %v1086_v39  ;;  %v1271_v45 = vstv %s3389_s30  ;;  %s3631_s30 = sld [smem:[#allocation4 + $0x3c]] }
 0x183   :  { %v1129_v49 = vadd.f32 %v1127_v40, %v1115_v47  ;;  %v1128_v14 = vadd.f32 %v1126_v41, %v1114_v48  ;;  %v1439_v48 = vstv %s3392_s12  ;;  %s3636_s12 = sld [smem:[#allocation4 + $0x3f]] }
 0x184   :  { %v1139_v50 = vpop.permute.xlu1 %1138 }
 0x185   :  { %v1137_v52 = vpop.permute.xlu0 %1136  ;;  %v1143_v16 = vadd.f32 %v1139_v50, %v1123_v42  ;;  %v1411_v42 = vstv %s3387_s6  ;;  %s3622_s6 = sld [smem:[#allocation4 + $0x39]] }
 0x186   :  { %v1142_v57 = vadd.f32 %v1137_v52, %v1122_v43 }
 0x188   :  { %v1153_v54 = vpop.permute.xlu1 %1152 }
 0x189   :  { %v1151_v56 = vpop.permute.xlu0 %1150  ;;  %v1157_v9 = vadd.f32 %v1153_v54, %v1129_v49  ;;  %v1299_v49 = vstv %s3397_s13  ;;  %s3641_s13 = sld [smem:[#allocation4 + $0x1e]] }
 0x18a   :  { %v1156_v2 = vadd.f32 %v1151_v56, %v1128_v14 }
 0x18c   :  { %v1167_v58 = vpop.permute.xlu1 %1166 }
 0x18d   :  { %v1171_v60 = vadd.f32 %v1167_v58, %v1143_v16  ;;  %v1165_v61 = vpop.permute.xlu0 %1164  ;;  %v1259_v16 = vstv %s3414_s15  ;;  %s3667_s15 = sld [smem:[#allocation7]] }
 0x18e   :  { %v1170_v63 = vadd.f32 %v1165_v61, %v1142_v57  ;;  %v1265_v57 = vstv %s3418_s16  ;;  %s3670_s16 = sld [smem:[#allocation9]] }
 0x18f   :  { %v3352_v0 = vadd.f32 %v1191_v18, %v1171_v60 }
 0x190   :  { %v3354_v4 = vpop.permute.xlu1 %1206  ;;  %v3356_v5 = vadd.f32 %v1190_v59, %v1170_v63 }
 0x191   :  { %v1179_v53 = vpop.permute.xlu0 %1178 }
 0x192   :  { %v1184_v6 = vadd.f32 %v1179_v53, %v1156_v2  ;;  %v1212_v52 = vadd.f32 %v3354_v4, %v3356_v5  ;;  %v1383_v4 = vstv %s3426_s17  ;;  %s3672_s17 = sld [smem:[#allocation4 + $0x42]] }
 0x194   :  { %v3359_v7 = vpop.permute.xlu1 %1234  ;;  %v3361_v8 = vadd.f32 %v1196_v51, %v1184_v6 }
 0x195   :  { %v1209_v23 = vpop.permute.xlu0 %1208  ;;  %v1240_v58 = vadd.f32 %v3359_v7, %v1212_v52 }
 0x196   :  { %v1213_v54 = vadd.f32 %v1209_v23, %v3352_v0 }
 0x198   :  { %v1181_v11 = vpop.permute.xlu1 %1180 }
 0x199   :  { %v1185_v12 = vadd.f32 %v1181_v11, %v1157_v9  ;;  %v1237_v26 = vpop.permute.xlu0 %1236 }
 0x19a   :  { %v1241_v59 = vadd.f32 %v1237_v26, %v1213_v54 }
 0x19b   :  { %v3364_v13 = vadd.f32 %v1197_v10, %v1185_v12 }
 0x19c   :  { %v1223_v24 = vpop.permute.xlu1 %1222 }
 0x19d   :  { %v1221_v27 = vpop.permute.xlu0 %1220  ;;  %v1227_v61 = vadd.f32 %v1223_v24, %v3364_v13  ;;  %v1425_v13 = vstv %s3438_s8  ;;  %s3677_s8 = sld [smem:[#allocation4 + $0x45]] }
 0x19e   :  { %v1226_v60 = vadd.f32 %v1221_v27, %v3361_v8 }
 0x1a0   :  { %v3374_v25 = vpop.permute.xlu1 %1250 }
 0x1a1   :  { %v3376_v28 = vpop.permute.xlu0 %1248  ;;  %v1255_v7 = vadd.f32 %v3374_v25, %v1227_v61  ;;  %v1495_v61 = vstv %s3557_s26  ;;  %s3767_s26 = sld [smem:[#allocation10 + $0x3a]] }
 0x1a2   :  { %v1254_v2 = vadd.f32 %v3376_v28, %v1226_v60  ;;  %v1635_v60 = vstv %s3552_s3  ;;  %s3760_s3 = sld [smem:[#allocation10 + $0x28]] }
 0x1d3   :  { %v2865_v15 = vpop.f32.mrf.mxu1 }
 0x1d4   :  { %348 = vrot.lane.b32.xlu1 %v2865_v15, %s3020_s7 }
 0x1d5   :  { %v335_v17 = vpop.f32.mrf.mxu1 }
 0x1d6   :  { %346 = vrot.lane.b32.xlu0 %v335_v17, %s3020_s7 }
 0x1d7   :  { %v2875_v34 = vpop.f32.mrf.mxu1 }
 0x1d8   :  { %509 = vrot.lane.b32.xlu1 %v2875_v34, %s3020_s7 }
 0x1d9   :  { %v496_v19 = vpop.f32.mrf.mxu1 }
 0x1da   :  { %507 = vrot.lane.b32.xlu0 %v496_v19, %s3020_s7  ;;  %v1453_v19 = vstv %s3449_s9  ;;  %s3683_s9 = sld [smem:[#allocation7 + $0x1]] }
 0x1db   :  { %v2885_v20 = vpop.f32.mrf.mxu1 }
 0x1dc   :  { %670 = vrot.lane.b32.xlu1 %v2885_v20, %s3023_s11  ;;  %v1285_v20 = vstv %s3456_s18  ;;  %s3687_s18 = sld [smem:[#allocation9 + $0x1]] }
 0x1dd   :  { %v657_v44 = vpop.f32.mrf.mxu1 }
 0x1de   :  { %668 = vrot.lane.b32.xlu0 %v657_v44, %s3023_s11 }
 0x1df   :  { %v2895_v21 = vpop.f32.mrf.mxu1 }
 0x1e0   :  { %830 = vrot.lane.b32.xlu1 %v2895_v21, %s3023_s11 }
 0x1e1   :  { %v817_v22 = vpop.f32.mrf.mxu1 }
 0x1e2   :  { %828 = vrot.lane.b32.xlu0 %v817_v22, %s3023_s11  ;;  %s3383_s11 = sld [smem:[#allocation4 + $0x16]]  ;;  %v1313_v22 = vstv %s3471_s2 }
 0x1e3   :  { %s3701_s2 = sld [smem:[#allocation10 + $0x1]] }
 0x1e8   :  { %v1341_v36 = vstv %s3383_s11  ;;  %s3611_s11 = sld [smem:[#allocation4 + $0x1b]] }
 0x246   :  { %v349_v29 = vpop.permute.xlu1 %348 }
 0x247   :  { %354 = vst.msk [vmem:[#allocation2 + $0x39] sm:$0xff] %vm141_vm4, %v349_v29 }
 0x248   :  { %v347_v30 = vpop.permute.xlu0 %346 }
 0x249   :  { %353 = vst.msk [vmem:[#allocation2 + $0x31] sm:$0xff] %vm141_vm4, %v347_v30 }
 0x24a   :  { %v510_v31 = vpop.permute.xlu1 %509 }
 0x24b   :  { %515 = vst.msk [vmem:[#allocation2 + $0x51] sm:$0xff] %vm141_vm4, %v510_v31 }
 0x24c   :  { %v508_v32 = vpop.permute.xlu0 %507 }
 0x24d   :  { %514 = vst.msk [vmem:[#allocation2 + $0x49] sm:$0xff] %vm141_vm4, %v508_v32  ;;  %v1551_v32 = vstv %s3494_s19  ;;  %s3705_s19 = sld [smem:[#allocation10 + $0x13]] }
 0x24e   :  { %v671_v1 = vpop.permute.xlu1 %670 }
 0x24f   :  { %675 = vst.msk [vmem:[#allocation2 + $0x39] sm:$0xff] %vm169_vm5, %v671_v1 }
 0x250   :  { %v669_v3 = vpop.permute.xlu0 %668 }
 0x251   :  { %674 = vst.msk [vmem:[#allocation2 + $0x31] sm:$0xff] %vm169_vm5, %v669_v3  ;;  %v1481_v3 = vstv %s3496_s0  ;;  %s3708_s0 = sld [smem:[#allocation10 + $0x25]] }
 0x252   :  { %v831_v33 = vpop.permute.xlu1 %830 }
 0x253   :  { %835 = vst.msk [vmem:[#allocation2 + $0x51] sm:$0xff] %vm169_vm5, %v831_v33 }
 0x254   :  { %v829_v38 = vpop.permute.xlu0 %828 }
 0x255   :  { %834 = vst.msk [vmem:[#allocation2 + $0x49] sm:$0xff] %vm169_vm5, %v829_v38 }
 0x256   :  { %v3400_v40 = vld [vmem:[#allocation2 + $0x39] sm:$0xff] }
 0x257   :  { %v1371_v41 = vmul.f32 %v1369_v35, %v3400_v40  ;;  %v1343_v37 = vmul.f32 %v1341_v36, %v3400_v40  ;;  %v3408_v39 = vld [vmem:[#allocation2 + $0x3a] sm:$0xff]  ;;  %v1357_v62 = vmul.f32 %v1355_v55, %v3400_v40  ;;  %v1385_v11 = vmul.f32 %v1383_v4, %v3400_v40 }
 0x258   :  { %v3411_v43 = vld [vmem:[#allocation2 + $0x38] sm:$0xff]  ;;  %v1413_v46 = vmul.f32 %v1411_v42, %v3408_v39  ;;  %v1441_v14 = vmul.f32 %v1439_v48, %v3408_v39  ;;  %v1256_v18 = vld [vmem:[#allocation2 + $0x30] sm:$0xff]  ;;  %v1427_v17 = vmul.f32 %v1425_v13, %v3408_v39  ;;  %v1455_v44 = vmul.f32 %v1453_v19, %v3408_v39 }
 0x259   :  { %1376 = vrot.lane.b32.xlu1 %v1371_v41, %s3025_s24  ;;  %1348 = vrot.lane.b32.xlu0 %v1343_v37, %s3024_s5  ;;  %v1273_v47 = vmul.f32 %v1271_v45, %v3411_v43  ;;  %v1301_v50 = vmul.f32 %v1299_v49, %v3411_v43  ;;  %v3436_v56 = vld [vmem:[#allocation2 + $0x31] sm:$0xff]  ;;  %v1261_v0 = vmul.f32 %v1259_v16, %v3411_v43  ;;  %v1579_v41 = vstv %s3506_s1  ;;  %s3719_s1 = sld [smem:[#allocation10 + $0x2]] }
 0x25a   :  { %v1370_v63 = vmul.f32 %v1369_v35, %v3436_v56  ;;  %v3454_v5 = vld [vmem:[#allocation2 + $0x32] sm:$0xff]  ;;  %v1266_v51 = vmul.f32 %v1265_v57, %v1256_v18  ;;  %v1260_v53 = vmul.f32 %v1259_v16, %v1256_v18  ;;  %v1267_v10 = vmul.f32 %v1265_v57, %v3411_v43 }
 0x25b   :  { %v3460_v6 = vadd.f32 %v1261_v0, %v1241_v59  ;;  %v1412_v12 = vmul.f32 %v1411_v42, %v3454_v5  ;;  %v1440_v34 = vmul.f32 %v1439_v48, %v3454_v5  ;;  %v1286_v21 = vmul.f32 %v1285_v20, %v1256_v18  ;;  %v3512_v31 = vld [vmem:[#allocation2 + $0x51] sm:$0xff] }
 0x25c   :  { %v3463_v8 = vadd.f32 %v1266_v51, %v1254_v2  ;;  %v3465_v9 = vadd.f32 %v1260_v53, %v1240_v58  ;;  %v3473_v15 = vadd.f32 %v1267_v10, %v1255_v7  ;;  %v1314_v23 = vmul.f32 %v1313_v22, %v1256_v18  ;;  %v3515_v1 = vld [vmem:[#allocation2 + $0x48] sm:$0xff]  ;;  %v3584_v53 = vld [vmem:[#allocation2 + $0x50] sm:$0xff] }
 0x25d   :  { %1418 = vrot.lane.b32.xlu1 %v1413_v46, %s3024_s5  ;;  %1278 = vrot.lane.b32.xlu0 %v1273_v47, %s3024_s5  ;;  %v1272_v26 = vmul.f32 %v1271_v45, %v1256_v18  ;;  %v1356_v24 = vmul.f32 %v1355_v55, %v3436_v56  ;;  %v1300_v27 = vmul.f32 %v1299_v49, %v1256_v18  ;;  %v1509_v37 = vstv %s3508_s20  ;;  %v3534_v45 = vld [vmem:[#allocation2 + $0x52] sm:$0xff]  ;;  %v3537_v47 = vld [vmem:[#allocation2 + $0x49] sm:$0xff]  ;;  %s3724_s20 = sld [smem:[#allocation10 + $0x14]] }
 0x25e   :  { %v1384_v25 = vmul.f32 %v1383_v4, %v3436_v56  ;;  %v1342_v28 = vmul.f32 %v1341_v36, %v3436_v56  ;;  %v1426_v29 = vmul.f32 %v1425_v13, %v3454_v5  ;;  %v1287_v30 = vmul.f32 %v1285_v20, %v3411_v43  ;;  %v3554_v54 = vld [vmem:[#allocation2 + $0x4a] sm:$0xff] }
 0x25f   :  { %v1454_v33 = vmul.f32 %v1453_v19, %v3454_v5  ;;  %v1315_v35 = vmul.f32 %v1313_v22, %v3411_v43  ;;  %v1553_v36 = vmul.f32 %v1551_v32, %v3512_v31  ;;  %v1482_v38 = vmul.f32 %v1481_v3, %v3515_v1 }
 0x260   :  { %v1581_v42 = vmul.f32 %v1579_v41, %v3512_v31  ;;  %v1510_v43 = vmul.f32 %v1509_v37, %v3515_v1  ;;  %v1621_v46 = vstv %s3520_s21  ;;  %v1552_v49 = vmul.f32 %v1551_v32, %v3537_v47  ;;  %s3729_s21 = sld [smem:[#allocation10 + $0x26]] }
 0x261   :  { %1446 = vrot.lane.b32.xlu1 %v1441_v14, %s3025_s24  ;;  %1306 = vrot.lane.b32.xlu0 %v1301_v50, %s3025_s24  ;;  %v1623_v48 = vmul.f32 %v1621_v46, %v3534_v45  ;;  %v1649_v14 = vstv %s3528_s22  ;;  %v1580_v52 = vmul.f32 %v1579_v41, %v3537_v47  ;;  %v1565_v55 = vstv %s3539_s23  ;;  %s3736_s22 = sld [smem:[#allocation10 + $0x38]] }
 0x262   :  { %v1651_v50 = vmul.f32 %v1649_v14, %v3534_v45  ;;  %v1567_v16 = vmul.f32 %v1565_v55, %v3512_v31  ;;  %v1622_v18 = vmul.f32 %v1621_v46, %v3554_v54  ;;  %v1593_v57 = vstv %s3546_s25  ;;  %s3743_s23 = sld [smem:[#allocation10 + $0x4]] }
 0x263   :  { %v1650_v58 = vmul.f32 %v1649_v14, %v3554_v54  ;;  %v1595_v59 = vmul.f32 %v1593_v57, %v3512_v31  ;;  %v1663_v0 = vstv %s3563_s27  ;;  %v1523_v2 = vstv %s3566_s28  ;;  %s3748_s25 = sld [smem:[#allocation10 + $0x16]] }
 0x264   :  { %v1665_v4 = vmul.f32 %v1663_v0, %v3534_v45  ;;  %v1524_v51 = vmul.f32 %v1523_v2, %v3515_v1  ;;  %v1483_v7 = vmul.f32 %v1481_v3, %v3584_v53  ;;  %v1566_v10 = vmul.f32 %v1565_v55, %v3537_v47  ;;  %s3774_s27 = sld [smem:[#allocation10 + $0x5]] }
 0x265   :  { %1362 = vrot.lane.b32.xlu1 %v1357_v62, %s3024_s5  ;;  %1374 = vrot.lane.b32.xlu0 %v1370_v63, %s3025_s24  ;;  %v1637_v62 = vmul.f32 %v1635_v60, %v3534_v45  ;;  %v1496_v63 = vmul.f32 %v1495_v61, %v3515_v1  ;;  %v1497_v13 = vmul.f32 %v1495_v61, %v3584_v53  ;;  %v1399_v3 = vstv %s3606_s4  ;;  %s3781_s28 = sld [smem:[#allocation10 + $0x17]] }
 0x266   :  { %v1664_v19 = vmul.f32 %v1663_v0, %v3554_v54  ;;  %s3795_s4 = sld [smem:[#allocation10 + $0x3b]] }
 0x269   :  { %1390 = vrot.lane.b32.xlu1 %v1385_v11, %s3025_s24  ;;  %1416 = vrot.lane.b32.xlu0 %v1412_v12, %s3024_s5  ;;  %v1511_v11 = vmul.f32 %v1509_v37, %v3584_v53  ;;  %v1594_v12 = vmul.f32 %v1593_v57, %v3537_v47  ;;  %v1469_v37 = vstv %s3611_s11  ;;  %v1335_v57 = vstv %s3622_s6  ;;  %s3802_s11 = sld [smem:[#allocation10 + $0x7]] }
 0x26a   :  { %s3811_s6 = sld [smem:[#allocation10 + $0x19]] }
 0x26d   :  { %1432 = vrot.lane.b32.xlu1 %v1427_v17, %s3024_s5  ;;  %1444 = vrot.lane.b32.xlu0 %v1440_v34, %s3025_s24  ;;  %v1636_v17 = vmul.f32 %v1635_v60, %v3554_v54  ;;  %v1525_v34 = vmul.f32 %v1523_v2, %v3584_v53 }
 0x271   :  { %1460 = vrot.lane.b32.xlu1 %v1455_v44, %s3025_s24  ;;  %1290 = vrot.lane.b32.xlu0 %v1286_v21, %s3024_s5 }
 0x275   :  { %1318 = vrot.lane.b32.xlu0 %v1314_v23, %s3025_s24  ;;  %1276 = vrot.lane.b32.xlu1 %v1272_v26, %s3024_s5  ;;  %v1329_v23 = vstv %s3604_s29  ;;  %s3788_s29 = sld [smem:[#allocation10 + $0x29]] }
 0x276   :  { %v1330_v2 = vmul.f32 %v1329_v23, %v3436_v56 }
 0x279   :  { %1360 = vrot.lane.b32.xlu0 %v1356_v24, %s3024_s5  ;;  %1304 = vrot.lane.b32.xlu1 %v1300_v27, %s3025_s24 }
 0x27d   :  { %1388 = vrot.lane.b32.xlu0 %v1384_v25, %s3025_s24  ;;  %1346 = vrot.lane.b32.xlu1 %v1342_v28, %s3024_s5  ;;  %v1331_v25 = vmul.f32 %v1329_v23, %v3400_v40 }
 0x281   :  { %1430 = vrot.lane.b32.xlu0 %v1426_v29, %s3024_s5  ;;  %1292 = vrot.lane.b32.xlu1 %v1287_v30, %s3024_s5 }
 0x285   :  { %1458 = vrot.lane.b32.xlu0 %v1454_v33, %s3025_s24  ;;  %1320 = vrot.lane.b32.xlu1 %v1315_v35, %s3025_s24 }
 0x289   :  { %1558 = vrot.lane.b32.xlu1 %v1553_v36, %s3024_s5  ;;  %1486 = vrot.lane.b32.xlu0 %v1482_v38, %s3024_s5  ;;  %v1401_v36 = vmul.f32 %v1399_v3, %v3408_v39 }
 0x28d   :  { %1586 = vrot.lane.b32.xlu1 %v1581_v42, %s3025_s24  ;;  %1514 = vrot.lane.b32.xlu0 %v1510_v43, %s3025_s24 }
 0x291   :  { %1628 = vrot.lane.b32.xlu1 %v1623_v48, %s3024_s5  ;;  %1556 = vrot.lane.b32.xlu0 %v1552_v49, %s3024_s5  ;;  %v1471_v49 = vmul.f32 %v1469_v37, %v3584_v53 }
 0x295   :  { %1656 = vrot.lane.b32.xlu1 %v1651_v50, %s3025_s24  ;;  %1584 = vrot.lane.b32.xlu0 %v1580_v52, %s3025_s24 }
 0x299   :  { %1572 = vrot.lane.b32.xlu1 %v1567_v16, %s3024_s5  ;;  %1626 = vrot.lane.b32.xlu0 %v1622_v18, %s3024_s5 }
 0x29d   :  { %1600 = vrot.lane.b32.xlu1 %v1595_v59, %s3025_s24  ;;  %1654 = vrot.lane.b32.xlu0 %v1650_v58, %s3025_s24  ;;  %v1336_v59 = vmul.f32 %v1335_v57, %v3436_v56  ;;  %v1475_v56 = vstv %s3636_s12  ;;  %s3827_s12 = sld [smem:[#allocation10 + $0x3d]] }
 0x2a1   :  { %1642 = vrot.lane.b32.xlu1 %v1637_v62, %s3024_s5  ;;  %1500 = vrot.lane.b32.xlu0 %v1496_v63, %s3024_s5 }
 0x2a5   :  { %1670 = vrot.lane.b32.xlu1 %v1665_v4, %s3025_s24  ;;  %1528 = vrot.lane.b32.xlu0 %v1524_v51, %s3025_s24 }
 0x2a9   :  { %1488 = vrot.lane.b32.xlu1 %v1483_v7, %s3024_s5  ;;  %1570 = vrot.lane.b32.xlu0 %v1566_v10, %s3024_s5  ;;  %v1405_v10 = vstv %s3631_s30  ;;  %s3820_s30 = sld [smem:[#allocation10 + $0x2b]] }
 0x2ad   :  { %1516 = vrot.lane.b32.xlu1 %v1511_v11, %s3025_s24  ;;  %1598 = vrot.lane.b32.xlu0 %v1594_v12, %s3025_s24 }
 0x2b1   :  { %1502 = vrot.lane.b32.xlu1 %v1497_v13, %s3024_s5  ;;  %1640 = vrot.lane.b32.xlu0 %v1636_v17, %s3024_s5  ;;  %v1406_v13 = vmul.f32 %v1405_v10, %v3454_v5 }
 0x2b5   :  { %1530 = vrot.lane.b32.xlu1 %v1525_v34, %s3025_s24  ;;  %1668 = vrot.lane.b32.xlu0 %v1664_v19, %s3025_s24 }
 0x2cb   :  { %v1377_v20 = vpop.permute.xlu1 %1376  ;;  %v1349_v44 = vpop.permute.xlu0 %1348 }
 0x2cf   :  { %v1419_v21 = vpop.permute.xlu1 %1418  ;;  %v1279_v22 = vpop.permute.xlu0 %1278 }
 0x2d0   :  { %v1283_v26 = vadd.f32 %v1279_v22, %v3460_v6 }
 0x2d3   :  { %v1447_v24 = vpop.permute.xlu1 %1446  ;;  %v1307_v27 = vpop.permute.xlu0 %1306 }
 0x2d4   :  { %v1311_v28 = vadd.f32 %v1307_v27, %v1283_v26  ;;  %v1337_v26 = vmul.f32 %v1335_v57, %v3400_v40  ;;  %v1407_v40 = vmul.f32 %v1405_v10, %v3408_v39  ;;  %v1477_v39 = vmul.f32 %v1475_v56, %v3584_v53 }
 0x2d6   :  { %v1333_v29 = vadd.f32 %v1331_v25, %v1311_v28  ;;  %v1470_v25 = vmul.f32 %v1469_v37, %v3515_v1 }
 0x2d7   :  { %v3613_v30 = vpop.permute.xlu1 %1362  ;;  %v1375_v32 = vpop.permute.xlu0 %1374 }
 0x2d8   :  { %v1353_v33 = vadd.f32 %v1349_v44, %v1333_v29 }
 0x2da   :  { %v1381_v35 = vadd.f32 %v1377_v20, %v1353_v33 }
 0x2db   :  { %v3617_v38 = vpop.permute.xlu1 %1390  ;;  %v1417_v6 = vpop.permute.xlu0 %1416 }
 0x2dc   :  { %v1403_v41 = vadd.f32 %v1401_v36, %v1381_v35 }
 0x2de   :  { %v1423_v42 = vadd.f32 %v1419_v21, %v1403_v41 }
 0x2df   :  { %v3620_v43 = vpop.permute.xlu1 %1432  ;;  %v1445_v46 = vpop.permute.xlu0 %1444 }
 0x2e0   :  { %v1451_v48 = vadd.f32 %v1447_v24, %v1423_v42 }
 0x2e2   :  { %v3625_v14 = vadd.f32 %v1471_v49, %v1451_v48 }
 0x2e3   :  { %v3627_v50 = vpop.permute.xlu1 %1460  ;;  %v1291_v52 = vpop.permute.xlu0 %1290 }
 0x2e4   :  { %v1296_v55 = vadd.f32 %v1291_v52, %v3463_v8 }
 0x2e7   :  { %v1277_v16 = vpop.permute.xlu1 %1276  ;;  %v1319_v18 = vpop.permute.xlu0 %1318 }
 0x2e8   :  { %v1324_v58 = vadd.f32 %v1319_v18, %v1296_v55  ;;  %v1282_v60 = vadd.f32 %v1277_v16, %v3465_v9  ;;  %v1400_v9 = vmul.f32 %v1399_v3, %v3454_v5 }
 0x2ea   :  { %v1338_v61 = vadd.f32 %v1336_v59, %v1324_v58  ;;  %v1609_v58 = vstv %s3652_s14  ;;  %s3841_s14 = sld [smem:[#allocation10 + $0x1a]] }
 0x2eb   :  { %v1305_v62 = vpop.permute.xlu1 %1304  ;;  %v1361_v63 = vpop.permute.xlu0 %1360 }
 0x2ec   :  { %v1310_v0 = vadd.f32 %v1305_v62, %v1282_v60  ;;  %v1366_v8 = vadd.f32 %v1361_v63, %v1338_v61  ;;  %v1610_v63 = vmul.f32 %v1609_v58, %v3554_v54 }
 0x2ee   :  { %v1332_v4 = vadd.f32 %v1330_v2, %v1310_v0 }
 0x2ef   :  { %v1347_v51 = vpop.permute.xlu1 %1346  ;;  %v1389_v7 = vpop.permute.xlu0 %1388 }
 0x2f0   :  { %v1352_v11 = vadd.f32 %v1347_v51, %v1332_v4  ;;  %v1394_v12 = vadd.f32 %v1389_v7, %v1366_v8  ;;  %v1677_v8 = vstv %s3667_s15  ;;  %v1681_v7 = vstv %s3670_s16  ;;  %s3848_s15 = sld [smem:[#allocation10 + $0x2c]] }
 0x2f1   :  { %s3855_s16 = sld [smem:[#allocation10 + $0x3e]] }
 0x2f2   :  { %v1380_v17 = vadd.f32 %v1375_v32, %v1352_v11  ;;  %v1408_v34 = vadd.f32 %v1406_v13, %v1394_v12  ;;  %v1476_v32 = vmul.f32 %v1475_v56, %v3515_v1 }
 0x2f3   :  { %v1293_v19 = vpop.permute.xlu1 %1292  ;;  %v1431_v20 = vpop.permute.xlu0 %1430 }
 0x2f4   :  { %v1402_v44 = vadd.f32 %v1400_v9, %v1380_v17  ;;  %v1297_v21 = vadd.f32 %v1293_v19, %v3473_v15  ;;  %v1436_v22 = vadd.f32 %v1431_v20, %v1408_v34  ;;  %v1545_v9 = vstv %s3672_s17  ;;  %s3862_s17 = sld [smem:[#allocation10 + $0xa]] }
 0x2f5   :  { %v1546_v56 = vmul.f32 %v1545_v9, %v3537_v47 }
 0x2f6   :  { %v1422_v23 = vadd.f32 %v1417_v6, %v1402_v44  ;;  %v1539_v6 = vstv %s3641_s13  ;;  %s3834_s13 = sld [smem:[#allocation10 + $0x8]] }
 0x2f7   :  { %v1321_v24 = vpop.permute.xlu1 %1320  ;;  %v1459_v27 = vpop.permute.xlu0 %1458  ;;  %v1540_v49 = vmul.f32 %v1539_v6, %v3537_v47 }
 0x2f8   :  { %v1325_v5 = vadd.f32 %v1321_v24, %v1297_v21  ;;  %v1464_v28 = vadd.f32 %v1459_v27, %v1436_v22  ;;  %v1450_v29 = vadd.f32 %v1445_v46, %v1422_v23 }
 0x2fa   :  { %v1339_v3 = vadd.f32 %v1337_v26, %v1325_v5  ;;  %v1472_v33 = vadd.f32 %v1470_v25, %v1450_v29  ;;  %v1478_v35 = vadd.f32 %v1476_v32, %v1464_v28  ;;  %v1615_v26 = vstv %s3677_s8  ;;  %s3871_s8 = sld [smem:[#allocation10 + $0x1c]] }
 0x2fb   :  { %v3648_v36 = vpop.permute.xlu1 %1558  ;;  %v1487_v15 = vpop.permute.xlu0 %1486  ;;  %v1541_v28 = vmul.f32 %v1539_v6, %v3512_v31 }
 0x2fc   :  { %v1367_v41 = vadd.f32 %v3613_v30, %v1339_v3  ;;  %v1492_v42 = vadd.f32 %v1487_v15, %v1472_v33  ;;  %v1616_v3 = vmul.f32 %v1615_v26, %v3554_v54  ;;  %v1547_v54 = vmul.f32 %v1545_v9, %v3512_v31 }
 0x2fd   :  { %v1804_v9 = vstv %s3719_s1  ;;  %s3929_s1 = sld [smem:[#allocation10 + $0x36]] }
 0x2fe   :  { %v1395_v37 = vadd.f32 %v3617_v38, %v1367_v41  ;;  %v1611_v41 = vmul.f32 %v1609_v58, %v3534_v45 }
 0x2ff   :  { %v3656_v46 = vpop.permute.xlu1 %1586  ;;  %v1515_v1 = vpop.permute.xlu0 %1514 }
 0x300   :  { %v1520_v48 = vadd.f32 %v1515_v1, %v1492_v42  ;;  %v1409_v52 = vadd.f32 %v1407_v40, %v1395_v37  ;;  %v1699_v1 = vstv %s3683_s9  ;;  %s3880_s9 = sld [smem:[#allocation10 + $0x2e]] }
 0x302   :  { %v1542_v55 = vadd.f32 %v1540_v49, %v1520_v48  ;;  %v1437_v16 = vadd.f32 %v3620_v43, %v1409_v52 }
 0x303   :  { %v3660_v30 = vpop.permute.xlu1 %1628  ;;  %v1557_v18 = vpop.permute.xlu0 %1556 }
 0x304   :  { %v1465_v57 = vadd.f32 %v3627_v50, %v1437_v16  ;;  %v1562_v38 = vadd.f32 %v1557_v18, %v1542_v55  ;;  %v1703_v16 = vstv %s3687_s18  ;;  %s3887_s18 = sld [smem:[#allocation10 + $0x40]] }
 0x306   :  { %v1479_v59 = vadd.f32 %v1477_v39, %v1465_v57 }
 0x307   :  { %v3665_v60 = vpop.permute.xlu1 %1656  ;;  %v1585_v61 = vpop.permute.xlu0 %1584 }
 0x308   :  { %v1590_v62 = vadd.f32 %v1585_v61, %v1562_v38 }
 0x30a   :  { %v1612_v43 = vadd.f32 %v1610_v63, %v1590_v62 }
 0x30b   :  { %v1573_v0 = vpop.permute.xlu1 %1572  ;;  %v1627_v50 = vpop.permute.xlu0 %1626 }
 0x30c   :  { %v1632_v53 = vadd.f32 %v1627_v50, %v1612_v43 }
 0x30f   :  { %v1601_v2 = vpop.permute.xlu1 %1600  ;;  %v1655_v4 = vpop.permute.xlu0 %1654 }
 0x310   :  { %v1660_v51 = vadd.f32 %v1655_v4, %v1632_v53 }
 0x312   :  { %v1678_v10 = vmul.f32 %v1677_v8, %v1660_v51  ;;  %v1762_v51 = vstv %s3705_s19  ;;  %s3903_s19 = sld [smem:[#allocation10 + $0x1d]] }
 0x313   :  { %v1643_v11 = vpop.permute.xlu1 %1642  ;;  %v1501_v12 = vpop.permute.xlu0 %1500 }
 0x314   :  { %v1682_v13 = vadd.f32 %v1681_v7, %v1678_v10  ;;  %v1506_v34 = vadd.f32 %v1501_v12, %v1478_v35  ;;  %v1776_v10 = vstv %s3708_s0  ;;  %s3912_s0 = sld [smem:[#allocation10 + $0x2f]] }
 0x316   :  { %v1684_v17 = vmax.f32 %v1682_v13, 0.0 }
 0x317   :  { %v1671_v19 = vpop.permute.xlu1 %1670  ;;  %v1529_v20 = vpop.permute.xlu0 %1528 }
 0x318   :  { %v1534_v44 = vadd.f32 %v1529_v20, %v1506_v34  ;;  %1688 = vrot.lane.b32.xlu0 %v1684_v17, %s3020_s7 }
 0x31a   :  { %v1548_v21 = vadd.f32 %v1546_v56, %v1534_v44  ;;  %v1832_v56 = vstv %s3729_s21  ;;  %s3934_s21 = sld [smem:[#allocation10]] }
 0x31b   :  { %v1489_v22 = vpop.permute.xlu1 %1488  ;;  %v1571_v23 = vpop.permute.xlu0 %1570 }
 0x31c   :  { %v1493_v24 = vadd.f32 %v1489_v22, %v3625_v14  ;;  %v1576_v27 = vadd.f32 %v1571_v23, %v1548_v21  ;;  %v1846_v22 = vstv %s3736_s22  ;;  %s3938_s22 = sld [smem:[#allocation10 + $0x12]] }
 0x31f   :  { %v1517_v25 = vpop.permute.xlu1 %1516  ;;  %v1599_v5 = vpop.permute.xlu0 %1598 }
 0x320   :  { %v1521_v29 = vadd.f32 %v1517_v25, %v1493_v24  ;;  %v1604_v32 = vadd.f32 %v1599_v5, %v1576_v27  ;;  %v1886_v5 = vstv %s3743_s23  ;;  %s3947_s23 = sld [smem:[#allocation10 + $0x1f]] }
 0x322   :  { %v1543_v47 = vadd.f32 %v1541_v28, %v1521_v29  ;;  %v1618_v33 = vadd.f32 %v1616_v3, %v1604_v32  ;;  %v1900_v32 = vstv %s3748_s25  ;;  %s3951_s25 = sld [smem:[#allocation10 + $0x3]] }
 0x323   :  { %v1503_v35 = vpop.permute.xlu1 %1502  ;;  %v1641_v15 = vpop.permute.xlu0 %1640 }
 0x324   :  { %v1563_v14 = vadd.f32 %v3648_v36, %v1543_v47  ;;  %v1507_v37 = vadd.f32 %v1503_v35, %v1479_v59  ;;  %v1646_v42 = vadd.f32 %v1641_v15, %v1618_v33  ;;  %v1914_v33 = vstv %s3760_s3  ;;  %s3953_s3 = sld [smem:[#allocation10 + $0x24]] }
 0x326   :  { %v1591_v40 = vadd.f32 %v3656_v46, %v1563_v14  ;;  %v1617_v46 = vmul.f32 %v1615_v26, %v3534_v45  ;;  %v1928_v14 = vstv %s3767_s26  ;;  %s3963_s26 = sld [smem:[#allocation10 + $0x31]] }
 0x327   :  { %v1531_v6 = vpop.permute.xlu1 %1530  ;;  %v1669_v48 = vpop.permute.xlu0 %1668 }
 0x328   :  { %v1613_v49 = vadd.f32 %v1611_v41, %v1591_v40  ;;  %v1535_v52 = vadd.f32 %v1531_v6, %v1507_v37  ;;  %v1674_v55 = vadd.f32 %v1669_v48, %v1646_v42  ;;  %v1942_v37 = vstv %s3774_s27  ;;  %s3968_s27 = sld [smem:[#allocation10 + $0x15]] }
 0x32a   :  { %v1633_v18 = vadd.f32 %v3660_v30, %v1613_v49  ;;  %v1549_v57 = vadd.f32 %v1547_v54, %v1535_v52  ;;  %v1700_v39 = vmul.f32 %v1699_v1, %v1674_v55  ;;  %v1970_v54 = vstv %s3788_s29  ;;  %s3987_s29 = sld [smem:[#allocation10 + $0x27]] }
 0x32c   :  { %v1577_v36 = vadd.f32 %v1573_v0, %v1549_v57  ;;  %v1704_v38 = vadd.f32 %v1703_v16, %v1700_v39  ;;  %v1661_v58 = vadd.f32 %v3665_v60, %v1633_v18  ;;  %v1748_v60 = vstv %s3701_s2  ;;  %s3894_s2 = sld [smem:[#allocation10 + $0xb]] }
 0x32d   :  { %v1984_v18 = vstv %s3795_s4  ;;  %s3999_s4 = sld [smem:[#allocation10 + $0xe]] }
 0x32e   :  { %v1605_v59 = vadd.f32 %v1601_v2, %v1577_v36  ;;  %v1706_v61 = vmax.f32 %v1704_v38, 0.0  ;;  %v1679_v62 = vmul.f32 %v1677_v8, %v1661_v58  ;;  %v2024_v38 = vstv %s3802_s11  ;;  %s4008_s11 = sld [smem:[#allocation10 + $0x39]] }
 0x330   :  { %v1619_v63 = vadd.f32 %v1617_v46, %v1605_v59  ;;  %1710 = vrot.lane.b32.xlu0 %v1706_v61, %s3020_s7  ;;  %v1683_v31 = vadd.f32 %v1681_v7, %v1679_v62  ;;  %v2038_v59 = vstv %s3811_s6  ;;  %s4020_s6 = sld [smem:[#allocation10 + $0x20]] }
 0x332   :  { %v1647_v43 = vadd.f32 %v1643_v11, %v1619_v63  ;;  %v1685_v50 = vmax.f32 %v1683_v31, 0.0  ;;  %v2052_v63 = vstv %s3820_s30  ;;  %s4035_s30 = sld [smem:[#allocation10 + $0x32]] }
 0x334   :  { %v1675_v53 = vadd.f32 %v1671_v19, %v1647_v43  ;;  %1690 = vrot.lane.b32.xlu1 %v1685_v50, %s3020_s7  ;;  %v1818_v19 = vstv %s3724_s20  ;;  %v2066_v50 = vstv %s3827_s12  ;;  %s3932_s20 = sld [smem:[#allocation10 + $0xd]] }
 0x335   :  { %s4050_s12 = sld [smem:[#allocation10 + $0x44]] }
 0x336   :  { %v1701_v30 = vmul.f32 %v1699_v1, %v1675_v53  ;;  %v1956_v1 = vstv %s3781_s28  ;;  %s3981_s28 = sld [smem:[#allocation10 + $0x43]] }
 0x338   :  { %v1705_v4 = vadd.f32 %v1703_v16, %v1701_v30 }
 0x33a   :  { %v1707_v0 = vmax.f32 %v1705_v4, 0.0  ;;  %v2080_v4 = vstv %s3834_s13  ;;  %s4064_s13 = sld [smem:[#allocation10 + $0x10]] }
 0x33c   :  { %1712 = vrot.lane.b32.xlu1 %v1707_v0, %s3020_s7  ;;  %s3714_s7 = sld [smem:[#allocation10 + $0x37]] }
 0x342   :  { %v1790_v12 = vstv %s3714_s7  ;;  %s3921_s7 = sld [smem:[#allocation10 + $0x41]] }
 0x38a   :  { %v1689_v45 = vpop.permute.xlu0 %1688 }
 0x38b   :  { %1694 = vst.msk [vmem:[#allocation3 + $0x1] sm:$0xff] %vm141_vm4, %v1689_v45 }
 0x38c   :  { %1696 = vst.msk [vmem:[#allocation3 + $0x1] sm:$0xff] %vm169_vm5, %v1689_v45 }
 0x393   :  { %v3710_v2 = vld [vmem:[#allocation3] sm:$0xff] }
 0x394   :  { %v1749_v8 = vmul.f32 %v1748_v60, %v3710_v2  ;;  %v1763_v7 = vmul.f32 %v1762_v51, %v3710_v2  ;;  %v1777_v11 = vmul.f32 %v1776_v10, %v3710_v2  ;;  %v1791_v13 = vmul.f32 %v1790_v12, %v3710_v2  ;;  %v3757_v25 = vld [vmem:[#allocation3 + $0x1] sm:$0xff] }
 0x395   :  { %v1805_v34 = vmul.f32 %v1804_v9, %v3710_v2  ;;  %v1819_v44 = vmul.f32 %v1818_v19, %v3710_v2  ;;  %v1833_v21 = vmul.f32 %v1832_v56, %v3710_v2  ;;  %v1847_v27 = vmul.f32 %v1846_v22, %v3710_v2 }
 0x396   :  { %1753 = vrot.lane.b32.xlu0 %v1749_v8, %s3024_s5  ;;  %v1887_v29 = vmul.f32 %v1886_v5, %v3757_v25  ;;  %v1901_v47 = vmul.f32 %v1900_v32, %v3757_v25  ;;  %v1915_v15 = vmul.f32 %v1914_v33, %v3757_v25  ;;  %v1929_v40 = vmul.f32 %v1928_v14, %v3757_v25 }
 0x397   :  { %v1943_v6 = vmul.f32 %v1942_v37, %v3757_v25  ;;  %v1957_v49 = vmul.f32 %v1956_v1, %v3757_v25  ;;  %v1971_v55 = vmul.f32 %v1970_v54, %v3757_v25  ;;  %v1985_v39 = vmul.f32 %v1984_v18, %v3757_v25 }
 0x39a   :  { %1767 = vrot.lane.b32.xlu0 %v1763_v7, %s3024_s5  ;;  %v2108_v7 = vstv %s3848_s15  ;;  %s4081_s15 = sld [smem:[#allocation10 + $0x6]] }
 0x39e   :  { %1781 = vrot.lane.b32.xlu0 %v1777_v11, %s3024_s5 }
 0x3a2   :  { %1795 = vrot.lane.b32.xlu0 %v1791_v13, %s3024_s5  ;;  %v1711_v17 = vpop.permute.xlu0 %1710  ;;  %v2122_v13 = vstv %s3855_s16  ;;  %s4092_s16 = sld [smem:[#allocation10 + $0x34]] }
 0x3a3   :  { %1717 = vst.msk [vmem:[#allocation3 + $0x19] sm:$0xff] %vm141_vm4, %v1711_v17 }
 0x3a4   :  { %1719 = vst.msk [vmem:[#allocation3 + $0x19] sm:$0xff] %vm169_vm5, %v1711_v17 }
 0x3a6   :  { %v1691_v20 = vpop.permute.xlu1 %1690  ;;  %1809 = vrot.lane.b32.xlu0 %v1805_v34, %s3025_s24 }
 0x3a7   :  { %1695 = vst.msk [vmem:[#allocation3 + $0x9] sm:$0xff] %vm141_vm4, %v1691_v20 }
 0x3a8   :  { %1697 = vst.msk [vmem:[#allocation3 + $0x9] sm:$0xff] %vm169_vm5, %v1691_v20 }
 0x3aa   :  { %1823 = vrot.lane.b32.xlu0 %v1819_v44, %s3025_s24 }
 0x3ab   :  { %v3877_v34 = vld [vmem:[#allocation3 + $0x18] sm:$0xff] }
 0x3ae   :  { %v1713_v23 = vpop.permute.xlu1 %1712  ;;  %1837 = vrot.lane.b32.xlu0 %v1833_v21, %s3025_s24 }
 0x3af   :  { %v3751_v26 = vld [vmem:[#allocation3 + $0x8] sm:$0xff]  ;;  %1718 = vst.msk [vmem:[#allocation3 + $0x21] sm:$0xff] %vm141_vm4, %v1713_v23 }
 0x3b0   :  { %1720 = vst.msk [vmem:[#allocation3 + $0x21] sm:$0xff] %vm169_vm5, %v1713_v23  ;;  %v1750_v24 = vmul.f32 %v1748_v60, %v3751_v26  ;;  %v1764_v28 = vmul.f32 %v1762_v51, %v3751_v26  ;;  %v1778_v3 = vmul.f32 %v1776_v10, %v3751_v26  ;;  %v1792_v35 = vmul.f32 %v1790_v12, %v3751_v26  ;;  %v3808_v16 = vld [vmem:[#allocation3 + $0x9] sm:$0xff] }
 0x3b1   :  { %v1806_v41 = vmul.f32 %v1804_v9, %v3751_v26  ;;  %v1820_v42 = vmul.f32 %v1818_v19, %v3751_v26  ;;  %v1834_v48 = vmul.f32 %v1832_v56, %v3751_v26  ;;  %v1848_v52 = vmul.f32 %v1846_v22, %v3751_v26  ;;  %v3817_v36 = vld [vmem:[#allocation3 + $0x2] sm:$0xff]  ;;  %v3868_v12 = vld [vmem:[#allocation3 + $0xa] sm:$0xff] }
 0x3b2   :  { %1755 = vrot.lane.b32.xlu1 %v1750_v24, %s3024_s5  ;;  %1851 = vrot.lane.b32.xlu0 %v1847_v27, %s3025_s24  ;;  %v1888_v57 = vmul.f32 %v1886_v5, %v3808_v16  ;;  %v1902_v58 = vmul.f32 %v1900_v32, %v3808_v16  ;;  %v2025_v46 = vmul.f32 %v2024_v38, %v3817_v36  ;;  %v2094_v60 = vstv %s3841_s14  ;;  %s4074_s14 = sld [smem:[#allocation10 + $0x22]] }
 0x3b3   :  { %v1916_v61 = vmul.f32 %v1914_v33, %v3808_v16  ;;  %v2039_v62 = vmul.f32 %v2038_v59, %v3817_v36  ;;  %v1930_v31 = vmul.f32 %v1928_v14, %v3808_v16  ;;  %v2053_v43 = vmul.f32 %v2052_v63, %v3817_v36 }
 0x3b4   :  { %v1944_v53 = vmul.f32 %v1942_v37, %v3808_v16  ;;  %v2067_v30 = vmul.f32 %v2066_v50, %v3817_v36  ;;  %v1958_v0 = vmul.f32 %v1956_v1, %v3808_v16  ;;  %v2081_v45 = vmul.f32 %v2080_v4, %v3817_v36 }
 0x3b5   :  { %v1972_v8 = vmul.f32 %v1970_v54, %v3808_v16  ;;  %v2095_v51 = vmul.f32 %v2094_v60, %v3817_v36  ;;  %v1986_v10 = vmul.f32 %v1984_v18, %v3808_v16  ;;  %v2109_v11 = vmul.f32 %v2108_v7, %v3817_v36 }
 0x3b6   :  { %1769 = vrot.lane.b32.xlu1 %v1764_v28, %s3024_s5  ;;  %1891 = vrot.lane.b32.xlu0 %v1887_v29, %s3024_s5  ;;  %v2026_v9 = vmul.f32 %v2024_v38, %v3868_v12  ;;  %v2123_v17 = vmul.f32 %v2122_v13, %v3817_v36  ;;  %v2162_v19 = vstv %s3862_s17  ;;  %v2040_v20 = vmul.f32 %v2038_v59, %v3868_v12  ;;  %s4102_s17 = sld [smem:[#allocation10 + $0x18]] }
 0x3b7   :  { %v2163_v44 = vmul.f32 %v2162_v19, %v3877_v34  ;;  %v2176_v56 = vstv %s3871_s8  ;;  %v2054_v21 = vmul.f32 %v2052_v63, %v3868_v12  ;;  %v2190_v23 = vstv %s3880_s9  ;;  %s4111_s8 = sld [smem:[#allocation10 + $0x46]] }
 0x3b8   :  { %v2177_v22 = vmul.f32 %v2176_v56, %v3877_v34  ;;  %v2068_v24 = vmul.f32 %v2066_v50, %v3868_v12  ;;  %v2191_v27 = vmul.f32 %v2190_v23, %v3877_v34  ;;  %v2204_v5 = vstv %s3887_s18  ;;  %s4122_s9 = sld [smem:[#allocation10 + $0x2a]] }
 0x3b9   :  { %v2082_v28 = vmul.f32 %v2080_v4, %v3868_v12  ;;  %v2205_v29 = vmul.f32 %v2204_v5, %v3877_v34  ;;  %v2218_v32 = vstv %s3894_s2  ;;  %v2232_v33 = vstv %s3903_s19  ;;  %s4134_s18 = sld [smem:[#allocation10 + $0x11]] }
 0x3ba   :  { %1783 = vrot.lane.b32.xlu1 %v1778_v3, %s3024_s5  ;;  %1905 = vrot.lane.b32.xlu0 %v1901_v47, %s3024_s5  ;;  %v2096_v3 = vmul.f32 %v2094_v60, %v3868_v12  ;;  %v2219_v47 = vmul.f32 %v2218_v32, %v3877_v34  ;;  %v2233_v14 = vmul.f32 %v2232_v33, %v3877_v34  ;;  %v2260_v1 = vstv %s3921_s7  ;;  %s4145_s2 = sld [smem:[#allocation10 + $0x3c]] }
 0x3bb   :  { %v2124_v37 = vmul.f32 %v2122_v13, %v3868_v12  ;;  %v2261_v54 = vmul.f32 %v2260_v1, %v3877_v34  ;;  %v2300_v18 = vstv %s3932_s20  ;;  %v1730_v63 = vstv %s3938_s22  ;;  %s4154_s19 = sld [smem:[#allocation10 + $0x23]] }
 0x3bc   :  { %v1731_v4 = vmul.f32 %v1730_v63, %v3710_v2  ;;  %s4190_s7 = sld [smem:[#allocation10 + $0x47]] }
 0x3bd   :  { %s4227_s20 = sld [smem:[#allocation10 + $0x1b]] }
 0x3be   :  { %1797 = vrot.lane.b32.xlu1 %v1792_v35, %s3024_s5  ;;  %1919 = vrot.lane.b32.xlu0 %v1915_v15, %s3024_s5  ;;  %v2110_v15 = vmul.f32 %v2108_v7, %v3868_v12  ;;  %s4250_s22 = sld [smem:[#allocation10 + $0x3f]] }
 0x3c2   :  { %1811 = vrot.lane.b32.xlu1 %v1806_v41, %s3025_s24  ;;  %1933 = vrot.lane.b32.xlu0 %v1929_v40, %s3024_s5  ;;  %v2246_v41 = vstv %s3912_s0  ;;  %s4172_s0 = sld [smem:[#allocation10 + $0x35]] }
 0x3c6   :  { %1825 = vrot.lane.b32.xlu1 %v1820_v42, %s3025_s24  ;;  %1947 = vrot.lane.b32.xlu0 %v1943_v6, %s3025_s24  ;;  %v2247_v42 = vmul.f32 %v2246_v41, %v3877_v34  ;;  %v3944_v6 = vld [vmem:[#allocation3 + $0x20] sm:$0xff] }
 0x3c7   :  { %v2206_v13 = vmul.f32 %v2204_v5, %v3944_v6  ;;  %v2356_v5 = vstv %s3999_s4  ;;  %s4333_s4 = sld [smem:[#allocation13]] }
 0x3ca   :  { %1839 = vrot.lane.b32.xlu1 %v1834_v48, %s3025_s24  ;;  %1961 = vrot.lane.b32.xlu0 %v1957_v49, %s3025_s24  ;;  %v2164_v49 = vmul.f32 %v2162_v19, %v3944_v6 }
 0x3ce   :  { %1853 = vrot.lane.b32.xlu1 %v1848_v52, %s3025_s24  ;;  %1975 = vrot.lane.b32.xlu0 %v1971_v55, %s3025_s24  ;;  %v1742_v52 = vstv %s3929_s1  ;;  %v3960_v55 = vld [vmem:[#allocation3 + $0x19] sm:$0xff]  ;;  %s4217_s1 = sld [smem:[#allocation10 + $0x9]] }
 0x3d2   :  { %1893 = vrot.lane.b32.xlu1 %v1888_v57, %s3024_s5  ;;  %1989 = vrot.lane.b32.xlu0 %v1985_v39, %s3025_s24  ;;  %v1724_v57 = vstv %s3934_s21  ;;  %v1743_v39 = vmul.f32 %v1742_v52, %v3710_v2  ;;  %s4237_s21 = sld [smem:[#allocation10 + $0x2d]] }
 0x3d3   :  { %v1725_v59 = vmul.f32 %v1724_v57, %v3710_v2 }
 0x3d6   :  { %1907 = vrot.lane.b32.xlu1 %v1902_v58, %s3024_s5  ;;  %2029 = vrot.lane.b32.xlu0 %v2025_v46, %s3024_s5  ;;  %v2178_v58 = vmul.f32 %v2176_v56, %v3944_v6  ;;  %v2301_v46 = vmul.f32 %v2300_v18, %v3960_v55  ;;  %v1874_v56 = vstv %s3987_s29  ;;  %s4331_s29 = sld [smem:[#allocation12]] }
 0x3da   :  { %1921 = vrot.lane.b32.xlu1 %v1916_v61, %s3024_s5  ;;  %2043 = vrot.lane.b32.xlu0 %v2039_v62, %s3024_s5  ;;  %v2314_v62 = vstv %s3947_s23  ;;  %s4287_s23 = sld [smem:[#allocation10 + $0x1e]] }
 0x3de   :  { %1935 = vrot.lane.b32.xlu1 %v1930_v31, %s3024_s5  ;;  %2057 = vrot.lane.b32.xlu0 %v2053_v43, %s3024_s5  ;;  %v1862_v31 = vstv %s3951_s25  ;;  %s4300_s25 = sld [smem:[#allocation10 + $0x42]] }
 0x3df   :  { %v1863_v60 = vmul.f32 %v1862_v31, %v3757_v25 }
 0x3e2   :  { %1949 = vrot.lane.b32.xlu1 %v1944_v53, %s3025_s24  ;;  %2071 = vrot.lane.b32.xlu0 %v2067_v30, %s3024_s5  ;;  %v2192_v53 = vmul.f32 %v2190_v23, %v3944_v6  ;;  %v2315_v30 = vmul.f32 %v2314_v62, %v3960_v55 }
 0x3e6   :  { %1963 = vrot.lane.b32.xlu1 %v1958_v0, %s3025_s24  ;;  %2085 = vrot.lane.b32.xlu0 %v2081_v45, %s3025_s24  ;;  %v2328_v45 = vstv %s3963_s26  ;;  %s4311_s26 = sld [smem:[#allocation10 + $0x21]] }
 0x3ea   :  { %1977 = vrot.lane.b32.xlu1 %v1972_v8, %s3025_s24  ;;  %2099 = vrot.lane.b32.xlu0 %v2095_v51, %s3025_s24  ;;  %v1736_v8 = vstv %s3953_s3  ;;  %v1868_v51 = vstv %s3968_s27  ;;  %s4309_s3 = sld [smem:[#allocation10 + $0xf]] }
 0x3eb   :  { %s4315_s27 = sld [smem:[#allocation10 + $0x33]] }
 0x3ee   :  { %1991 = vrot.lane.b32.xlu1 %v1986_v10, %s3025_s24  ;;  %2113 = vrot.lane.b32.xlu0 %v2109_v11, %s3025_s24 }
 0x3f2   :  { %2031 = vrot.lane.b32.xlu1 %v2026_v9, %s3024_s5  ;;  %2127 = vrot.lane.b32.xlu0 %v2123_v17, %s3025_s24  ;;  %v2329_v9 = vmul.f32 %v2328_v45, %v3960_v55  ;;  %v1737_v17 = vmul.f32 %v1736_v8, %v3710_v2  ;;  %v2220_v2 = vmul.f32 %v2218_v32, %v3944_v6 }
 0x3f6   :  { %2045 = vrot.lane.b32.xlu1 %v2040_v20, %s3024_s5  ;;  %2167 = vrot.lane.b32.xlu0 %v2163_v44, %s3024_s5  ;;  %v2342_v20 = vstv %s3981_s28  ;;  %v1869_v44 = vmul.f32 %v1868_v51, %v3757_v25  ;;  %s4320_s28 = sld [smem:[#allocation10 + $0x45]] }
 0x3fa   :  { %2059 = vrot.lane.b32.xlu1 %v2054_v21, %s3024_s5  ;;  %2181 = vrot.lane.b32.xlu0 %v2177_v22, %s3024_s5 }
 0x3fe   :  { %2073 = vrot.lane.b32.xlu1 %v2068_v24, %s3024_s5  ;;  %2195 = vrot.lane.b32.xlu0 %v2191_v27, %s3024_s5  ;;  %v2343_v24 = vmul.f32 %v2342_v20, %v3960_v55 }
 0x402   :  { %2087 = vrot.lane.b32.xlu1 %v2082_v28, %s3025_s24  ;;  %2209 = vrot.lane.b32.xlu0 %v2205_v29, %s3024_s5  ;;  %v1875_v28 = vmul.f32 %v1874_v56, %v3757_v25  ;;  %v1880_v29 = vstv %s4008_s11  ;;  %s4335_s11 = sld [smem:[#allocation12 + $0x1]] }
 0x406   :  { %2101 = vrot.lane.b32.xlu1 %v2096_v3, %s3025_s24  ;;  %2223 = vrot.lane.b32.xlu0 %v2219_v47, %s3025_s24 }
 0x408   :  { %v1754_v35 = vpop.permute.xlu0 %1753 }
 0x409   :  { %v1759_v43 = vadd.f32 %v1754_v35, %v1725_v59  ;;  %v2234_v35 = vmul.f32 %v2232_v33, %v3944_v6  ;;  %v4076_v59 = vld [vmem:[#allocation3 + $0x21] sm:$0xff] }
 0x40a   :  { %2115 = vrot.lane.b32.xlu1 %v2110_v15, %s3025_s24  ;;  %2237 = vrot.lane.b32.xlu0 %v2233_v14, %s3025_s24  ;;  %v2357_v15 = vmul.f32 %v2356_v5, %v3960_v55 }
 0x40c   :  { %v1768_v40 = vpop.permute.xlu0 %1767 }
 0x40d   :  { %v1773_v7 = vadd.f32 %v1768_v40, %v1731_v4  ;;  %v2370_v40 = vstv %s4020_s6  ;;  %s4338_s6 = sld [smem:[#allocation13 + $0x1]] }
 0x40e   :  { %2129 = vrot.lane.b32.xlu1 %v2124_v37, %s3025_s24  ;;  %2251 = vrot.lane.b32.xlu0 %v2247_v42, %s3025_s24  ;;  %v1881_v37 = vmul.f32 %v1880_v29, %v3757_v25 }
 0x410   :  { %v1782_v48 = vpop.permute.xlu0 %1781 }
 0x411   :  { %v1787_v21 = vadd.f32 %v1782_v48, %v1737_v17  ;;  %v2452_v17 = vstv %s4074_s14  ;;  %s4356_s14 = sld [smem:[#allocation13 + $0x3]] }
 0x412   :  { %2169 = vrot.lane.b32.xlu1 %v2164_v49, %s3024_s5  ;;  %2265 = vrot.lane.b32.xlu0 %v2261_v54, %s3025_s24  ;;  %v2248_v49 = vmul.f32 %v2246_v41, %v3944_v6  ;;  %v2371_v54 = vmul.f32 %v2370_v40, %v3960_v55 }
 0x414   :  { %v1796_v38 = vpop.permute.xlu0 %1795 }
 0x415   :  { %v1801_v61 = vadd.f32 %v1796_v38, %v1743_v39  ;;  %v2384_v38 = vstv %s4035_s30  ;;  %s4343_s30 = sld [smem:[#allocation12 + $0x2]] }
 0x416   :  { %2183 = vrot.lane.b32.xlu1 %v2178_v58, %s3024_s5  ;;  %2305 = vrot.lane.b32.xlu0 %v2301_v46, %s3024_s5  ;;  %v2262_v46 = vmul.f32 %v2260_v1, %v3944_v6  ;;  %v2385_v41 = vmul.f32 %v2384_v38, %v3960_v55  ;;  %v1744_v1 = vmul.f32 %v1742_v52, %v3751_v26 }
 0x418   :  { %v1810_v50 = vpop.permute.xlu0 %1809 }
 0x419   :  { %v1815_v0 = vadd.f32 %v1810_v50, %v1759_v43  ;;  %v2398_v43 = vstv %s4050_s12  ;;  %s4347_s12 = sld [smem:[#allocation13 + $0x2]] }
 0x41a   :  { %2197 = vrot.lane.b32.xlu1 %v2192_v53, %s3024_s5  ;;  %2319 = vrot.lane.b32.xlu0 %v2315_v30, %s3024_s5  ;;  %v2302_v30 = vmul.f32 %v2300_v18, %v4076_v59  ;;  %v2399_v4 = vmul.f32 %v2398_v43, %v3960_v55 }
 0x41b   :  { %v1865_v10 = vadd.f32 %v1863_v60, %v1815_v0  ;;  %v4094_v0 = vld [vmem:[#allocation3 + $0x1a] sm:$0xff]  ;;  %v1726_v60 = vmul.f32 %v1724_v57, %v3751_v26 }
 0x41c   :  { %v1824_v11 = vpop.permute.xlu0 %1823 }
 0x41d   :  { %v1829_v19 = vadd.f32 %v1824_v11, %v1773_v7 }
 0x41e   :  { %2211 = vrot.lane.b32.xlu1 %v2206_v13, %s3024_s5  ;;  %2333 = vrot.lane.b32.xlu0 %v2329_v9, %s3024_s5  ;;  %v2316_v9 = vmul.f32 %v2314_v62, %v4076_v59  ;;  %v2000_v62 = vstv %s4081_s15  ;;  %s3026_s15 = smov 110  }
 0x41f   :  { %v1871_v22 = vadd.f32 %v1869_v44, %v1829_v19  ;;  %v1732_v19 = vmul.f32 %v1730_v63, %v3751_v26  ;;  %v1738_v63 = vmul.f32 %v1736_v8, %v3751_v26  ;;  %v2001_v26 = vmul.f32 %v2000_v62, %v3817_v36 }
 0x420   :  { %v1838_v23 = vpop.permute.xlu0 %1837 }
 0x421   :  { %v1843_v27 = vadd.f32 %v1838_v23, %v1787_v21 }
 0x422   :  { %2225 = vrot.lane.b32.xlu1 %v2220_v2, %s3025_s24  ;;  %2347 = vrot.lane.b32.xlu0 %v2343_v24, %s3024_s5 }
 0x423   :  { %v1877_v3 = vadd.f32 %v1875_v28, %v1843_v27  ;;  %v2453_v28 = vmul.f32 %v2452_v17, %v4094_v0 }
 0x424   :  { %v1756_v32 = vpop.permute.xlu1 %1755  ;;  %v1852_v47 = vpop.permute.xlu0 %1851 }
 0x425   :  { %v1857_v14 = vadd.f32 %v1852_v47, %v1801_v61  ;;  %v1760_v18 = vadd.f32 %v1756_v32, %v1726_v60 }
 0x426   :  { %2239 = vrot.lane.b32.xlu1 %v2234_v35, %s3025_s24  ;;  %2361 = vrot.lane.b32.xlu0 %v2357_v15, %s3025_s24  ;;  %v1870_v35 = vmul.f32 %v1868_v51, %v3808_v16  ;;  %v2344_v51 = vmul.f32 %v2342_v20, %v4076_v59  ;;  %v2012_v20 = vstv %s4122_s9 }
 0x427   :  { %v1883_v42 = vadd.f32 %v1881_v37, %v1857_v14  ;;  %v2013_v60 = vmul.f32 %v2012_v20, %v3817_v36 }
 0x428   :  { %v1770_v48 = vpop.permute.xlu1 %1769  ;;  %v1892_v33 = vpop.permute.xlu0 %1891 }
 0x429   :  { %v1897_v39 = vadd.f32 %v1892_v33, %v1865_v10  ;;  %v2438_v10 = vstv %s4064_s13  ;;  %v1774_v23 = vadd.f32 %v1770_v48, %v1732_v19  ;;  %v2480_v33 = vstv %s4111_s8  ;;  %s4352_s13 = sld [smem:[#allocation12 + $0x3]] }
 0x42a   :  { %2253 = vrot.lane.b32.xlu1 %v2248_v49, %s3025_s24  ;;  %2375 = vrot.lane.b32.xlu0 %v2371_v54, %s3025_s24  ;;  %v2439_v57 = vmul.f32 %v2438_v10, %v4094_v0 }
 0x42c   :  { %v1784_v25 = vpop.permute.xlu1 %1783  ;;  %v1906_v58 = vpop.permute.xlu0 %1905 }
 0x42d   :  { %v1911_v61 = vadd.f32 %v1906_v58, %v1871_v22  ;;  %v1864_v22 = vmul.f32 %v1862_v31, %v3808_v16  ;;  %v2330_v31 = vmul.f32 %v2328_v45, %v4076_v59  ;;  %v2006_v45 = vstv %s4102_s17 }
 0x42e   :  { %2267 = vrot.lane.b32.xlu1 %v2262_v46, %s3025_s24  ;;  %2389 = vrot.lane.b32.xlu0 %v2385_v41, %s3025_s24  ;;  %v1788_v8 = vadd.f32 %v1784_v25, %v1738_v63  ;;  %v2007_v25 = vmul.f32 %v2006_v45, %v3817_v36 }
 0x430   :  { %v1798_v50 = vpop.permute.xlu1 %1797  ;;  %v1920_v53 = vpop.permute.xlu0 %1919 }
 0x431   :  { %v1802_v52 = vadd.f32 %v1798_v50, %v1744_v1  ;;  %v1925_v7 = vadd.f32 %v1920_v53, %v1877_v3  ;;  %v2466_v3 = vstv %s4092_s16  ;;  %v2358_v1 = vmul.f32 %v2356_v5, %v4076_v59  ;;  %s3027_s16 = smov [#allocation15]  }
 0x432   :  { %2307 = vrot.lane.b32.xlu1 %v2302_v30, %s3024_s5  ;;  %2403 = vrot.lane.b32.xlu0 %v2399_v4, %s3025_s24  ;;  %v2467_v48 = vmul.f32 %v2466_v3, %v4094_v0  ;;  %v2494_v50 = vstv %s4134_s18  ;;  %v1882_v4 = vmul.f32 %v1880_v29, %v3808_v16  ;;  %v2018_v5 = vstv %s4145_s2  ;;  %s2650_s17 = sshll.u32 %s3027_s16, 4  ;;  %s2651_s17 = int_to_ptr.vmem [resolvable:$true] %s2650_s17 }
 0x433   :  { %v2019_v19 = vmul.f32 %v2018_v5, %v3817_v36  ;;  %s2984_s8 = scalar_lea.vmem %s2651_s17, 2048  ;;  %p2989_p3 = scmp.lt.s32.totalorder %s2651_s17, %s2651_s17 }
 0x434   :  { %v1812_v11 = vpop.permute.xlu1 %1811  ;;  %v1934_v13 = vpop.permute.xlu0 %1933  ;;  %p2985_p2 = scmp.ne.s32.totalorder %s2651_s17, %s2984_s8  ;;  %p2990_p4 = scmp.lt.s32.totalorder %s2984_s8, %s2984_s8 }
 0x435   :  { %v1816_v44 = vadd.f32 %v1812_v11, %v1760_v18  ;;  %v1939_v21 = vadd.f32 %v1934_v13, %v1883_v42  ;;  %v2372_v13 = vmul.f32 %v2370_v40, %v4076_v59 }
 0x436   :  { %2321 = vrot.lane.b32.xlu1 %v2316_v9, %s3024_s5  ;;  %2443 = vrot.lane.b32.xlu0 %v2439_v57, %s3024_s5  ;;  %v2508_v57 = vstv %s4154_s19  ;;  %p2991_p5 = por %p2990_p4, %p2989_p3 }
 0x437   :  { %v1866_v2 = vadd.f32 %v1864_v22, %v1816_v44 }
 0x438   :  { %v1826_v24 = vpop.permute.xlu1 %1825  ;;  %v1948_v27 = vpop.permute.xlu0 %1947  ;;  %p2992_p6 = pnand %p2991_p5, %p2985_p2 }
 0x439   :  { %v1830_v32 = vadd.f32 %v1826_v24, %v1774_v23  ;;  %v1953_v47 = vadd.f32 %v1948_v27, %v1897_v39  ;;  %v1876_v39 = vmul.f32 %v1874_v56, %v3808_v16  ;;  %v2481_v56 = vmul.f32 %v2480_v33, %v4094_v0 }
 0x43a   :  { %2335 = vrot.lane.b32.xlu1 %v2330_v31, %s3024_s5  ;;  %2457 = vrot.lane.b32.xlu0 %v2453_v28, %s3024_s5  ;;  %v2495_v16 = vmul.f32 %v2494_v50, %v4094_v0  ;;  %v2386_v23 = vmul.f32 %v2384_v38, %v4076_v59  ;;  %v2522_v24 = vstv %s4172_s0  ;;  %v2400_v31 = vmul.f32 %v2398_v43, %v4076_v59  ;;  %v4212_v28 = vld [vmem:[#allocation3 + $0x22] sm:$0xff] }
 0x43b   :  { %v1872_v15 = vadd.f32 %v1870_v35, %v1830_v32  ;;  %v2003_v14 = vadd.f32 %v2001_v26, %v1953_v47  ;;  %v2523_v38 = vmul.f32 %v2522_v24, %v4094_v0  ;;  %v2536_v35 = vstv %s4190_s7 }
 0x43c   :  { %v1840_v37 = vpop.permute.xlu1 %1839  ;;  %v1962_v42 = vpop.permute.xlu0 %1961  ;;  %v2440_v43 = vmul.f32 %v2438_v10, %v4212_v28 }
 0x43d   :  { %v1844_v49 = vadd.f32 %v1840_v37, %v1788_v8  ;;  %v1967_v54 = vadd.f32 %v1962_v42, %v1911_v61 }
 0x43e   :  { %2349 = vrot.lane.b32.xlu1 %v2344_v51, %s3024_s5  ;;  %2471 = vrot.lane.b32.xlu0 %v2467_v48, %s3024_s5  ;;  %v2454_v48 = vmul.f32 %v2452_v17, %v4212_v28 }
 0x43f   :  { %v1878_v58 = vadd.f32 %v1876_v39, %v1844_v49  ;;  %v2009_v46 = vadd.f32 %v2007_v25, %v1967_v54  ;;  %v2002_v54 = vmul.f32 %v2000_v62, %v3868_v12  ;;  %v2138_v39 = vstv %s4217_s1 }
 0x440   :  { %v1854_v41 = vpop.permute.xlu1 %1853  ;;  %v1976_v61 = vpop.permute.xlu0 %1975  ;;  %v2008_v62 = vmul.f32 %v2006_v45, %v3868_v12 }
 0x441   :  { %v1858_v53 = vadd.f32 %v1854_v41, %v1802_v52  ;;  %v1981_v30 = vadd.f32 %v1976_v61, %v1925_v7  ;;  %v2468_v41 = vmul.f32 %v2466_v3, %v4212_v28 }
 0x442   :  { %2363 = vrot.lane.b32.xlu1 %v2358_v1, %s3025_s24  ;;  %2485 = vrot.lane.b32.xlu0 %v2481_v56, %s3024_s5  ;;  %v2139_v1 = vmul.f32 %v2138_v39, %v3877_v34  ;;  %v2144_v56 = vstv %s4227_s20 }
 0x443   :  { %v1884_v18 = vadd.f32 %v1882_v4, %v1858_v53  ;;  %v2015_v11 = vadd.f32 %v2013_v60, %v1981_v30  ;;  %v2482_v60 = vmul.f32 %v2480_v33, %v4212_v28  ;;  %v2496_v33 = vmul.f32 %v2494_v50, %v4212_v28 }
 0x444   :  { %v1894_v52 = vpop.permute.xlu1 %1893  ;;  %v1990_v7 = vpop.permute.xlu0 %1989 }
 0x445   :  { %v1898_v29 = vadd.f32 %v1894_v52, %v1866_v2  ;;  %v1995_v9 = vadd.f32 %v1990_v7, %v1939_v21  ;;  %v2509_v21 = vmul.f32 %v2508_v57, %v4094_v0  ;;  %v2145_v52 = vmul.f32 %v2144_v56, %v3877_v34 }
 0x446   :  { %2377 = vrot.lane.b32.xlu1 %v2372_v13, %s3025_s24  ;;  %2499 = vrot.lane.b32.xlu0 %v2495_v16, %s3025_s24  ;;  %v2150_v7 = vstv %s4237_s21 }
 0x447   :  { %v2021_v44 = vadd.f32 %v2019_v19, %v1995_v9 }
 0x448   :  { %v1908_v40 = vpop.permute.xlu1 %1907  ;;  %v2030_v22 = vpop.permute.xlu0 %2029 }
 0x449   :  { %v1912_v2 = vadd.f32 %v1908_v40, %v1872_v15  ;;  %v2035_v63 = vadd.f32 %v2030_v22, %v2003_v14  ;;  %v2537_v15 = vmul.f32 %v2536_v35, %v4094_v0  ;;  %v2020_v40 = vmul.f32 %v2018_v5, %v3868_v12 }
 0x44a   :  { %2391 = vrot.lane.b32.xlu1 %v2386_v23, %s3025_s24  ;;  %2513 = vrot.lane.b32.xlu0 %v2509_v21, %s3025_s24  ;;  %v2156_v22 = vstv %s4250_s22 }
 0x44c   :  { %v1922_v36 = vpop.permute.xlu1 %1921  ;;  %v2044_v27 = vpop.permute.xlu0 %2043 }
 0x44d   :  { %v1926_v32 = vadd.f32 %v1922_v36, %v1878_v58  ;;  %v2049_v47 = vadd.f32 %v2044_v27, %v2009_v46  ;;  %v2510_v36 = vmul.f32 %v2508_v57, %v4212_v28  ;;  %v2538_v57 = vmul.f32 %v2536_v35, %v4212_v28 }
 0x44e   :  { %2405 = vrot.lane.b32.xlu1 %v2400_v31, %s3025_s24  ;;  %2527 = vrot.lane.b32.xlu0 %v2523_v38, %s3025_s24  ;;  %v2157_v31 = vmul.f32 %v2156_v22, %v3877_v34  ;;  %v2140_v35 = vmul.f32 %v2138_v39, %v3944_v6 }
 0x450   :  { %v1936_v26 = vpop.permute.xlu1 %1935  ;;  %v2058_v8 = vpop.permute.xlu0 %2057 }
 0x451   :  { %v1940_v14 = vadd.f32 %v1936_v26, %v1884_v18  ;;  %v2063_v37 = vadd.f32 %v2058_v8, %v2015_v11  ;;  %v2014_v11 = vmul.f32 %v2012_v20, %v3868_v12  ;;  %v2151_v20 = vmul.f32 %v2150_v7, %v3877_v34 }
 0x452   :  { %2445 = vrot.lane.b32.xlu1 %v2440_v43, %s3024_s5  ;;  %2541 = vrot.lane.b32.xlu0 %v2537_v15, %s3025_s24 }
 0x454   :  { %v1950_v42 = vpop.permute.xlu1 %1949  ;;  %v2072_v51 = vpop.permute.xlu0 %2071 }
 0x455   :  { %v1954_v10 = vadd.f32 %v1950_v42, %v1898_v29  ;;  %v2077_v49 = vadd.f32 %v2072_v51, %v2021_v44 }
 0x456   :  { %2459 = vrot.lane.b32.xlu1 %v2454_v48, %s3024_s5 }
 0x457   :  { %v2004_v25 = vadd.f32 %v2002_v54, %v1954_v10 }
 0x458   :  { %v1964_v58 = vpop.permute.xlu1 %1963  ;;  %v2086_v46 = vpop.permute.xlu0 %2085 }
 0x459   :  { %v1968_v17 = vadd.f32 %v1964_v58, %v1912_v2  ;;  %v2091_v61 = vadd.f32 %v2086_v46, %v2035_v63 }
 0x45a   :  { %2473 = vrot.lane.b32.xlu1 %v2468_v41, %s3024_s5 }
 0x45b   :  { %v2010_v53 = vadd.f32 %v2008_v62, %v1968_v17  ;;  %v2141_v30 = vadd.f32 %v2139_v1, %v2091_v61  ;;  %v2146_v61 = vmul.f32 %v2144_v56, %v3944_v6  ;;  %v2282_v1 = vstv %s4287_s23 }
 0x45c   :  { %v1978_v4 = vpop.permute.xlu1 %1977  ;;  %v2100_v3 = vpop.permute.xlu0 %2099 }
 0x45d   :  { %v1982_v18 = vadd.f32 %v1978_v4, %v1926_v32  ;;  %v2105_v45 = vadd.f32 %v2100_v3, %v2049_v47  ;;  %v2524_v32 = vmul.f32 %v2522_v24, %v4212_v28 }
 0x45e   :  { %2487 = vrot.lane.b32.xlu1 %v2482_v60, %s3024_s5  ;;  %s4285_s5 = sld [smem:[#allocation10 + $0xc]] }
 0x45f   :  { %v2016_v13 = vadd.f32 %v2014_v11, %v1982_v18  ;;  %v2147_v16 = vadd.f32 %v2145_v52, %v2105_v45  ;;  %v2152_v18 = vmul.f32 %v2150_v7, %v3944_v6  ;;  %v2283_v45 = vmul.f32 %v2282_v1, %v3960_v55 }
 0x460   :  { %v1992_v29 = vpop.permute.xlu1 %1991  ;;  %v2114_v9 = vpop.permute.xlu0 %2113 }
 0x461   :  { %v1996_v19 = vadd.f32 %v1992_v29, %v1940_v14  ;;  %v2119_v44 = vadd.f32 %v2114_v9, %v2063_v37 }
 0x462   :  { %2501 = vrot.lane.b32.xlu1 %v2496_v33, %s3025_s24  ;;  %v2158_v33 = vmul.f32 %v2156_v22, %v3944_v6 }
 0x463   :  { %v2022_v23 = vadd.f32 %v2020_v40, %v1996_v19  ;;  %v2153_v21 = vadd.f32 %v2151_v20, %v2119_v44  ;;  %v2294_v44 = vstv %s4300_s25 }
 0x464   :  { %v2032_v2 = vpop.permute.xlu1 %2031  ;;  %v2128_v63 = vpop.permute.xlu0 %2127  ;;  %v2276_v54 = vstv %s4285_s5 }
 0x465   :  { %v2036_v50 = vadd.f32 %v2032_v2, %v2004_v25  ;;  %v2133_v27 = vadd.f32 %v2128_v63, %v2077_v49  ;;  %v2277_v62 = vmul.f32 %v2276_v54, %v3960_v55  ;;  %v2295_v63 = vmul.f32 %v2294_v44, %v3960_v55 }
 0x466   :  { %2515 = vrot.lane.b32.xlu1 %v2510_v36, %s3025_s24 }
 0x467   :  { %v2159_v12 = vadd.f32 %v2157_v31, %v2133_v27 }
 0x468   :  { %v2046_v5 = vpop.permute.xlu1 %2045  ;;  %v2168_v38 = vpop.permute.xlu0 %2167 }
 0x469   :  { %v2050_v47 = vadd.f32 %v2046_v5, %v2010_v53  ;;  %v2173_v26 = vadd.f32 %v2168_v38, %v2141_v30 }
 0x46a   :  { %2529 = vrot.lane.b32.xlu1 %v2524_v32, %s3025_s24 }
 0x46c   :  { %v2060_v8 = vpop.permute.xlu1 %2059  ;;  %v2182_v43 = vpop.permute.xlu0 %2181 }
 0x46d   :  { %v2064_v15 = vadd.f32 %v2060_v8, %v2016_v13  ;;  %v2187_v34 = vadd.f32 %v2182_v43, %v2147_v16  ;;  %v2414_v43 = vstv %s4309_s3 }
 0x46e   :  { %2543 = vrot.lane.b32.xlu1 %v2538_v57, %s3025_s24  ;;  %s4293_s24 = sld [smem:[#allocation10 + $0x30]] }
 0x470   :  { %v2074_v14 = vpop.permute.xlu1 %2073  ;;  %v2196_v37 = vpop.permute.xlu0 %2195 }
 0x471   :  { %v2078_v24 = vadd.f32 %v2074_v14, %v2022_v23  ;;  %v2201_v42 = vadd.f32 %v2196_v37, %v2153_v21 }
 0x474   :  { %v2088_v51 = vpop.permute.xlu1 %2087  ;;  %v2210_v48 = vpop.permute.xlu0 %2209  ;;  %v2288_v11 = vstv %s4293_s24 }
 0x475   :  { %v2092_v10 = vadd.f32 %v2088_v51, %v2036_v50  ;;  %v2215_v49 = vadd.f32 %v2210_v48, %v2159_v12  ;;  %v2289_v19 = vmul.f32 %v2288_v11, %v3960_v55  ;;  %v2278_v55 = vmul.f32 %v2276_v54, %v4076_v59 }
 0x476   :  { %v2415_v51 = vmul.f32 %v2414_v43, %v4094_v0  ;;  %v2420_v48 = vstv %s4311_s26 }
 0x477   :  { %v2142_v25 = vadd.f32 %v2140_v35, %v2092_v10 }
 0x478   :  { %v2102_v58 = vpop.permute.xlu1 %2101  ;;  %v2224_v46 = vpop.permute.xlu0 %2223 }
 0x479   :  { %v2106_v41 = vadd.f32 %v2102_v58, %v2050_v47  ;;  %v2229_v17 = vadd.f32 %v2224_v46, %v2173_v26 }
 0x47b   :  { %v2148_v53 = vadd.f32 %v2146_v61, %v2106_v41  ;;  %v2279_v30 = vadd.f32 %v2277_v62, %v2229_v17  ;;  %v2290_v41 = vmul.f32 %v2288_v11, %v4076_v59  ;;  %v2421_v17 = vmul.f32 %v2420_v48, %v4094_v0 }
 0x47c   :  { %v2116_v39 = vpop.permute.xlu1 %2115  ;;  %v2238_v4 = vpop.permute.xlu0 %2237  ;;  %v2426_v61 = vstv %s4315_s27 }
 0x47d   :  { %v2120_v3 = vadd.f32 %v2116_v39, %v2064_v15  ;;  %v2243_v60 = vadd.f32 %v2238_v4, %v2187_v34 }
 0x47f   :  { %v2154_v52 = vadd.f32 %v2152_v18, %v2120_v3  ;;  %v2285_v13 = vadd.f32 %v2283_v45, %v2243_v60  ;;  %v2296_v60 = vmul.f32 %v2294_v44, %v4076_v59  ;;  %v2427_v18 = vmul.f32 %v2426_v61, %v4094_v0 }
 0x480   :  { %v2130_v56 = vpop.permute.xlu1 %2129  ;;  %v2252_v16 = vpop.permute.xlu0 %2251  ;;  %v2432_v45 = vstv %s4320_s28 }
 0x481   :  { %v2134_v29 = vadd.f32 %v2130_v56, %v2078_v24  ;;  %v2257_v9 = vadd.f32 %v2252_v16, %v2201_v42  ;;  %v2284_v42 = vmul.f32 %v2282_v1, %v4076_v59 }
 0x483   :  { %v2160_v40 = vadd.f32 %v2158_v33, %v2134_v29  ;;  %v2291_v20 = vadd.f32 %v2289_v19, %v2257_v9  ;;  %v2433_v9 = vmul.f32 %v2432_v45, %v4094_v0  ;;  %v2416_v0 = vmul.f32 %v2414_v43, %v4212_v28 }
 0x484   :  { %v2170_v23 = vpop.permute.xlu1 %2169  ;;  %v2266_v21 = vpop.permute.xlu0 %2265 }
 0x485   :  { %v2174_v2 = vadd.f32 %v2170_v23, %v2142_v25  ;;  %v2271_v7 = vadd.f32 %v2266_v21, %v2215_v49 }
 0x487   :  { %v2297_v36 = vadd.f32 %v2295_v63, %v2271_v7 }
 0x488   :  { %v2184_v50 = vpop.permute.xlu1 %2183  ;;  %v2306_v27 = vpop.permute.xlu0 %2305 }
 0x489   :  { %v2188_v31 = vadd.f32 %v2184_v50, %v2148_v53  ;;  %v2311_v57 = vadd.f32 %v2306_v27, %v2279_v30 }
 0x48c   :  { %v2198_v12 = vpop.permute.xlu1 %2197  ;;  %v2320_v5 = vpop.permute.xlu0 %2319 }
 0x48d   :  { %v2202_v38 = vadd.f32 %v2198_v12, %v2154_v52  ;;  %v2325_v10 = vadd.f32 %v2320_v5, %v2285_v13  ;;  %v2550_v12 = vstv %s4331_s29 }
 0x490   :  { %v2212_v6 = vpop.permute.xlu1 %2211  ;;  %v2334_v22 = vpop.permute.xlu0 %2333 }
 0x491   :  { %v2216_v32 = vadd.f32 %v2212_v6, %v2160_v40  ;;  %v2339_v62 = vadd.f32 %v2334_v22, %v2291_v20  ;;  %v2422_v22 = vmul.f32 %v2420_v48, %v4212_v28 }
 0x494   :  { %v2226_v47 = vpop.permute.xlu1 %2225  ;;  %v2348_v26 = vpop.permute.xlu0 %2347 }
 0x495   :  { %v2230_v8 = vadd.f32 %v2226_v47, %v2174_v2  ;;  %v2353_v52 = vadd.f32 %v2348_v26, %v2297_v36 }
 0x497   :  { %v2280_v15 = vadd.f32 %v2278_v55, %v2230_v8 }
 0x498   :  { %v2240_v34 = vpop.permute.xlu1 %2239  ;;  %v2362_v14 = vpop.permute.xlu0 %2361 }
 0x499   :  { %v2244_v37 = vadd.f32 %v2240_v34, %v2188_v31  ;;  %v2367_v24 = vadd.f32 %v2362_v14, %v2311_v57  ;;  %v2574_v57 = vstv %s4335_s11 }
 0x49b   :  { %v2286_v49 = vadd.f32 %v2284_v42, %v2244_v37  ;;  %v2417_v35 = vadd.f32 %v2415_v51, %v2367_v24  ;;  %v2428_v24 = vmul.f32 %v2426_v61, %v4212_v28  ;;  %v2578_v51 = vstv %s4338_s6 }
 0x49c   :  { %v2254_v54 = vpop.permute.xlu1 %2253  ;;  %v2376_v25 = vpop.permute.xlu0 %2375  ;;  %v2434_v61 = vmul.f32 %v2432_v45, %v4212_v28 }
 0x49d   :  { %v2258_v58 = vadd.f32 %v2254_v54, %v2202_v38  ;;  %v2381_v46 = vadd.f32 %v2376_v25, %v2325_v10  ;;  %v2598_v25 = vstv %s4343_s30 }
 0x49f   :  { %v2292_v1 = vadd.f32 %v2290_v41, %v2258_v58  ;;  %v2423_v53 = vadd.f32 %v2421_v17, %v2381_v46 }
 0x4a0   :  { %v2268_v30 = vpop.permute.xlu1 %2267  ;;  %v2390_v39 = vpop.permute.xlu0 %2389 }
 0x4a1   :  { %v2272_v4 = vadd.f32 %v2268_v30, %v2216_v32  ;;  %v2395_v3 = vadd.f32 %v2390_v39, %v2339_v62  ;;  %v2554_v32 = vstv %s4333_s4  ;;  %v2602_v62 = vstv %s4347_s12 }
 0x4a3   :  { %v2298_v13 = vadd.f32 %v2296_v60, %v2272_v4  ;;  %v2429_v56 = vadd.f32 %v2427_v18, %v2395_v3  ;;  %v2622_v3 = vstv %s4352_s13 }
 0x4a4   :  { %v2308_v11 = vpop.permute.xlu1 %2307  ;;  %v2404_v16 = vpop.permute.xlu0 %2403 }
 0x4a5   :  { %v2409_v29 = vadd.f32 %v2404_v16, %v2353_v52  ;;  %v2312_v59 = vadd.f32 %v2308_v11, %v2280_v15 }
 0x4a7   :  { %v2435_v33 = vadd.f32 %v2433_v9, %v2409_v29 }
 0x4a8   :  { %v2322_v19 = vpop.permute.xlu1 %2321  ;;  %v2444_v40 = vpop.permute.xlu0 %2443 }
 0x4a9   :  { %v2326_v36 = vadd.f32 %v2322_v19, %v2286_v49  ;;  %v2449_v50 = vadd.f32 %v2444_v40, %v2417_v35 }
 0x4ac   :  { %v2336_v20 = vpop.permute.xlu1 %2335  ;;  %v2458_v23 = vpop.permute.xlu0 %2457 }
 0x4ad   :  { %v2340_v47 = vadd.f32 %v2336_v20, %v2292_v1  ;;  %v2463_v26 = vadd.f32 %v2458_v23, %v2423_v53 }
 0x4b0   :  { %v2350_v21 = vpop.permute.xlu1 %2349  ;;  %v2472_v2 = vpop.permute.xlu0 %2471 }
 0x4b1   :  { %v2354_v42 = vadd.f32 %v2350_v21, %v2298_v13  ;;  %v2477_v48 = vadd.f32 %v2472_v2, %v2429_v56  ;;  %v2626_v13 = vstv %s4356_s14 }
 0x4b4   :  { %v2364_v44 = vpop.permute.xlu1 %2363  ;;  %v2486_v7 = vpop.permute.xlu0 %2485 }
 0x4b5   :  { %v2368_v63 = vadd.f32 %v2364_v44, %v2312_v59  ;;  %v2491_v1 = vadd.f32 %v2486_v7, %v2435_v33 }
 0x4b7   :  { %v4340_v27 = vadd.f32 %v2416_v0, %v2368_v63 }
 0x4b8   :  { %v2378_v31 = vpop.permute.xlu1 %2377  ;;  %v2500_v5 = vpop.permute.xlu0 %2499 }
 0x4b9   :  { %v2382_v38 = vadd.f32 %v2378_v31, %v2326_v36  ;;  %v2505_v6 = vadd.f32 %v2500_v5, %v2449_v50 }
 0x4bb   :  { %v2551_v8 = vmul.f32 %v2550_v12, %v2505_v6  ;;  %v2424_v55 = vadd.f32 %v2422_v22, %v2382_v38 }
 0x4bc   :  { %v2392_v43 = vpop.permute.xlu1 %2391  ;;  %v2514_v15 = vpop.permute.xlu0 %2513 }
 0x4bd   :  { %v2555_v34 = vadd.f32 %v2554_v32, %v2551_v8  ;;  %v2396_v14 = vadd.f32 %v2392_v43, %v2340_v47  ;;  %v2519_v37 = vadd.f32 %v2514_v15, %v2463_v26 }
 0x4bf   :  { %v2557_v10 = vmax.f32 %v2555_v34, 0.0  ;;  %v2575_v49 = vmul.f32 %v2574_v57, %v2519_v37  ;;  %v2430_v35 = vadd.f32 %v2428_v24, %v2396_v14 }
 0x4c0   :  { %v2406_v54 = vpop.permute.xlu1 %2405  ;;  %v2528_v58 = vpop.permute.xlu0 %2527 }
 0x4c1   :  { %2560 = vst.msk [vmem:[#allocation15] sm:$0xff] %vm2559_vm6, %v2557_v10  ;;  %v2579_v46 = vadd.f32 %v2578_v51, %v2575_v49  ;;  %v2410_v41 = vadd.f32 %v2406_v54, %v2354_v42  ;;  %v2533_v17 = vadd.f32 %v2528_v58, %v2477_v48  ;;  %2564 = vrot.lane.b32.xlu0 %v2557_v10, %s3026_s15 }
 0x4c3   :  { %v2581_v53 = vmax.f32 %v2579_v46, 0.0  ;;  %v2599_v30 = vmul.f32 %v2598_v25, %v2533_v17  ;;  %v2436_v39 = vadd.f32 %v2434_v61, %v2410_v41 }
 0x4c4   :  { %v2446_v4 = vpop.permute.xlu1 %2445  ;;  %v2542_v60 = vpop.permute.xlu0 %2541 }
 0x4c5   :  { %2584 = vst.msk [vmem:[#allocation15 + $0x10] sm:$0xff] %vm2559_vm6, %v2581_v53  ;;  %v2603_v18 = vadd.f32 %v2602_v62, %v2599_v30  ;;  %v2547_v52 = vadd.f32 %v2542_v60, %v2491_v1  ;;  %2588 = vrot.lane.b32.xlu0 %v2581_v53, %s3026_s15  ;;  %v2450_v33 = vadd.f32 %v2446_v4, %v4340_v27 }
 0x4c7   :  { %v2605_v56 = vmax.f32 %v2603_v18, 0.0  ;;  %v2623_v11 = vmul.f32 %v2622_v3, %v2547_v52 }
 0x4c8   :  { %v2460_v16 = vpop.permute.xlu1 %2459 }
 0x4c9   :  { %2608 = vst.msk [vmem:[#allocation15 + $0x20] sm:$0xff] %vm2559_vm6, %v2605_v56  ;;  %v2627_v28 = vadd.f32 %v2626_v13, %v2623_v11  ;;  %2612 = vrot.lane.b32.xlu0 %v2605_v56, %s3026_s15  ;;  %v2464_v20 = vadd.f32 %v2460_v16, %v2424_v55 }
 0x4cb   :  { %v2629_v45 = vmax.f32 %v2627_v28, 0.0 }
 0x4cc   :  { %v2474_v29 = vpop.permute.xlu1 %2473 }
 0x4cd   :  { %2632 = vst.msk [vmem:[#allocation15 + $0x30] sm:$0xff] %vm2559_vm6, %v2629_v45  ;;  %2636 = vrot.lane.b32.xlu0 %v2629_v45, %s3026_s15  ;;  %v2478_v44 = vadd.f32 %v2474_v29, %v2430_v35 }
 0x4d0   :  { %v2488_v9 = vpop.permute.xlu1 %2487 }
 0x4d1   :  { %v2492_v31 = vadd.f32 %v2488_v9, %v2436_v39 }
 0x4d4   :  { %v2502_v19 = vpop.permute.xlu1 %2501 }
 0x4d5   :  { %v2506_v40 = vadd.f32 %v2502_v19, %v2450_v33 }
 0x4d7   :  { %v2552_v23 = vmul.f32 %v2550_v12, %v2506_v40 }
 0x4d8   :  { %v2516_v21 = vpop.permute.xlu1 %2515 }
 0x4d9   :  { %v2556_v2 = vadd.f32 %v2554_v32, %v2552_v23  ;;  %v2520_v59 = vadd.f32 %v2516_v21, %v2464_v20 }
 0x4db   :  { %v2558_v7 = vmax.f32 %v2556_v2, 0.0  ;;  %v2576_v63 = vmul.f32 %v2574_v57, %v2520_v59 }
 0x4dc   :  { %v2530_v0 = vpop.permute.xlu1 %2529 }
 0x4dd   :  { %2561 = vst.msk [vmem:[#allocation15 + $0x8] sm:$0xff] %vm2559_vm6, %v2558_v7  ;;  %v2580_v36 = vadd.f32 %v2578_v51, %v2576_v63  ;;  %v2534_v50 = vadd.f32 %v2530_v0, %v2478_v44  ;;  %2566 = vrot.lane.b32.xlu1 %v2558_v7, %s3026_s15 }
 0x4df   :  { %v2582_v27 = vmax.f32 %v2580_v36, 0.0  ;;  %v2600_v5 = vmul.f32 %v2598_v25, %v2534_v50 }
 0x4e0   :  { %v2544_v38 = vpop.permute.xlu1 %2543 }
 0x4e1   :  { %2585 = vst.msk [vmem:[#allocation15 + $0x18] sm:$0xff] %vm2559_vm6, %v2582_v27  ;;  %v2604_v12 = vadd.f32 %v2602_v62, %v2600_v5  ;;  %v2548_v6 = vadd.f32 %v2544_v38, %v2492_v31  ;;  %2590 = vrot.lane.b32.xlu1 %v2582_v27, %s3026_s15 }
 0x4e3   :  { %v2606_v22 = vmax.f32 %v2604_v12, 0.0  ;;  %v2624_v32 = vmul.f32 %v2622_v3, %v2548_v6 }
 0x4e5   :  { %2609 = vst.msk [vmem:[#allocation15 + $0x28] sm:$0xff] %vm2559_vm6, %v2606_v22  ;;  %v2628_v47 = vadd.f32 %v2626_v13, %v2624_v32  ;;  %2614 = vrot.lane.b32.xlu1 %v2606_v22, %s3026_s15 }
 0x4e7   :  { %v2630_v26 = vmax.f32 %v2628_v47, 0.0 }
 0x4e9   :  { %2633 = vst.msk [vmem:[#allocation15 + $0x38] sm:$0xff] %vm2559_vm6, %v2630_v26  ;;  %2638 = vrot.lane.b32.xlu1 %v2630_v26, %s3026_s15 }
 0x533   :  { %v2565_v8 = vpop.permute.xlu0 %2564 }
 0x534   :  { %2571 = vst.msk [vmem:[#allocation15 + $0x40] sm:$0xff] %vm2559_vm6, %v2565_v8 }
 0x537   :  { %v2589_v55 = vpop.permute.xlu0 %2588 }
 0x538   :  { %2595 = vst.msk [vmem:[#allocation15 + $0x50] sm:$0xff] %vm2559_vm6, %v2589_v55 }
 0x53b   :  { %v2613_v43 = vpop.permute.xlu0 %2612 }
 0x53c   :  { %2619 = vst.msk [vmem:[#allocation15 + $0x60] sm:$0xff] %vm2559_vm6, %v2613_v43 }
 0x53f   :  { %v2637_v57 = vpop.permute.xlu0 %2636 }
 0x540   :  { %2643 = vst.msk [vmem:[#allocation15 + $0x70] sm:$0xff] %vm2559_vm6, %v2637_v57 }
 0x54f   :  { %v2567_v15 = vpop.permute.xlu1 %2566 }
 0x550   :  { %2572 = vst.msk [vmem:[#allocation15 + $0x48] sm:$0xff] %vm2559_vm6, %v2567_v15 }
 0x553   :  { %v2591_v34 = vpop.permute.xlu1 %2590 }
 0x554   :  { %2596 = vst.msk [vmem:[#allocation15 + $0x58] sm:$0xff] %vm2559_vm6, %v2591_v34 }
 0x557   :  { %v2615_v14 = vpop.permute.xlu1 %2614 }
 0x558   :  { %2620 = vst.msk [vmem:[#allocation15 + $0x68] sm:$0xff] %vm2559_vm6, %v2615_v14 }
 0x55b   :  { %v2639_v37 = vpop.permute.xlu1 %2638 }
 0x55c   :  { %2644 = vst.msk [vmem:[#allocation15 + $0x78] sm:$0xff] %vm2559_vm6, %v2639_v37 }
 0x55d   :  { %2995 = shalt.err (!%p2992_p6)
}
 0x55e   :  { %s3028_s9 = smov 128   ;;  %s3029_s18 = smov 8  }
 0x55f   :  { %2656 = dma.vmem_to_hbm [thread:$0]  %s2651_s17, 2048, %s4405_s10, [#allocation5], %s3028_s9, %s3028_s9, %s3029_s18  }
 0x560   :  { %3012 = dma.done.wait [#allocation5], 2048  }
 0x561   :  { %3013 = vsyncadd [#allocation5], 4294965248 }
 0x562   :  { %2660 = vsyncpa [#allocation5], 1 }
 0x563   :  { %2661 = vsyncpa [#allocation6], 1 }
 0x564   :  { %2662 = vsyncpa [#allocation8], 1 }
 0x565   :  { %2663 = vsyncpa [#allocation11], 1 }
 0x566   :  { %2664 = vsyncpa [#allocation14], 1 }

</bundles_post_ra>
